<compile_context>
chip_gen: v5e
topology: v5e:2x2
jax: 0.10.0
libtpu: 0.0.40
codegen_flags: <defaults>
</compile_context>

<pallas_src>
import jax
import jax.numpy as jnp
import numpy as np
from jax.experimental import pallas as pl
from jax.experimental.pallas import tpu as pltpu

KSIZE = 5
PAD = KSIZE // 2


def eca_kernel(x_ref, w_ref, b_ref, o_ref):
    # x_ref: (TILE_S, N)   rows = s (depthwise-conv channel), cols = ch   (model dtype)
    # w_ref: (TILE_S, K)   per-row conv taps  weight[s, 0, 0, k]
    # b_ref: (1, TILE_S)   per-s bias, laid out for the transposed output
    # o_ref: (N, TILE_S)   out[ch, s] for the s values of this tile       (model dtype)
    x = x_ref[...].astype(jnp.float32)
    w = w_ref[...].astype(jnp.float32)
    n = x.shape[1]

    # Lane index row, built once; boundary masks broadcast over the sublane (s) axis.
    lane = jax.lax.broadcasted_iota(jnp.int32, (1, n), 1)

    # Center tap initializes the accumulator (no zeros materialization / extra add).
    acc = x * w[:, PAD:PAD + 1]

    for off in (-2, -1, 1, 2):  # static 4-tap loop, unrolled by tracing
        k = off + PAD
        # shifted[:, ch] = x[:, ch + off]  (XLU lane rotate; wrapped lanes masked below)
        shifted = pltpu.roll(x, shift=(-off) % n, axis=1)
        if off < 0:
            mask = (lane >= -off).astype(jnp.float32)      # zero padding on the left
        else:
            mask = (lane < n - off).astype(jnp.float32)    # zero padding on the right
        acc = acc + (shifted * mask) * w[:, k:k + 1]

    # Cast before the (s, ch) -> (ch, s) XLU transpose (halves transpose bytes for
    # sub-32-bit dtypes), then add the per-s bias as a cheap lane-resident row.
    y_t = acc.astype(o_ref.dtype).T                         # (N, TILE_S)
    o_ref[...] = y_t + b_ref[...].astype(o_ref.dtype)


def _choose_tile_s(n, itemsize):
    # Per grid step: double-buffered BlockSpec blocks (input (t,n) + output (n,t) in
    # the model dtype) plus ~5 live f32 tile-sized temporaries (x upcast, rolled copy,
    # masked product, acc, transposed result).  Keep well inside the 32 MiB scoped
    # limit that is safe on every generation (v7x physical VMEM is only 64 MiB).
    budget = 24 * 1024 * 1024

    def fits(t):
        blockspec_bytes = 4 * t * n * itemsize   # 2 blocks x 2 (double buffering)
        f32_temp_bytes = 5 * t * n * 4
        return blockspec_bytes + f32_temp_bytes <= budget

    # Prefer 256-row tiles: >= 4 grid steps at n=1024 (keeps both v7x TCs pipelined)
    # while staying lane-dense (tile >= 128 -> unmasked vector stores).
    for t in (256, 512, 128):
        if n % t == 0 and fits(t):
            return t
    # n not a multiple of 128: bounded lane-dense tile + cdiv grid (partial last tile;
    # out-of-range output lanes are clipped by Pallas on store).
    if n >= 128:
        for t in (256, 128):
            if fits(t):
                return t
    return n  # tiny n: single full-array block (legal: block dims == array dims)


def eca_attention_pallas(x, weight, bias):
    """x: (1, C, H, W) NCHW; weight: (C, 1, 1, KSIZE); bias: (C,). Requires H*W == C."""
    b, c, h, w = x.shape
    assert b == 1 and h * w == c, "module's forward requires B == 1 and H*W == C"
    n = c
    dtype = x.dtype
    itemsize = jnp.dtype(dtype).itemsize

    X = x.reshape(n, n)                    # free reshape of NCHW, no copy / transpose
    W2 = weight.reshape(n, KSIZE)          # per-s taps (kernel upcasts to f32)
    B2 = bias.reshape(1, n)                # row layout -> (1, tile_s) blocks post-transpose

    tile_s = _choose_tile_s(n, itemsize)
    grid = (pl.cdiv(n, tile_s),)

    cost = pl.CostEstimate(
        flops=10 * n * n,                                  # ~2 ops x 5 taps / element
        transcendentals=0,
        bytes_accessed=2 * n * n * itemsize + n * (KSIZE + 1) * itemsize,
    )

    out = pl.pallas_call(
        eca_kernel,
        out_shape=jax.ShapeDtypeStruct((n, n), dtype),
        grid=grid,
        in_specs=[
            pl.BlockSpec((tile_s, n), lambda i: (i, 0)),      # row (s) tile of X
            pl.BlockSpec((tile_s, KSIZE), lambda i: (i, 0)),  # matching taps
            pl.BlockSpec((1, tile_s), lambda i: (0, i)),      # matching bias (post-T)
        ],
        out_specs=pl.BlockSpec((n, tile_s), lambda i: (0, i)),  # lane (s) tile of out
        compiler_params=pltpu.CompilerParams(
            dimension_semantics=("parallel",),                # shard tiles across TCs (v7x)
            vmem_limit_bytes=32 * 1024 * 1024,                # safe on v5e/v6e/v7x
        ),
        cost_estimate=cost,
    )(X, W2, B2)

    return out.reshape(1, c, h, w)


def eca_reference(x, weight, bias):
    """Pure-JAX replica of the PyTorch forward, used for validation."""
    b, c, h, w = x.shape
    hw = h * w
    X = x.reshape(c, hw).astype(jnp.float32)
    Xp = jnp.pad(X, ((0, 0), (PAD, PAD)))
    Wt = weight.reshape(c, KSIZE).astype(jnp.float32)
    y = bias.astype(jnp.float32)[:, None] + sum(
        Xp[:, k:k + hw] * Wt[:, k][:, None] for k in range(KSIZE)
    )                                                   # (s, ch)
    return y.T.reshape(1, c, h, w).astype(x.dtype)      # squeeze + permute + reshape


def _run_case(key, c, h, w):
    k1, k2, k3 = jax.random.split(key, 3)
    x = jax.random.normal(k1, (1, c, h, w), dtype=jnp.float32)
    weight = jax.random.normal(k2, (c, 1, 1, KSIZE), dtype=jnp.float32) * 0.1
    bias = jax.random.normal(k3, (c,), dtype=jnp.float32) * 0.1

    out = jax.block_until_ready(eca_attention_pallas(x, weight, bias))
    ref = eca_reference(x, weight, bias)
    np.testing.assert_allclose(np.asarray(out), np.asarray(ref), rtol=1e-5, atol=1e-5)


if __name__ == "__main__":
    key = jax.random.PRNGKey(0)
    k_a, k_b = jax.random.split(key)

    # B=1 and H*W == C are required by the original module's forward.
    _run_case(k_a, 256, 16, 16)     # single-tile path (tile_s = 256 == n)
    _run_case(k_b, 1024, 32, 32)    # multi-tile path: tile_s=256, grid=(4,), pipelined

    print("KERNEL_OK")
</pallas_src>

<mosaic_0001>
module attributes {stable_mosaic.version = 11 : i64} {
  func.func @eca_kernel(%arg0: i32, %arg1: memref<256x256xf32, #tpu.memory_space<vmem>>, %arg2: memref<256x5xf32, #tpu.memory_space<vmem>>, %arg3: memref<1x256xf32, #tpu.memory_space<vmem>>, %arg4: memref<256x256xf32, #tpu.memory_space<vmem>>) attributes {dimension_semantics = [#tpu.dimension_semantics<parallel>], iteration_bounds = array<i64: 1>, scalar_prefetch = 0 : i64, scratch_operands = 0 : i64, tpu.core_type = #tpu.core_type<tc>, window_params = [{transform_indices = @transform_0, window_bounds = array<i64: 256, 256>}, {transform_indices = @transform_1, window_bounds = array<i64: 256, 5>}, {transform_indices = @transform_2, window_bounds = array<i64: 1, 256>}, {transform_indices = @transform_3, window_bounds = array<i64: 256, 256>}]} {
    %c0 = arith.constant 0 : index
    %c0_0 = arith.constant 0 : index
    %0 = vector.load %arg1[%c0, %c0_0] : memref<256x256xf32, #tpu.memory_space<vmem>>, vector<256x256xf32>
    %c0_1 = arith.constant 0 : index
    %c0_2 = arith.constant 0 : index
    %1 = vector.load %arg2[%c0_1, %c0_2] : memref<256x5xf32, #tpu.memory_space<vmem>>, vector<256x5xf32>
    %2 = tpu.iota {dimensions = array<i32: 1>} : vector<1x256xi32>
    %3 = vector.extract_strided_slice %1 {offsets = [0, 2], sizes = [256, 1], strides = [1, 1]} : vector<256x5xf32> to vector<256x1xf32>
    %4 = vector.broadcast %3 : vector<256x1xf32> to vector<256x256xf32>
    %5 = arith.mulf %0, %4 : vector<256x256xf32>
    %c2_i32 = arith.constant 2 : i32
    %6 = tpu.dynamic_rotate %0 by %c2_i32 dim 1 : vector<256x256xf32>, i32 -> vector<256x256xf32>
    %c2_i32_3 = arith.constant 2 : i32
    %7 = vector.broadcast %c2_i32_3 : i32 to vector<1x256xi32>
    %8 = arith.cmpi sge, %2, %7 : vector<1x256xi32>
    %9 = arith.extui %8 : vector<1x256xi1> to vector<1x256xi32>
    %10 = arith.sitofp %9 : vector<1x256xi32> to vector<1x256xf32>
    %11 = vector.broadcast %10 : vector<1x256xf32> to vector<256x256xf32>
    %12 = arith.mulf %6, %11 : vector<256x256xf32>
    %13 = vector.extract_strided_slice %1 {offsets = [0, 0], sizes = [256, 1], strides = [1, 1]} : vector<256x5xf32> to vector<256x1xf32>
    %14 = vector.broadcast %13 : vector<256x1xf32> to vector<256x256xf32>
    %15 = arith.mulf %12, %14 : vector<256x256xf32>
    %16 = arith.addf %5, %15 : vector<256x256xf32>
    %c1_i32 = arith.constant 1 : i32
    %17 = tpu.dynamic_rotate %0 by %c1_i32 dim 1 : vector<256x256xf32>, i32 -> vector<256x256xf32>
    %c1_i32_4 = arith.constant 1 : i32
    %18 = vector.broadcast %c1_i32_4 : i32 to vector<1x256xi32>
    %19 = arith.cmpi sge, %2, %18 : vector<1x256xi32>
    %20 = arith.extui %19 : vector<1x256xi1> to vector<1x256xi32>
    %21 = arith.sitofp %20 : vector<1x256xi32> to vector<1x256xf32>
    %22 = vector.broadcast %21 : vector<1x256xf32> to vector<256x256xf32>
    %23 = arith.mulf %17, %22 : vector<256x256xf32>
    %24 = vector.extract_strided_slice %1 {offsets = [0, 1], sizes = [256, 1], strides = [1, 1]} : vector<256x5xf32> to vector<256x1xf32>
    %25 = vector.broadcast %24 : vector<256x1xf32> to vector<256x256xf32>
    %26 = arith.mulf %23, %25 : vector<256x256xf32>
    %27 = arith.addf %16, %26 : vector<256x256xf32>
    %c255_i32 = arith.constant 255 : i32
    %28 = tpu.dynamic_rotate %0 by %c255_i32 dim 1 : vector<256x256xf32>, i32 -> vector<256x256xf32>
    %c255_i32_5 = arith.constant 255 : i32
    %29 = vector.broadcast %c255_i32_5 : i32 to vector<1x256xi32>
    %30 = arith.cmpi slt, %2, %29 : vector<1x256xi32>
    %31 = arith.extui %30 : vector<1x256xi1> to vector<1x256xi32>
    %32 = arith.sitofp %31 : vector<1x256xi32> to vector<1x256xf32>
    %33 = vector.broadcast %32 : vector<1x256xf32> to vector<256x256xf32>
    %34 = arith.mulf %28, %33 : vector<256x256xf32>
    %35 = vector.extract_strided_slice %1 {offsets = [0, 3], sizes = [256, 1], strides = [1, 1]} : vector<256x5xf32> to vector<256x1xf32>
    %36 = vector.broadcast %35 : vector<256x1xf32> to vector<256x256xf32>
    %37 = arith.mulf %34, %36 : vector<256x256xf32>
    %38 = arith.addf %27, %37 : vector<256x256xf32>
    %c254_i32 = arith.constant 254 : i32
    %39 = tpu.dynamic_rotate %0 by %c254_i32 dim 1 : vector<256x256xf32>, i32 -> vector<256x256xf32>
    %c254_i32_6 = arith.constant 254 : i32
    %40 = vector.broadcast %c254_i32_6 : i32 to vector<1x256xi32>
    %41 = arith.cmpi slt, %2, %40 : vector<1x256xi32>
    %42 = arith.extui %41 : vector<1x256xi1> to vector<1x256xi32>
    %43 = arith.sitofp %42 : vector<1x256xi32> to vector<1x256xf32>
    %44 = vector.broadcast %43 : vector<1x256xf32> to vector<256x256xf32>
    %45 = arith.mulf %39, %44 : vector<256x256xf32>
    %46 = vector.extract_strided_slice %1 {offsets = [0, 4], sizes = [256, 1], strides = [1, 1]} : vector<256x5xf32> to vector<256x1xf32>
    %47 = vector.broadcast %46 : vector<256x1xf32> to vector<256x256xf32>
    %48 = arith.mulf %45, %47 : vector<256x256xf32>
    %49 = arith.addf %38, %48 : vector<256x256xf32>
    %50 = tpu.transpose %49, [1, 0] : vector<256x256xf32> -> vector<256x256xf32>
    %c0_7 = arith.constant 0 : index
    %c0_8 = arith.constant 0 : index
    %51 = vector.load %arg3[%c0_7, %c0_8] : memref<1x256xf32, #tpu.memory_space<vmem>>, vector<1x256xf32>
    %52 = vector.broadcast %51 : vector<1x256xf32> to vector<256x256xf32>
    %53 = arith.addf %50, %52 : vector<256x256xf32>
    %c0_9 = arith.constant 0 : index
    %c0_10 = arith.constant 0 : index
    %54 = vector.load %arg4[%c0_9, %c0_10] : memref<256x256xf32, #tpu.memory_space<vmem>>, vector<256x256xf32>
    tpu.vector_store %arg4[%c0_9, %c0_10], %53 {strides = array<i32>} : memref<256x256xf32, #tpu.memory_space<vmem>>, vector<256x256xf32>,
    return
  }
  func.func @transform_0(%arg0: i32) -> (i32, i32) {
    %c0_i32 = arith.constant 0 : i32
    %c0_i32_0 = arith.constant 0 : i32
    return %arg0, %c0_i32 : i32, i32
  }
  func.func @transform_1(%arg0: i32) -> (i32, i32) {
    %c0_i32 = arith.constant 0 : i32
    %c0_i32_0 = arith.constant 0 : i32
    return %arg0, %c0_i32 : i32, i32
  }
  func.func @transform_2(%arg0: i32) -> (i32, i32) {
    %c0_i32 = arith.constant 0 : i32
    %c0_i32_0 = arith.constant 0 : i32
    return %c0_i32, %arg0 : i32, i32
  }
  func.func @transform_3(%arg0: i32) -> (i32, i32) {
    %c0_i32 = arith.constant 0 : i32
    %c0_i32_0 = arith.constant 0 : i32
    return %c0_i32, %arg0 : i32, i32
  }
}

</mosaic_0001>

<bundles_post_ra>
// kernel: tpu_custom_call.1
= control target key start
LH: loop header
LB: loop body
LE: loop exit
PB: predicated region body
PF: predicated region fallthrough
CT: control target
= control target key end

     0   :  { %8 = vsyncpa [#allocation3], 0  ;;  %s7561_s0 = inlined_call_operand.hbm [shape: f32[256,256], index: 0, kind: input, shape index: {}]   ;;  %s7562_s1 = inlined_call_operand.vmem [shape: f32[256,5], index: 1, kind: input, shape index: {}]   ;;  %s7563_s2 = inlined_call_operand.vmem [shape: f32[1,256], index: 2, kind: input, shape index: {}]   ;;  %s7564_s3 = inlined_call_operand.hbm [shape: f32[256,256], index: 3, kind: output, shape index: {}]  }
   0x1   :  { %9 = vsyncpa [#allocation4], 0  ;;  %s14_s14 = sshll.u32 %s7561_s0, 4  ;;  %s2915_s15 = smov [#allocation2]   ;;  %s15_s14 = int_to_ptr.hbm [resolvable:$true] %s14_s14 }
   0x2   :  { %s16_s16 = sshll.u32 %s2915_s15, 4  ;;  %s2916_s17 = smov 256   ;;  %s17_s16 = int_to_ptr.vmem [resolvable:$true] %s16_s16 }
   0x3   :  { %s2917_s18 = smov 16  }
   0x4   :  { %22 = dma.hbm_to_vmem [thread:$0]  %s15_s14, 8192, %s17_s16, [#allocation3], %s2916_s17, %s2916_s17, %s2917_s18  }
   0x5   :  { %2911 = dma.done.wait [#allocation3], 8192  }
   0x6   :  { %2912 = vsyncadd [#allocation3], 4294959104  ;;  %v2918_v0 = vmov 2   ;;  %v2958_v1 = vld [vmem:[%s7562_s1 + $0x20] sm:$0xff]  ;;  %v2963_v2 = vld [vmem:[%s7562_s1 + $0x10] sm:$0xff]  ;;  %s2919_s30 = smov 2  }
   0x7   :  { %2731 = vset.pattern.permute.xlu2 %v2918_v0  ;;  %2730 = vset.pattern.permute.xlu1 %v2918_v0  ;;  %v2968_v3 = vld [vmem:[%s7562_s1] sm:$0xff]  ;;  %v2976_v4 = vld [vmem:[%s7562_s1 + $0x28] sm:$0xff]  ;;  %v2981_v5 = vld [vmem:[%s7562_s1 + $0x18] sm:$0xff]  ;;  %s2921_s4 = smov 1   ;;  %s2923_s5 = smov 127  }
   0x8   :  { %2729 = vset.pattern.permute.xlu0 %v2918_v0  ;;  %152 = vperm.xlu2 %2731, %v2958_v1   ;;  %v2986_v6 = vld [vmem:[%s7562_s1 + $0x8] sm:$0xff]  ;;  %v2994_v7 = vld [vmem:[%s7562_s1 + $0x40] sm:$0xff]  ;;  %v2999_v8 = vld [vmem:[%s7562_s1 + $0x38] sm:$0xff]  ;;  %s2925_s12 = smov 126   ;;  %s2698_s9 = sshll.u32 %s7564_s3, 4  ;;  %s2699_s9 = int_to_ptr.hbm [resolvable:$true] %s2698_s9 }
   0x9   :  { %142 = vperm.xlu1 %2730, %v2963_v2   ;;  %132 = vperm.xlu0 %2729, %v2968_v3   ;;  %v3004_v9 = vld [vmem:[%s7562_s1 + $0x30] sm:$0xff]  ;;  %v3012_v10 = vld [vmem:[%s7562_s1 + $0x58] sm:$0xff]  ;;  %v3022_v12 = vld [vmem:[%s7562_s1 + $0x48] sm:$0xff] }
   0xa   :  { %v3017_v11 = vld [vmem:[%s7562_s1 + $0x50] sm:$0xff]  ;;  %v3035_v14 = vld [vmem:[%s7562_s1 + $0x68] sm:$0xff]  ;;  %v3040_v15 = vld [vmem:[%s7562_s1 + $0x60] sm:$0xff] }
   0xb   :  { %v3030_v13 = vld [vmem:[%s7562_s1 + $0x70] sm:$0xff]  ;;  %v3048_v16 = vld [vmem:[%s7562_s1 + $0x88] sm:$0xff]  ;;  %v3053_v17 = vld [vmem:[%s7562_s1 + $0x80] sm:$0xff] }
   0xc   :  { %v3058_v18 = vld [vmem:[%s7562_s1 + $0x78] sm:$0xff]  ;;  %v3066_v19 = vld [vmem:[%s7562_s1 + $0xa0] sm:$0xff]  ;;  %v3076_v21 = vld [vmem:[%s7562_s1 + $0x90] sm:$0xff] }
   0xd   :  { %v3071_v20 = vld [vmem:[%s7562_s1 + $0x98] sm:$0xff]  ;;  %v3089_v23 = vld [vmem:[%s7562_s1 + $0xb0] sm:$0xff]  ;;  %v3094_v24 = vld [vmem:[%s7562_s1 + $0xa8] sm:$0xff] }
   0xe   :  { %v3084_v22 = vld [vmem:[%s7562_s1 + $0xb8] sm:$0xff]  ;;  %v3102_v25 = vld [vmem:[%s7562_s1 + $0xd0] sm:$0xff]  ;;  %v3107_v26 = vld [vmem:[%s7562_s1 + $0xc8] sm:$0xff] }
   0xf   :  { %v3112_v27 = vld [vmem:[%s7562_s1 + $0xc0] sm:$0xff]  ;;  %v3120_v28 = vld [vmem:[%s7562_s1 + $0xe8] sm:$0xff]  ;;  %v3130_v30 = vld [vmem:[%s7562_s1 + $0xd8] sm:$0xff] }
  0x10   :  { %157 = vperm.xlu2 %2731, %v2976_v4   ;;  %v3125_v29 = vld [vmem:[%s7562_s1 + $0xe0] sm:$0xff]  ;;  %v3138_v31 = vld [vmem:[%s7562_s1 + $0xf8] sm:$0xff]  ;;  %v3145_v33 = vld [vmem:[%s7562_s1 + $0xf0] sm:$0xff] }
  0x11   :  { %147 = vperm.xlu1 %2730, %v2981_v5   ;;  %137 = vperm.xlu0 %2729, %v2986_v6   ;;  %v3140_v32 = vld [vmem:[#allocation2] sm:$0xff]  ;;  %v3153_v35 = vld [vmem:[#allocation2 + $0x30] sm:$0xff] }
  0x12   :  { %v3151_v34 = vld [vmem:[#allocation2 + $0x20] sm:$0xff]  ;;  %v3155_v36 = vld [vmem:[#allocation2 + $0x10] sm:$0xff] }
  0x13   :  { %v3165_v38 = vld [vmem:[#allocation2 + $0x50] sm:$0xff]  ;;  %v3167_v39 = vld [vmem:[#allocation2 + $0x60] sm:$0xff] }
  0x14   :  { %v3169_v40 = vld [vmem:[#allocation2 + $0x40] sm:$0xff]  ;;  %v3181_v43 = vld [vmem:[#allocation2 + $0x90] sm:$0xff] }
  0x15   :  { %v3179_v42 = vld [vmem:[#allocation2 + $0x80] sm:$0xff]  ;;  %v3183_v44 = vld [vmem:[#allocation2 + $0x70] sm:$0xff] }
  0x16   :  { %v3193_v46 = vld [vmem:[#allocation2 + $0xb0] sm:$0xff]  ;;  %v3195_v47 = vld [vmem:[#allocation2 + $0xc0] sm:$0xff] }
  0x17   :  { %v3197_v48 = vld [vmem:[#allocation2 + $0xa0] sm:$0xff]  ;;  %v3213_v53 = vld [vmem:[#allocation2 + $0xf0] sm:$0xff] }
  0x18   :  { %172 = vperm.xlu2 %2731, %v2994_v7   ;;  %v3211_v52 = vld [vmem:[#allocation2 + $0xe0] sm:$0xff]  ;;  %v3215_v54 = vld [vmem:[#allocation2 + $0xd0] sm:$0xff] }
  0x19   :  { %167 = vperm.xlu1 %2730, %v2999_v8   ;;  %162 = vperm.xlu0 %2729, %v3004_v9   ;;  %v3229_v58 = vld [vmem:[#allocation2 + $0x110] sm:$0xff]  ;;  %v3231_v59 = vld [vmem:[#allocation2 + $0x120] sm:$0xff] }
  0x1a   :  { %v3233_v60 = vld [vmem:[#allocation2 + $0x100] sm:$0xff] }
  0x1b   :  { %v3247_v0 = vld [vmem:[#allocation2 + $0x140] sm:$0xff] }
  0x20   :  { %187 = vperm.xlu2 %2731, %v3012_v10  }
  0x21   :  { %182 = vperm.xlu1 %2730, %v3017_v11   ;;  %177 = vperm.xlu0 %2729, %v3022_v12  }
  0x28   :  { %202 = vperm.xlu2 %2731, %v3030_v13  }
  0x29   :  { %197 = vperm.xlu1 %2730, %v3035_v14   ;;  %192 = vperm.xlu0 %2729, %v3040_v15  }
  0x30   :  { %217 = vperm.xlu2 %2731, %v3048_v16  }
  0x31   :  { %212 = vperm.xlu1 %2730, %v3053_v17   ;;  %207 = vperm.xlu0 %2729, %v3058_v18  }
  0x38   :  { %232 = vperm.xlu2 %2731, %v3066_v19  }
  0x39   :  { %227 = vperm.xlu1 %2730, %v3071_v20   ;;  %222 = vperm.xlu0 %2729, %v3076_v21  }
  0x40   :  { %247 = vperm.xlu2 %2731, %v3084_v22  }
  0x41   :  { %242 = vperm.xlu1 %2730, %v3089_v23   ;;  %237 = vperm.xlu0 %2729, %v3094_v24  }
  0x48   :  { %262 = vperm.xlu2 %2731, %v3102_v25  }
  0x49   :  { %257 = vperm.xlu1 %2730, %v3107_v26   ;;  %252 = vperm.xlu0 %2729, %v3112_v27  }
  0x50   :  { %277 = vperm.xlu2 %2731, %v3120_v28  }
  0x51   :  { %272 = vperm.xlu1 %2730, %v3125_v29   ;;  %267 = vperm.xlu0 %2729, %v3130_v30  }
  0x58   :  { %354 = vrot.lane.b32.xlu2 %v3140_v32, %s2919_s30 }
  0x59   :  { %287 = vperm.xlu1 %2730, %v3138_v31   ;;  %282 = vperm.xlu0 %2729, %v3145_v33  }
  0x60   :  { %360 = vrot.lane.b32.xlu2 %v3153_v35, %s2919_s30 }
  0x61   :  { %358 = vrot.lane.b32.xlu1 %v3151_v34, %s2919_s30  ;;  %356 = vrot.lane.b32.xlu0 %v3155_v36, %s2919_s30 }
  0x62   :  { %v3163_v37 = vpop.permute.xlu2 %152 }
  0x63   :  { %7993 = vst [vmem:[#allocation8_spill] sm:$0xff] %v3163_v37  ;;  %v3301_v37 = vld [vmem:[#allocation2 + $0x1d0] sm:$0xff] }
  0x64   :  { %8022 = vst [vmem:[#allocation37_spill] sm:$0xff] %v3301_v37 }
  0x68   :  { %366 = vrot.lane.b32.xlu2 %v3167_v39, %s2919_s30 }
  0x69   :  { %364 = vrot.lane.b32.xlu1 %v3165_v38, %s2919_s30  ;;  %362 = vrot.lane.b32.xlu0 %v3169_v40, %s2919_s30 }
  0x6a   :  { %v3177_v41 = vpop.permute.xlu2 %157 }
  0x6b   :  { %7994 = vst [vmem:[#allocation9_spill] sm:$0xff] %v3177_v41  ;;  %v3287_v41 = vld [vmem:[#allocation2 + $0x190] sm:$0xff] }
  0x6c   :  { %8018 = vst [vmem:[#allocation33_spill] sm:$0xff] %v3287_v41 }
  0x70   :  { %372 = vrot.lane.b32.xlu2 %v3181_v43, %s2919_s30 }
  0x71   :  { %370 = vrot.lane.b32.xlu1 %v3179_v42, %s2919_s30  ;;  %368 = vrot.lane.b32.xlu0 %v3183_v44, %s2919_s30 }
  0x72   :  { %v3191_v45 = vpop.permute.xlu2 %172 }
  0x73   :  { %7995 = vst [vmem:[#allocation10_spill] sm:$0xff] %v3191_v45  ;;  %v3285_v45 = vld [vmem:[#allocation2 + $0x1b0] sm:$0xff] }
  0x74   :  { %8017 = vst [vmem:[#allocation32_spill] sm:$0xff] %v3285_v45 }
  0x78   :  { %378 = vrot.lane.b32.xlu2 %v3195_v47, %s2919_s30 }
  0x79   :  { %376 = vrot.lane.b32.xlu1 %v3193_v46, %s2919_s30  ;;  %374 = vrot.lane.b32.xlu0 %v3197_v48, %s2919_s30 }
  0x7a   :  { %v3205_v49 = vpop.permute.xlu2 %187 }
  0x7b   :  { %7996 = vst [vmem:[#allocation11_spill] sm:$0xff] %v3205_v49  ;;  %v3207_v50 = vpop.permute.xlu1 %142  ;;  %v3209_v51 = vpop.permute.xlu0 %132  ;;  %v3283_v49 = vld [vmem:[#allocation2 + $0x1a0] sm:$0xff] }
  0x7c   :  { %7997 = vst [vmem:[#allocation12_spill] sm:$0xff] %v3207_v50  ;;  %v3269_v50 = vld [vmem:[#allocation2 + $0x160] sm:$0xff] }
  0x7d   :  { %7998 = vst [vmem:[#allocation13_spill] sm:$0xff] %v3209_v51  ;;  %v3267_v51 = vld [vmem:[#allocation2 + $0x180] sm:$0xff] }
  0x7e   :  { %8011 = vst [vmem:[#allocation26_spill] sm:$0xff] %v3267_v51 }
  0x7f   :  { %8012 = vst [vmem:[#allocation27_spill] sm:$0xff] %v3269_v50 }
  0x80   :  { %384 = vrot.lane.b32.xlu2 %v3213_v53, %s2919_s30  ;;  %8016 = vst [vmem:[#allocation31_spill] sm:$0xff] %v3283_v49 }
  0x81   :  { %382 = vrot.lane.b32.xlu1 %v3211_v52, %s2919_s30  ;;  %380 = vrot.lane.b32.xlu0 %v3215_v54, %s2919_s30 }
  0x82   :  { %v3223_v55 = vpop.permute.xlu2 %202 }
  0x83   :  { %7999 = vst [vmem:[#allocation14_spill] sm:$0xff] %v3223_v55  ;;  %v3225_v56 = vpop.permute.xlu1 %147  ;;  %v3227_v57 = vpop.permute.xlu0 %137  ;;  %v3265_v55 = vld [vmem:[#allocation2 + $0x170] sm:$0xff] }
  0x84   :  { %8000 = vst [vmem:[#allocation15_spill] sm:$0xff] %v3225_v56  ;;  %v3251_v56 = vld [vmem:[#allocation2 + $0x130] sm:$0xff] }
  0x85   :  { %8001 = vst [vmem:[#allocation16_spill] sm:$0xff] %v3227_v57  ;;  %v3249_v57 = vld [vmem:[#allocation2 + $0x150] sm:$0xff] }
  0x86   :  { %8005 = vst [vmem:[#allocation20_spill] sm:$0xff] %v3249_v57 }
  0x87   :  { %8006 = vst [vmem:[#allocation21_spill] sm:$0xff] %v3251_v56 }
  0x88   :  { %390 = vrot.lane.b32.xlu2 %v3231_v59, %s2919_s30  ;;  %8010 = vst [vmem:[#allocation25_spill] sm:$0xff] %v3265_v55 }
  0x89   :  { %388 = vrot.lane.b32.xlu1 %v3229_v58, %s2919_s30  ;;  %386 = vrot.lane.b32.xlu0 %v3233_v60, %s2919_s30 }
  0x8a   :  { %v3241_v61 = vpop.permute.xlu2 %217 }
  0x8b   :  { %8002 = vst [vmem:[#allocation17_spill] sm:$0xff] %v3241_v61  ;;  %v3243_v62 = vpop.permute.xlu1 %167  ;;  %v3245_v63 = vpop.permute.xlu0 %162 }
  0x8c   :  { %8003 = vst [vmem:[#allocation18_spill] sm:$0xff] %v3243_v62 }
  0x8d   :  { %8004 = vst [vmem:[#allocation19_spill] sm:$0xff] %v3245_v63 }
  0x90   :  { %396 = vrot.lane.b32.xlu2 %v3249_v57, %s2919_s30 }
  0x91   :  { %394 = vrot.lane.b32.xlu1 %v3247_v0, %s2919_s30  ;;  %392 = vrot.lane.b32.xlu0 %v3251_v56, %s2919_s30 }
  0x92   :  { %v3259_v61 = vpop.permute.xlu2 %232 }
  0x93   :  { %8007 = vst [vmem:[#allocation22_spill] sm:$0xff] %v3259_v61  ;;  %v3261_v62 = vpop.permute.xlu1 %182  ;;  %v3263_v63 = vpop.permute.xlu0 %177 }
  0x94   :  { %8008 = vst [vmem:[#allocation23_spill] sm:$0xff] %v3261_v62 }
  0x95   :  { %8009 = vst [vmem:[#allocation24_spill] sm:$0xff] %v3263_v63 }
  0x98   :  { %402 = vrot.lane.b32.xlu2 %v3267_v51, %s2919_s30  ;;  %v3303_v51 = vld [vmem:[#allocation2 + $0x1e0] sm:$0xff] }
  0x99   :  { %400 = vrot.lane.b32.xlu1 %v3265_v55, %s2919_s30  ;;  %398 = vrot.lane.b32.xlu0 %v3269_v50, %s2919_s30  ;;  %8023 = vst [vmem:[#allocation38_spill] sm:$0xff] %v3303_v51  ;;  %v3305_v55 = vld [vmem:[#allocation2 + $0x1c0] sm:$0xff] }
  0x9a   :  { %v3277_v61 = vpop.permute.xlu2 %247  ;;  %8024 = vst [vmem:[#allocation39_spill] sm:$0xff] %v3305_v55 }
  0x9b   :  { %8013 = vst [vmem:[#allocation28_spill] sm:$0xff] %v3277_v61  ;;  %v3279_v62 = vpop.permute.xlu1 %197  ;;  %v3281_v63 = vpop.permute.xlu0 %192 }
  0x9c   :  { %8014 = vst [vmem:[#allocation29_spill] sm:$0xff] %v3279_v62 }
  0x9d   :  { %8015 = vst [vmem:[#allocation30_spill] sm:$0xff] %v3281_v63 }
  0xa0   :  { %408 = vrot.lane.b32.xlu2 %v3285_v45, %s2919_s30  ;;  %v3319_v45 = vld [vmem:[#allocation2 + $0x1f0] sm:$0xff] }
  0xa1   :  { %406 = vrot.lane.b32.xlu1 %v3283_v49, %s2919_s30  ;;  %404 = vrot.lane.b32.xlu0 %v3287_v41, %s2919_s30  ;;  %8028 = vst [vmem:[#allocation43_spill] sm:$0xff] %v3319_v45  ;;  %v3321_v49 = vld [vmem:[#allocation2 + $0x8] sm:$0xff]  ;;  %v3323_v41 = vld [vmem:[#allocation2 + $0x18] sm:$0xff] }
  0xa2   :  { %v3295_v61 = vpop.permute.xlu2 %262  ;;  %8029 = vst [vmem:[#allocation44_spill] sm:$0xff] %v3321_v49 }
  0xa3   :  { %8019 = vst [vmem:[#allocation34_spill] sm:$0xff] %v3295_v61  ;;  %v3297_v62 = vpop.permute.xlu1 %212  ;;  %v3299_v63 = vpop.permute.xlu0 %207 }
  0xa4   :  { %8020 = vst [vmem:[#allocation35_spill] sm:$0xff] %v3297_v62 }
  0xa5   :  { %8021 = vst [vmem:[#allocation36_spill] sm:$0xff] %v3299_v63 }
  0xa6   :  { %8030 = vst [vmem:[#allocation45_spill] sm:$0xff] %v3323_v41 }
  0xa8   :  { %414 = vrot.lane.b32.xlu2 %v3303_v51, %s2919_s30  ;;  %v3337_v51 = vld [vmem:[#allocation2 + $0x48] sm:$0xff] }
  0xa9   :  { %412 = vrot.lane.b32.xlu1 %v3301_v37, %s2919_s30  ;;  %410 = vrot.lane.b32.xlu0 %v3305_v55, %s2919_s30  ;;  %8034 = vst [vmem:[#allocation49_spill] sm:$0xff] %v3337_v51  ;;  %v3339_v37 = vld [vmem:[#allocation2 + $0x38] sm:$0xff]  ;;  %v3341_v55 = vld [vmem:[#allocation2 + $0x28] sm:$0xff] }
  0xaa   :  { %v3313_v61 = vpop.permute.xlu2 %277  ;;  %8035 = vst [vmem:[#allocation50_spill] sm:$0xff] %v3339_v37 }
  0xab   :  { %8025 = vst [vmem:[#allocation40_spill] sm:$0xff] %v3313_v61  ;;  %v3315_v62 = vpop.permute.xlu1 %227  ;;  %v3317_v63 = vpop.permute.xlu0 %222 }
  0xac   :  { %8026 = vst [vmem:[#allocation41_spill] sm:$0xff] %v3315_v62 }
  0xad   :  { %8027 = vst [vmem:[#allocation42_spill] sm:$0xff] %v3317_v63 }
  0xae   :  { %8036 = vst [vmem:[#allocation51_spill] sm:$0xff] %v3341_v55 }
  0xb0   :  { %420 = vrot.lane.b32.xlu2 %v3323_v41, %s2919_s30  ;;  %v3355_v41 = vld [vmem:[#allocation2 + $0x78] sm:$0xff] }
  0xb1   :  { %418 = vrot.lane.b32.xlu1 %v3321_v49, %s2919_s30  ;;  %416 = vrot.lane.b32.xlu0 %v3319_v45, %s2919_s30  ;;  %8040 = vst [vmem:[#allocation55_spill] sm:$0xff] %v3355_v41  ;;  %v3357_v49 = vld [vmem:[#allocation2 + $0x68] sm:$0xff]  ;;  %v3359_v45 = vld [vmem:[#allocation2 + $0x58] sm:$0xff] }
  0xb2   :  { %v3333_v62 = vpop.permute.xlu2 %354  ;;  %8041 = vst [vmem:[#allocation56_spill] sm:$0xff] %v3357_v49 }
  0xb3   :  { %v3331_v61 = vpop.permute.xlu1 %242  ;;  %8032 = vst [vmem:[#allocation47_spill] sm:$0xff] %v3333_v62  ;;  %v3335_v63 = vpop.permute.xlu0 %237 }
  0xb4   :  { %8031 = vst [vmem:[#allocation46_spill] sm:$0xff] %v3331_v61 }
  0xb5   :  { %8033 = vst [vmem:[#allocation48_spill] sm:$0xff] %v3335_v63 }
  0xb6   :  { %8042 = vst [vmem:[#allocation57_spill] sm:$0xff] %v3359_v45 }
  0xb8   :  { %426 = vrot.lane.b32.xlu2 %v3337_v51, %s2919_s30  ;;  %v3373_v51 = vld [vmem:[#allocation2 + $0xa8] sm:$0xff] }
  0xb9   :  { %424 = vrot.lane.b32.xlu1 %v3339_v37, %s2919_s30  ;;  %422 = vrot.lane.b32.xlu0 %v3341_v55, %s2919_s30  ;;  %8046 = vst [vmem:[#allocation61_spill] sm:$0xff] %v3373_v51  ;;  %v3375_v37 = vld [vmem:[#allocation2 + $0x98] sm:$0xff]  ;;  %v3377_v55 = vld [vmem:[#allocation2 + $0x88] sm:$0xff] }
  0xba   :  { %v3351_v62 = vpop.permute.xlu2 %360  ;;  %8047 = vst [vmem:[#allocation62_spill] sm:$0xff] %v3375_v37 }
  0xbb   :  { %v3349_v61 = vpop.permute.xlu1 %257  ;;  %8038 = vst [vmem:[#allocation53_spill] sm:$0xff] %v3351_v62  ;;  %v3353_v63 = vpop.permute.xlu0 %252 }
  0xbc   :  { %8037 = vst [vmem:[#allocation52_spill] sm:$0xff] %v3349_v61 }
  0xbd   :  { %8039 = vst [vmem:[#allocation54_spill] sm:$0xff] %v3353_v63 }
  0xbe   :  { %8048 = vst [vmem:[#allocation63_spill] sm:$0xff] %v3377_v55 }
  0xc0   :  { %432 = vrot.lane.b32.xlu2 %v3355_v41, %s2919_s30  ;;  %v3391_v41 = vld [vmem:[#allocation2 + $0xd8] sm:$0xff] }
  0xc1   :  { %430 = vrot.lane.b32.xlu1 %v3357_v49, %s2919_s30  ;;  %428 = vrot.lane.b32.xlu0 %v3359_v45, %s2919_s30  ;;  %8052 = vst [vmem:[#allocation67_spill] sm:$0xff] %v3391_v41  ;;  %v3393_v49 = vld [vmem:[#allocation2 + $0xc8] sm:$0xff]  ;;  %v3395_v45 = vld [vmem:[#allocation2 + $0xb8] sm:$0xff] }
  0xc2   :  { %v3369_v62 = vpop.permute.xlu2 %366  ;;  %8053 = vst [vmem:[#allocation68_spill] sm:$0xff] %v3393_v49 }
  0xc3   :  { %v3367_v61 = vpop.permute.xlu1 %272  ;;  %8044 = vst [vmem:[#allocation59_spill] sm:$0xff] %v3369_v62  ;;  %v3371_v63 = vpop.permute.xlu0 %267 }
  0xc4   :  { %8043 = vst [vmem:[#allocation58_spill] sm:$0xff] %v3367_v61 }
  0xc5   :  { %8045 = vst [vmem:[#allocation60_spill] sm:$0xff] %v3371_v63 }
  0xc6   :  { %8054 = vst [vmem:[#allocation69_spill] sm:$0xff] %v3395_v45 }
  0xc8   :  { %438 = vrot.lane.b32.xlu2 %v3373_v51, %s2919_s30  ;;  %v3409_v51 = vld [vmem:[#allocation2 + $0x108] sm:$0xff] }
  0xc9   :  { %436 = vrot.lane.b32.xlu1 %v3375_v37, %s2919_s30  ;;  %434 = vrot.lane.b32.xlu0 %v3377_v55, %s2919_s30  ;;  %8058 = vst [vmem:[#allocation73_spill] sm:$0xff] %v3409_v51  ;;  %v3411_v37 = vld [vmem:[#allocation2 + $0xf8] sm:$0xff]  ;;  %v3413_v55 = vld [vmem:[#allocation2 + $0xe8] sm:$0xff] }
  0xca   :  { %v3387_v62 = vpop.permute.xlu2 %372  ;;  %8059 = vst [vmem:[#allocation74_spill] sm:$0xff] %v3411_v37 }
  0xcb   :  { %v3385_v61 = vpop.permute.xlu1 %287  ;;  %8050 = vst [vmem:[#allocation65_spill] sm:$0xff] %v3387_v62  ;;  %v3389_v63 = vpop.permute.xlu0 %282 }
  0xcc   :  { %8049 = vst [vmem:[#allocation64_spill] sm:$0xff] %v3385_v61 }
  0xcd   :  { %8051 = vst [vmem:[#allocation66_spill] sm:$0xff] %v3389_v63 }
  0xce   :  { %8060 = vst [vmem:[#allocation75_spill] sm:$0xff] %v3413_v55 }
  0xd0   :  { %444 = vrot.lane.b32.xlu2 %v3391_v41, %s2919_s30  ;;  %v3427_v41 = vld [vmem:[#allocation2 + $0x138] sm:$0xff] }
  0xd1   :  { %442 = vrot.lane.b32.xlu1 %v3393_v49, %s2919_s30  ;;  %440 = vrot.lane.b32.xlu0 %v3395_v45, %s2919_s30  ;;  %8064 = vst [vmem:[#allocation79_spill] sm:$0xff] %v3427_v41  ;;  %v3429_v49 = vld [vmem:[#allocation2 + $0x128] sm:$0xff]  ;;  %v3431_v45 = vld [vmem:[#allocation2 + $0x118] sm:$0xff] }
  0xd2   :  { %v3405_v62 = vpop.permute.xlu2 %378  ;;  %8065 = vst [vmem:[#allocation80_spill] sm:$0xff] %v3429_v49 }
  0xd3   :  { %v3403_v61 = vpop.permute.xlu1 %358  ;;  %8056 = vst [vmem:[#allocation71_spill] sm:$0xff] %v3405_v62  ;;  %v3407_v63 = vpop.permute.xlu0 %356 }
  0xd4   :  { %8055 = vst [vmem:[#allocation70_spill] sm:$0xff] %v3403_v61 }
  0xd5   :  { %8057 = vst [vmem:[#allocation72_spill] sm:$0xff] %v3407_v63 }
  0xd6   :  { %8066 = vst [vmem:[#allocation81_spill] sm:$0xff] %v3431_v45 }
  0xd8   :  { %450 = vrot.lane.b32.xlu2 %v3409_v51, %s2919_s30  ;;  %v2920_v51 = vmov 0  }
  0xd9   :  { %448 = vrot.lane.b32.xlu1 %v3411_v37, %s2919_s30  ;;  %446 = vrot.lane.b32.xlu0 %v3413_v55, %s2919_s30  ;;  %v3445_v37 = vld [vmem:[#allocation2 + $0x168] sm:$0xff]  ;;  %v3447_v55 = vld [vmem:[#allocation2 + $0x158] sm:$0xff] }
  0xda   :  { %v3423_v62 = vpop.permute.xlu2 %384  ;;  %2734 = vset.pattern.permute.xlu2 %v2920_v51  ;;  %2733 = vset.pattern.permute.xlu1 %v2920_v51  ;;  %8070 = vst [vmem:[#allocation85_spill] sm:$0xff] %v3445_v37 }
  0xdb   :  { %v3421_v61 = vpop.permute.xlu1 %364  ;;  %8062 = vst [vmem:[#allocation77_spill] sm:$0xff] %v3423_v62  ;;  %v3425_v63 = vpop.permute.xlu0 %362  ;;  %2732 = vset.pattern.permute.xlu0 %v2920_v51 }
  0xdc   :  { %8061 = vst [vmem:[#allocation76_spill] sm:$0xff] %v3421_v61 }
  0xdd   :  { %8063 = vst [vmem:[#allocation78_spill] sm:$0xff] %v3425_v63 }
  0xde   :  { %8071 = vst [vmem:[#allocation86_spill] sm:$0xff] %v3447_v55 }
  0xe0   :  { %456 = vrot.lane.b32.xlu2 %v3427_v41, %s2919_s30  ;;  %v3465_v41 = vld [vmem:[#allocation2 + $0x188] sm:$0xff] }
  0xe1   :  { %454 = vrot.lane.b32.xlu1 %v3429_v49, %s2919_s30  ;;  %452 = vrot.lane.b32.xlu0 %v3431_v45, %s2919_s30  ;;  %v3449_v49 = vld [vmem:[#allocation2 + $0x148] sm:$0xff]  ;;  %8077 = vst [vmem:[#allocation92_spill] sm:$0xff] %v3465_v41  ;;  %v3467_v45 = vld [vmem:[#allocation2 + $0x178] sm:$0xff] }
  0xe2   :  { %v3441_v62 = vpop.permute.xlu2 %390  ;;  %8072 = vst [vmem:[#allocation87_spill] sm:$0xff] %v3449_v49 }
  0xe3   :  { %v3439_v61 = vpop.permute.xlu1 %370  ;;  %8068 = vst [vmem:[#allocation83_spill] sm:$0xff] %v3441_v62  ;;  %v3443_v63 = vpop.permute.xlu0 %368 }
  0xe4   :  { %8067 = vst [vmem:[#allocation82_spill] sm:$0xff] %v3439_v61 }
  0xe5   :  { %8069 = vst [vmem:[#allocation84_spill] sm:$0xff] %v3443_v63  ;;  %v3463_v63 = vld [vmem:[#allocation2 + $0x198] sm:$0xff] }
  0xe6   :  { %8076 = vst [vmem:[#allocation91_spill] sm:$0xff] %v3463_v63 }
  0xe7   :  { %8078 = vst [vmem:[#allocation93_spill] sm:$0xff] %v3467_v45 }
  0xe8   :  { %462 = vrot.lane.b32.xlu2 %v3445_v37, %s2919_s30  ;;  %v3481_v37 = vld [vmem:[#allocation2 + $0x1c8] sm:$0xff] }
  0xe9   :  { %460 = vrot.lane.b32.xlu1 %v3447_v55, %s2919_s30  ;;  %458 = vrot.lane.b32.xlu0 %v3449_v49, %s2919_s30  ;;  %8082 = vst [vmem:[#allocation97_spill] sm:$0xff] %v3481_v37  ;;  %v3483_v55 = vld [vmem:[#allocation2 + $0x1b8] sm:$0xff]  ;;  %v3485_v49 = vld [vmem:[#allocation2 + $0x1a8] sm:$0xff] }
  0xea   :  { %v3459_v61 = vpop.permute.xlu2 %396  ;;  %8083 = vst [vmem:[#allocation98_spill] sm:$0xff] %v3485_v49 }
  0xeb   :  { %v3457_v62 = vpop.permute.xlu1 %376  ;;  %8074 = vst [vmem:[#allocation89_spill] sm:$0xff] %v3459_v61  ;;  %v3461_v51 = vpop.permute.xlu0 %374 }
  0xec   :  { %8073 = vst [vmem:[#allocation88_spill] sm:$0xff] %v3457_v62 }
  0xed   :  { %8075 = vst [vmem:[#allocation90_spill] sm:$0xff] %v3461_v51 }
  0xf0   :  { %468 = vrot.lane.b32.xlu2 %v3463_v63, %s2919_s30  ;;  %v3499_v63 = vld [vmem:[#allocation2 + $0x1f8] sm:$0xff] }
  0xf1   :  { %466 = vrot.lane.b32.xlu1 %v3465_v41, %s2919_s30  ;;  %464 = vrot.lane.b32.xlu0 %v3467_v45, %s2919_s30  ;;  %8087 = vst [vmem:[#allocation102_spill] sm:$0xff] %v3499_v63  ;;  %v3501_v41 = vld [vmem:[#allocation2 + $0x1e8] sm:$0xff]  ;;  %v3503_v45 = vld [vmem:[#allocation2 + $0x1d8] sm:$0xff] }
  0xf2   :  { %v3477_v61 = vpop.permute.xlu2 %402  ;;  %8088 = vst [vmem:[#allocation103_spill] sm:$0xff] %v3501_v41 }
  0xf3   :  { %v3475_v62 = vpop.permute.xlu1 %382  ;;  %8080 = vst [vmem:[#allocation95_spill] sm:$0xff] %v3477_v61  ;;  %v3479_v51 = vpop.permute.xlu0 %380 }
  0xf4   :  { %8079 = vst [vmem:[#allocation94_spill] sm:$0xff] %v3475_v62 }
  0xf5   :  { %8081 = vst [vmem:[#allocation96_spill] sm:$0xff] %v3479_v51 }
  0xf8   :  { %474 = vrot.lane.b32.xlu2 %v3481_v37, %s2919_s30 }
  0xf9   :  { %472 = vrot.lane.b32.xlu1 %v3483_v55, %s2919_s30  ;;  %470 = vrot.lane.b32.xlu0 %v3485_v49, %s2919_s30 }
  0xfa   :  { %v3495_v61 = vpop.permute.xlu2 %408 }
  0xfb   :  { %v3493_v62 = vpop.permute.xlu1 %388  ;;  %8085 = vst [vmem:[#allocation100_spill] sm:$0xff] %v3495_v61  ;;  %v3497_v51 = vpop.permute.xlu0 %386 }
  0xfc   :  { %8084 = vst [vmem:[#allocation99_spill] sm:$0xff] %v3493_v62 }
  0xfd   :  { %8086 = vst [vmem:[#allocation101_spill] sm:$0xff] %v3497_v51 }
 0x100   :  { %480 = vrot.lane.b32.xlu2 %v3499_v63, %s2919_s30 }
 0x101   :  { %478 = vrot.lane.b32.xlu1 %v3501_v41, %s2919_s30  ;;  %476 = vrot.lane.b32.xlu0 %v3503_v45, %s2919_s30 }
 0x102   :  { %v3513_v61 = vpop.permute.xlu2 %414 }
 0x103   :  { %v3511_v62 = vpop.permute.xlu1 %394  ;;  %8090 = vst [vmem:[#allocation105_spill] sm:$0xff] %v3513_v61  ;;  %v3515_v51 = vpop.permute.xlu0 %392 }
 0x104   :  { %8089 = vst [vmem:[#allocation104_spill] sm:$0xff] %v3511_v62 }
 0x105   :  { %8091 = vst [vmem:[#allocation106_spill] sm:$0xff] %v3515_v51 }
 0x108   :  { %626 = vperm.xlu2 %2734, %v2963_v2  }
 0x109   :  { %622 = vperm.xlu1 %2733, %v2986_v6   ;;  %618 = vperm.xlu0 %2732, %v2968_v3  }
 0x10a   :  { %v3522_v41 = vpop.permute.xlu2 %420 }
 0x10b   :  { %v3520_v37 = vpop.permute.xlu1 %400  ;;  %8093 = vst [vmem:[#allocation108_spill] sm:$0xff] %v3522_v41  ;;  %v3524_v63 = vpop.permute.xlu0 %398 }
 0x10c   :  { %8092 = vst [vmem:[#allocation107_spill] sm:$0xff] %v3520_v37 }
 0x10d   :  { %8094 = vst [vmem:[#allocation109_spill] sm:$0xff] %v3524_v63 }
 0x110   :  { %634 = vperm.xlu2 %2734, %v2958_v1  }
 0x111   :  { %630 = vperm.xlu1 %2733, %v2981_v5   ;;  %638 = vperm.xlu0 %2732, %v2976_v4  }
 0x112   :  { %v3531_v62 = vpop.permute.xlu2 %426 }
 0x113   :  { %v3529_v61 = vpop.permute.xlu1 %406  ;;  %8096 = vst [vmem:[#allocation111_spill] sm:$0xff] %v3531_v62  ;;  %v3533_v51 = vpop.permute.xlu0 %404 }
 0x114   :  { %8095 = vst [vmem:[#allocation110_spill] sm:$0xff] %v3529_v61 }
 0x115   :  { %8097 = vst [vmem:[#allocation112_spill] sm:$0xff] %v3533_v51 }
 0x118   :  { %646 = vperm.xlu2 %2734, %v2999_v8  }
 0x119   :  { %642 = vperm.xlu1 %2733, %v3004_v9   ;;  %650 = vperm.xlu0 %2732, %v2994_v7  }
 0x11a   :  { %v3540_v63 = vpop.permute.xlu2 %432 }
 0x11b   :  { %v3538_v37 = vpop.permute.xlu1 %412  ;;  %8099 = vst [vmem:[#allocation114_spill] sm:$0xff] %v3540_v63  ;;  %v3542_v41 = vpop.permute.xlu0 %410 }
 0x11c   :  { %8098 = vst [vmem:[#allocation113_spill] sm:$0xff] %v3538_v37 }
 0x11d   :  { %8100 = vst [vmem:[#allocation115_spill] sm:$0xff] %v3542_v41 }
 0x120   :  { %658 = vperm.xlu2 %2734, %v3017_v11  }
 0x121   :  { %654 = vperm.xlu1 %2733, %v3022_v12   ;;  %662 = vperm.xlu0 %2732, %v3012_v10  }
 0x122   :  { %v3549_v51 = vpop.permute.xlu2 %438 }
 0x123   :  { %v3547_v61 = vpop.permute.xlu1 %418  ;;  %8102 = vst [vmem:[#allocation117_spill] sm:$0xff] %v3549_v51  ;;  %v3551_v62 = vpop.permute.xlu0 %416 }
 0x124   :  { %8101 = vst [vmem:[#allocation116_spill] sm:$0xff] %v3547_v61 }
 0x125   :  { %8103 = vst [vmem:[#allocation118_spill] sm:$0xff] %v3551_v62 }
 0x128   :  { %670 = vperm.xlu2 %2734, %v3035_v14  }
 0x129   :  { %666 = vperm.xlu1 %2733, %v3040_v15   ;;  %674 = vperm.xlu0 %2732, %v3030_v13  }
 0x12a   :  { %v3558_v41 = vpop.permute.xlu2 %444 }
 0x12b   :  { %v3556_v37 = vpop.permute.xlu1 %424  ;;  %8105 = vst [vmem:[#allocation120_spill] sm:$0xff] %v3558_v41  ;;  %v3560_v63 = vpop.permute.xlu0 %422 }
 0x12c   :  { %8104 = vst [vmem:[#allocation119_spill] sm:$0xff] %v3556_v37 }
 0x12d   :  { %8106 = vst [vmem:[#allocation121_spill] sm:$0xff] %v3560_v63 }
 0x130   :  { %682 = vperm.xlu2 %2734, %v3053_v17  }
 0x131   :  { %678 = vperm.xlu1 %2733, %v3058_v18   ;;  %686 = vperm.xlu0 %2732, %v3048_v16  }
 0x132   :  { %v3567_v62 = vpop.permute.xlu2 %450 }
 0x133   :  { %v3565_v51 = vpop.permute.xlu1 %430  ;;  %8108 = vst [vmem:[#allocation123_spill] sm:$0xff] %v3567_v62  ;;  %v3569_v61 = vpop.permute.xlu0 %428 }
 0x134   :  { %8107 = vst [vmem:[#allocation122_spill] sm:$0xff] %v3565_v51 }
 0x135   :  { %8109 = vst [vmem:[#allocation124_spill] sm:$0xff] %v3569_v61 }
 0x138   :  { %694 = vperm.xlu2 %2734, %v3071_v20  }
 0x139   :  { %690 = vperm.xlu1 %2733, %v3076_v21   ;;  %698 = vperm.xlu0 %2732, %v3066_v19  }
 0x13a   :  { %v3576_v37 = vpop.permute.xlu2 %456 }
 0x13b   :  { %v3574_v41 = vpop.permute.xlu1 %436  ;;  %8111 = vst [vmem:[#allocation126_spill] sm:$0xff] %v3576_v37  ;;  %v3578_v63 = vpop.permute.xlu0 %434 }
 0x13c   :  { %8110 = vst [vmem:[#allocation125_spill] sm:$0xff] %v3574_v41 }
 0x13d   :  { %8112 = vst [vmem:[#allocation127_spill] sm:$0xff] %v3578_v63 }
 0x140   :  { %706 = vperm.xlu2 %2734, %v3089_v23  }
 0x141   :  { %702 = vperm.xlu1 %2733, %v3094_v24   ;;  %710 = vperm.xlu0 %2732, %v3084_v22  }
 0x142   :  { %v3585_v51 = vpop.permute.xlu2 %462 }
 0x143   :  { %v3583_v62 = vpop.permute.xlu1 %442  ;;  %8114 = vst [vmem:[#allocation129_spill] sm:$0xff] %v3585_v51  ;;  %v3587_v61 = vpop.permute.xlu0 %440 }
 0x144   :  { %8113 = vst [vmem:[#allocation128_spill] sm:$0xff] %v3583_v62 }
 0x145   :  { %8115 = vst [vmem:[#allocation130_spill] sm:$0xff] %v3587_v61 }
 0x148   :  { %718 = vperm.xlu2 %2734, %v3107_v26  }
 0x149   :  { %714 = vperm.xlu1 %2733, %v3112_v27   ;;  %722 = vperm.xlu0 %2732, %v3102_v25  }
 0x14a   :  { %v3594_v63 = vpop.permute.xlu2 %468 }
 0x14b   :  { %v3592_v37 = vpop.permute.xlu1 %448  ;;  %8117 = vst [vmem:[#allocation132_spill] sm:$0xff] %v3594_v63  ;;  %v3596_v41 = vpop.permute.xlu0 %446 }
 0x14c   :  { %8116 = vst [vmem:[#allocation131_spill] sm:$0xff] %v3592_v37 }
 0x14d   :  { %8118 = vst [vmem:[#allocation133_spill] sm:$0xff] %v3596_v41 }
 0x150   :  { %730 = vperm.xlu2 %2734, %v3125_v29  }
 0x151   :  { %726 = vperm.xlu1 %2733, %v3130_v30   ;;  %734 = vperm.xlu0 %2732, %v3120_v28  }
 0x152   :  { %v3603_v62 = vpop.permute.xlu2 %474 }
 0x153   :  { %v3601_v51 = vpop.permute.xlu1 %454  ;;  %8120 = vst [vmem:[#allocation135_spill] sm:$0xff] %v3603_v62  ;;  %v3605_v61 = vpop.permute.xlu0 %452 }
 0x154   :  { %8119 = vst [vmem:[#allocation134_spill] sm:$0xff] %v3601_v51 }
 0x155   :  { %8121 = vst [vmem:[#allocation136_spill] sm:$0xff] %v3605_v61 }
 0x158   :  { %742 = vperm.xlu2 %2734, %v3138_v31  }
 0x159   :  { %738 = vperm.xlu1 %2733, %v3145_v33   ;;  %873 = vrot.lane.b32.xlu0 %v3140_v32, %s2921_s4 }
 0x15a   :  { %v3613_v37 = vpop.permute.xlu2 %480 }
 0x15b   :  { %v3611_v63 = vpop.permute.xlu1 %460  ;;  %8123 = vst [vmem:[#allocation138_spill] sm:$0xff] %v3613_v37  ;;  %v3615_v41 = vpop.permute.xlu0 %458 }
 0x15c   :  { %8122 = vst [vmem:[#allocation137_spill] sm:$0xff] %v3611_v63 }
 0x15d   :  { %8124 = vst [vmem:[#allocation139_spill] sm:$0xff] %v3615_v41 }
 0x160   :  { %877 = vrot.lane.b32.xlu2 %v3151_v34, %s2921_s4 }
 0x161   :  { %875 = vrot.lane.b32.xlu1 %v3155_v36, %s2921_s4  ;;  %879 = vrot.lane.b32.xlu0 %v3153_v35, %s2921_s4 }
 0x162   :  { %v3625_v62 = vpop.permute.xlu2 %626 }
 0x163   :  { %v3623_v61 = vpop.permute.xlu1 %466  ;;  %8126 = vst [vmem:[#allocation141_spill] sm:$0xff] %v3625_v62  ;;  %v3627_v51 = vpop.permute.xlu0 %464 }
 0x164   :  { %8125 = vst [vmem:[#allocation140_spill] sm:$0xff] %v3623_v61 }
 0x165   :  { %8127 = vst [vmem:[#allocation142_spill] sm:$0xff] %v3627_v51 }
 0x168   :  { %883 = vrot.lane.b32.xlu2 %v3165_v38, %s2921_s4 }
 0x169   :  { %881 = vrot.lane.b32.xlu1 %v3169_v40, %s2921_s4  ;;  %885 = vrot.lane.b32.xlu0 %v3167_v39, %s2921_s4 }
 0x16a   :  { %v3637_v63 = vpop.permute.xlu2 %634 }
 0x16b   :  { %v3635_v37 = vpop.permute.xlu1 %472  ;;  %8129 = vst [vmem:[#allocation144_spill] sm:$0xff] %v3637_v63  ;;  %v3639_v41 = vpop.permute.xlu0 %470 }
 0x16c   :  { %8128 = vst [vmem:[#allocation143_spill] sm:$0xff] %v3635_v37 }
 0x16d   :  { %8130 = vst [vmem:[#allocation145_spill] sm:$0xff] %v3639_v41 }
 0x170   :  { %889 = vrot.lane.b32.xlu2 %v3179_v42, %s2921_s4 }
 0x171   :  { %887 = vrot.lane.b32.xlu1 %v3183_v44, %s2921_s4  ;;  %891 = vrot.lane.b32.xlu0 %v3181_v43, %s2921_s4 }
 0x172   :  { %v3649_v51 = vpop.permute.xlu2 %646 }
 0x173   :  { %v3647_v61 = vpop.permute.xlu1 %478  ;;  %8132 = vst [vmem:[#allocation147_spill] sm:$0xff] %v3649_v51  ;;  %v3651_v62 = vpop.permute.xlu0 %476 }
 0x174   :  { %8131 = vst [vmem:[#allocation146_spill] sm:$0xff] %v3647_v61 }
 0x175   :  { %8133 = vst [vmem:[#allocation148_spill] sm:$0xff] %v3651_v62 }
 0x178   :  { %895 = vrot.lane.b32.xlu2 %v3193_v46, %s2921_s4 }
 0x179   :  { %893 = vrot.lane.b32.xlu1 %v3197_v48, %s2921_s4  ;;  %897 = vrot.lane.b32.xlu0 %v3195_v47, %s2921_s4 }
 0x17a   :  { %v3661_v63 = vpop.permute.xlu2 %658 }
 0x17b   :  { %v3659_v37 = vpop.permute.xlu1 %622  ;;  %8135 = vst [vmem:[#allocation150_spill] sm:$0xff] %v3661_v63  ;;  %v3663_v41 = vpop.permute.xlu0 %618 }
 0x17c   :  { %8134 = vst [vmem:[#allocation149_spill] sm:$0xff] %v3659_v37 }
 0x17d   :  { %8136 = vst [vmem:[#allocation151_spill] sm:$0xff] %v3663_v41 }
 0x180   :  { %901 = vrot.lane.b32.xlu2 %v3211_v52, %s2921_s4 }
 0x181   :  { %899 = vrot.lane.b32.xlu1 %v3215_v54, %s2921_s4  ;;  %903 = vrot.lane.b32.xlu0 %v3213_v53, %s2921_s4 }
 0x182   :  { %v3673_v51 = vpop.permute.xlu2 %670 }
 0x183   :  { %v3671_v61 = vpop.permute.xlu1 %630  ;;  %8138 = vst [vmem:[#allocation153_spill] sm:$0xff] %v3673_v51  ;;  %v3675_v62 = vpop.permute.xlu0 %638 }
 0x184   :  { %8137 = vst [vmem:[#allocation152_spill] sm:$0xff] %v3671_v61 }
 0x185   :  { %8139 = vst [vmem:[#allocation154_spill] sm:$0xff] %v3675_v62 }
 0x188   :  { %907 = vrot.lane.b32.xlu2 %v3229_v58, %s2921_s4 }
 0x189   :  { %905 = vrot.lane.b32.xlu1 %v3233_v60, %s2921_s4  ;;  %909 = vrot.lane.b32.xlu0 %v3231_v59, %s2921_s4 }
 0x18a   :  { %v3685_v41 = vpop.permute.xlu2 %682 }
 0x18b   :  { %v3683_v63 = vpop.permute.xlu1 %642  ;;  %8141 = vst [vmem:[#allocation156_spill] sm:$0xff] %v3685_v41  ;;  %v3687_v37 = vpop.permute.xlu0 %650  ;;  %v8147_v41 = vld [vmem:[#allocation26_spill] sm:$0xff] }
 0x18c   :  { %8140 = vst [vmem:[#allocation155_spill] sm:$0xff] %v3683_v63 }
 0x18d   :  { %8142 = vst [vmem:[#allocation157_spill] sm:$0xff] %v3687_v37  ;;  %v8146_v37 = vld [vmem:[#allocation25_spill] sm:$0xff] }
 0x190   :  { %913 = vrot.lane.b32.xlu2 %v3247_v0, %s2921_s4 }
 0x191   :  { %911 = vrot.lane.b32.xlu1 %v3251_v56, %s2921_s4  ;;  %915 = vrot.lane.b32.xlu0 %v3249_v57, %s2921_s4 }
 0x192   :  { %v3697_v51 = vpop.permute.xlu2 %694 }
 0x193   :  { %v3695_v62 = vpop.permute.xlu1 %654  ;;  %8144 = vst [vmem:[#allocation159_spill] sm:$0xff] %v3697_v51  ;;  %v3699_v61 = vpop.permute.xlu0 %662  ;;  %v8152_v51 = vld [vmem:[#allocation31_spill] sm:$0xff] }
 0x194   :  { %8143 = vst [vmem:[#allocation158_spill] sm:$0xff] %v3695_v62  ;;  %v8151_v62 = vld [vmem:[#allocation33_spill] sm:$0xff] }
 0x195   :  { %8145 = vst [vmem:[#allocation160_spill] sm:$0xff] %v3699_v61  ;;  %v8153_v61 = vld [vmem:[#allocation32_spill] sm:$0xff] }
 0x198   :  { %919 = vrot.lane.b32.xlu2 %v8146_v37, %s2921_s4 }
 0x199   :  { %917 = vrot.lane.b32.xlu1 %v3269_v50, %s2921_s4  ;;  %921 = vrot.lane.b32.xlu0 %v8147_v41, %s2921_s4 }
 0x19a   :  { %v3709_v56 = vpop.permute.xlu2 %706 }
 0x19b   :  { %v3707_v63 = vpop.permute.xlu1 %666  ;;  %8149 = vst [vmem:[#allocation162_spill] sm:$0xff] %v3709_v56  ;;  %v3711_v57 = vpop.permute.xlu0 %674  ;;  %v8159_v56 = vld [vmem:[#allocation38_spill] sm:$0xff] }
 0x19c   :  { %8148 = vst [vmem:[#allocation161_spill] sm:$0xff] %v3707_v63  ;;  %v8157_v63 = vld [vmem:[#allocation39_spill] sm:$0xff] }
 0x19d   :  { %8150 = vst [vmem:[#allocation163_spill] sm:$0xff] %v3711_v57  ;;  %v8158_v57 = vld [vmem:[#allocation37_spill] sm:$0xff] }
 0x1a0   :  { %925 = vrot.lane.b32.xlu2 %v8152_v51, %s2921_s4 }
 0x1a1   :  { %923 = vrot.lane.b32.xlu1 %v8151_v62, %s2921_s4  ;;  %927 = vrot.lane.b32.xlu0 %v8153_v61, %s2921_s4 }
 0x1a2   :  { %v3721_v37 = vpop.permute.xlu2 %718 }
 0x1a3   :  { %v3719_v50 = vpop.permute.xlu1 %678  ;;  %8155 = vst [vmem:[#allocation165_spill] sm:$0xff] %v3721_v37  ;;  %v3723_v41 = vpop.permute.xlu0 %686  ;;  %v8165_v37 = vld [vmem:[#allocation45_spill] sm:$0xff] }
 0x1a4   :  { %8154 = vst [vmem:[#allocation164_spill] sm:$0xff] %v3719_v50  ;;  %v8163_v50 = vld [vmem:[#allocation43_spill] sm:$0xff] }
 0x1a5   :  { %8156 = vst [vmem:[#allocation166_spill] sm:$0xff] %v3723_v41  ;;  %v8164_v41 = vld [vmem:[#allocation44_spill] sm:$0xff] }
 0x1a8   :  { %931 = vrot.lane.b32.xlu2 %v8158_v57, %s2921_s4 }
 0x1a9   :  { %929 = vrot.lane.b32.xlu1 %v8157_v63, %s2921_s4  ;;  %933 = vrot.lane.b32.xlu0 %v8159_v56, %s2921_s4 }
 0x1aa   :  { %v3733_v51 = vpop.permute.xlu2 %730 }
 0x1ab   :  { %v3731_v62 = vpop.permute.xlu1 %690  ;;  %8161 = vst [vmem:[#allocation168_spill] sm:$0xff] %v3733_v51  ;;  %v3735_v61 = vpop.permute.xlu0 %698  ;;  %v8171_v51 = vld [vmem:[#allocation49_spill] sm:$0xff] }
 0x1ac   :  { %8160 = vst [vmem:[#allocation167_spill] sm:$0xff] %v3731_v62  ;;  %v8169_v62 = vld [vmem:[#allocation51_spill] sm:$0xff] }
 0x1ad   :  { %8162 = vst [vmem:[#allocation169_spill] sm:$0xff] %v3735_v61  ;;  %v8170_v61 = vld [vmem:[#allocation50_spill] sm:$0xff] }
 0x1b0   :  { %937 = vrot.lane.b32.xlu2 %v8164_v41, %s2921_s4 }
 0x1b1   :  { %935 = vrot.lane.b32.xlu1 %v8163_v50, %s2921_s4  ;;  %939 = vrot.lane.b32.xlu0 %v8165_v37, %s2921_s4 }
 0x1b2   :  { %v3745_v57 = vpop.permute.xlu2 %742 }
 0x1b3   :  { %v3743_v63 = vpop.permute.xlu1 %702  ;;  %8167 = vst [vmem:[#allocation171_spill] sm:$0xff] %v3745_v57  ;;  %v3747_v56 = vpop.permute.xlu0 %710  ;;  %v8177_v57 = vld [vmem:[#allocation55_spill] sm:$0xff] }
 0x1b4   :  { %8166 = vst [vmem:[#allocation170_spill] sm:$0xff] %v3743_v63  ;;  %v8175_v63 = vld [vmem:[#allocation57_spill] sm:$0xff] }
 0x1b5   :  { %8168 = vst [vmem:[#allocation172_spill] sm:$0xff] %v3747_v56  ;;  %v8176_v56 = vld [vmem:[#allocation56_spill] sm:$0xff] }
 0x1b8   :  { %943 = vrot.lane.b32.xlu2 %v8170_v61, %s2921_s4 }
 0x1b9   :  { %941 = vrot.lane.b32.xlu1 %v8169_v62, %s2921_s4  ;;  %945 = vrot.lane.b32.xlu0 %v8171_v51, %s2921_s4 }
 0x1ba   :  { %v3757_v41 = vpop.permute.xlu2 %877 }
 0x1bb   :  { %v3755_v50 = vpop.permute.xlu1 %714  ;;  %8173 = vst [vmem:[#allocation174_spill] sm:$0xff] %v3757_v41  ;;  %v3759_v37 = vpop.permute.xlu0 %722  ;;  %v8182_v41 = vld [vmem:[#allocation62_spill] sm:$0xff] }
 0x1bc   :  { %8172 = vst [vmem:[#allocation173_spill] sm:$0xff] %v3755_v50  ;;  %v8181_v50 = vld [vmem:[#allocation63_spill] sm:$0xff] }
 0x1bd   :  { %8174 = vst [vmem:[#allocation175_spill] sm:$0xff] %v3759_v37  ;;  %v8183_v37 = vld [vmem:[#allocation61_spill] sm:$0xff] }
 0x1c0   :  { %949 = vrot.lane.b32.xlu2 %v8176_v56, %s2921_s4 }
 0x1c1   :  { %947 = vrot.lane.b32.xlu1 %v8175_v63, %s2921_s4  ;;  %951 = vrot.lane.b32.xlu0 %v8177_v57, %s2921_s4 }
 0x1c2   :  { %v3769_v61 = vpop.permute.xlu2 %883 }
 0x1c3   :  { %v3767_v62 = vpop.permute.xlu1 %726  ;;  %8179 = vst [vmem:[#allocation177_spill] sm:$0xff] %v3769_v61  ;;  %v3771_v51 = vpop.permute.xlu0 %734  ;;  %v8188_v61 = vld [vmem:[#allocation68_spill] sm:$0xff] }
 0x1c4   :  { %8178 = vst [vmem:[#allocation176_spill] sm:$0xff] %v3767_v62  ;;  %v8187_v62 = vld [vmem:[#allocation69_spill] sm:$0xff] }
 0x1c5   :  { %8180 = vst [vmem:[#allocation178_spill] sm:$0xff] %v3771_v51  ;;  %v8189_v51 = vld [vmem:[#allocation67_spill] sm:$0xff] }
 0x1c8   :  { %955 = vrot.lane.b32.xlu2 %v8182_v41, %s2921_s4 }
 0x1c9   :  { %953 = vrot.lane.b32.xlu1 %v8181_v50, %s2921_s4  ;;  %957 = vrot.lane.b32.xlu0 %v8183_v37, %s2921_s4 }
 0x1ca   :  { %v3781_v56 = vpop.permute.xlu2 %889 }
 0x1cb   :  { %v3779_v63 = vpop.permute.xlu1 %738  ;;  %8185 = vst [vmem:[#allocation180_spill] sm:$0xff] %v3781_v56  ;;  %v3783_v57 = vpop.permute.xlu0 %873  ;;  %v8194_v56 = vld [vmem:[#allocation74_spill] sm:$0xff] }
 0x1cc   :  { %8184 = vst [vmem:[#allocation179_spill] sm:$0xff] %v3779_v63  ;;  %v8193_v63 = vld [vmem:[#allocation75_spill] sm:$0xff] }
 0x1cd   :  { %8186 = vst [vmem:[#allocation181_spill] sm:$0xff] %v3783_v57  ;;  %v8195_v57 = vld [vmem:[#allocation73_spill] sm:$0xff] }
 0x1d0   :  { %961 = vrot.lane.b32.xlu2 %v8188_v61, %s2921_s4 }
 0x1d1   :  { %959 = vrot.lane.b32.xlu1 %v8187_v62, %s2921_s4  ;;  %963 = vrot.lane.b32.xlu0 %v8189_v51, %s2921_s4 }
 0x1d2   :  { %v3793_v41 = vpop.permute.xlu2 %895 }
 0x1d3   :  { %v3791_v50 = vpop.permute.xlu1 %875  ;;  %8191 = vst [vmem:[#allocation183_spill] sm:$0xff] %v3793_v41  ;;  %v3795_v37 = vpop.permute.xlu0 %879  ;;  %v8200_v41 = vld [vmem:[#allocation80_spill] sm:$0xff] }
 0x1d4   :  { %8190 = vst [vmem:[#allocation182_spill] sm:$0xff] %v3791_v50  ;;  %v8199_v50 = vld [vmem:[#allocation81_spill] sm:$0xff] }
 0x1d5   :  { %8192 = vst [vmem:[#allocation184_spill] sm:$0xff] %v3795_v37  ;;  %v8201_v37 = vld [vmem:[#allocation79_spill] sm:$0xff] }
 0x1d8   :  { %967 = vrot.lane.b32.xlu2 %v8194_v56, %s2921_s4 }
 0x1d9   :  { %965 = vrot.lane.b32.xlu1 %v8193_v63, %s2921_s4  ;;  %969 = vrot.lane.b32.xlu0 %v8195_v57, %s2921_s4 }
 0x1da   :  { %v3805_v61 = vpop.permute.xlu2 %901 }
 0x1db   :  { %v3803_v62 = vpop.permute.xlu1 %881  ;;  %8197 = vst [vmem:[#allocation186_spill] sm:$0xff] %v3805_v61  ;;  %v3807_v51 = vpop.permute.xlu0 %885  ;;  %v8205_v61 = vld [vmem:[#allocation87_spill] sm:$0xff] }
 0x1dc   :  { %8196 = vst [vmem:[#allocation185_spill] sm:$0xff] %v3803_v62  ;;  %v2922_v62 = vmov 1  }
 0x1dd   :  { %8198 = vst [vmem:[#allocation187_spill] sm:$0xff] %v3807_v51  ;;  %2737 = vset.pattern.permute.xlu0 %v2922_v62  ;;  %2735 = vset.pattern.permute.xlu1 %v2922_v62  ;;  %v8206_v51 = vld [vmem:[#allocation86_spill] sm:$0xff] }
 0x1de   :  { %2736 = vset.pattern.permute.xlu2 %v2922_v62  ;;  %v8212_v62 = vld [vmem:[#allocation92_spill] sm:$0xff] }
 0x1e0   :  { %973 = vrot.lane.b32.xlu2 %v8200_v41, %s2921_s4 }
 0x1e1   :  { %971 = vrot.lane.b32.xlu1 %v8199_v50, %s2921_s4  ;;  %975 = vrot.lane.b32.xlu0 %v8201_v37, %s2921_s4  ;;  %v8207_v50 = vld [vmem:[#allocation85_spill] sm:$0xff] }
 0x1e2   :  { %v3817_v56 = vpop.permute.xlu2 %907 }
 0x1e3   :  { %v3815_v63 = vpop.permute.xlu1 %887  ;;  %8203 = vst [vmem:[#allocation189_spill] sm:$0xff] %v3817_v56  ;;  %v3819_v57 = vpop.permute.xlu0 %891 }
 0x1e4   :  { %8202 = vst [vmem:[#allocation188_spill] sm:$0xff] %v3815_v63 }
 0x1e5   :  { %8204 = vst [vmem:[#allocation190_spill] sm:$0xff] %v3819_v57  ;;  %v8211_v57 = vld [vmem:[#allocation93_spill] sm:$0xff] }
 0x1e8   :  { %979 = vrot.lane.b32.xlu2 %v8206_v51, %s2921_s4 }
 0x1e9   :  { %977 = vrot.lane.b32.xlu1 %v8205_v61, %s2921_s4  ;;  %981 = vrot.lane.b32.xlu0 %v8207_v50, %s2921_s4  ;;  %v8213_v61 = vld [vmem:[#allocation91_spill] sm:$0xff] }
 0x1ea   :  { %v3829_v63 = vpop.permute.xlu2 %913 }
 0x1eb   :  { %v3827_v37 = vpop.permute.xlu1 %893  ;;  %8209 = vst [vmem:[#allocation192_spill] sm:$0xff] %v3829_v63  ;;  %v3831_v56 = vpop.permute.xlu0 %897  ;;  %v8217_v63 = vld [vmem:[#allocation97_spill] sm:$0xff] }
 0x1ec   :  { %8208 = vst [vmem:[#allocation191_spill] sm:$0xff] %v3827_v37 }
 0x1ed   :  { %8210 = vst [vmem:[#allocation193_spill] sm:$0xff] %v3831_v56 }
 0x1f0   :  { %985 = vrot.lane.b32.xlu2 %v8212_v62, %s2921_s4 }
 0x1f1   :  { %983 = vrot.lane.b32.xlu1 %v8211_v57, %s2921_s4  ;;  %987 = vrot.lane.b32.xlu0 %v8213_v61, %s2921_s4 }
 0x1f2   :  { %v3841_v51 = vpop.permute.xlu2 %919 }
 0x1f3   :  { %v3839_v41 = vpop.permute.xlu1 %899  ;;  %8215 = vst [vmem:[#allocation92_spill] sm:$0xff] %v3841_v51  ;;  %v3843_v50 = vpop.permute.xlu0 %903  ;;  %v8221_v51 = vld [vmem:[#allocation103_spill] sm:$0xff] }
 0x1f4   :  { %8214 = vst [vmem:[#allocation93_spill] sm:$0xff] %v3839_v41  ;;  %v8222_v41 = vld [vmem:[#allocation102_spill] sm:$0xff] }
 0x1f5   :  { %8216 = vst [vmem:[#allocation194_spill] sm:$0xff] %v3843_v50 }
 0x1f8   :  { %991 = vrot.lane.b32.xlu2 %v3483_v55, %s2921_s4 }
 0x1f9   :  { %989 = vrot.lane.b32.xlu1 %v3485_v49, %s2921_s4  ;;  %993 = vrot.lane.b32.xlu0 %v8217_v63, %s2921_s4 }
 0x1fa   :  { %v3853_v56 = vpop.permute.xlu2 %925 }
 0x1fb   :  { %v3851_v37 = vpop.permute.xlu1 %905  ;;  %8219 = vst [vmem:[#allocation196_spill] sm:$0xff] %v3853_v56  ;;  %v3855_v61 = vpop.permute.xlu0 %909 }
 0x1fc   :  { %8218 = vst [vmem:[#allocation195_spill] sm:$0xff] %v3851_v37 }
 0x1fd   :  { %8220 = vst [vmem:[#allocation197_spill] sm:$0xff] %v3855_v61 }
 0x200   :  { %997 = vrot.lane.b32.xlu2 %v8221_v51, %s2921_s4 }
 0x201   :  { %995 = vrot.lane.b32.xlu1 %v3503_v45, %s2921_s4  ;;  %999 = vrot.lane.b32.xlu0 %v8222_v41, %s2921_s4 }
 0x202   :  { %v3865_v49 = vpop.permute.xlu2 %931 }
 0x203   :  { %v3863_v50 = vpop.permute.xlu1 %911  ;;  %8224 = vst [vmem:[#allocation102_spill] sm:$0xff] %v3865_v49  ;;  %v3867_v63 = vpop.permute.xlu0 %915 }
 0x204   :  { %8223 = vst [vmem:[#allocation103_spill] sm:$0xff] %v3863_v50 }
 0x205   :  { %8225 = vst [vmem:[#allocation198_spill] sm:$0xff] %v3867_v63  ;;  %v4444_v63 = vld [vmem:[#allocation2 + $0x20] sm:$0xff] }
 0x208   :  { %1141 = vperm.xlu2 %2736, %v2986_v6  }
 0x209   :  { %1137 = vperm.xlu1 %2735, %v2968_v3   ;;  %1145 = vperm.xlu0 %2737, %v2963_v2  }
 0x20a   :  { %v3874_v37 = vpop.permute.xlu2 %937 }
 0x20b   :  { %v3872_v56 = vpop.permute.xlu1 %917  ;;  %8227 = vst [vmem:[#allocation200_spill] sm:$0xff] %v3874_v37  ;;  %v3876_v61 = vpop.permute.xlu0 %921  ;;  %v4509_v37 = vld [vmem:[#allocation2 + $0xb0] sm:$0xff] }
 0x20c   :  { %8226 = vst [vmem:[#allocation199_spill] sm:$0xff] %v3872_v56 }
 0x20d   :  { %8228 = vst [vmem:[#allocation201_spill] sm:$0xff] %v3876_v61 }
 0x210   :  { %1153 = vperm.xlu2 %2736, %v2958_v1  }
 0x211   :  { %1149 = vperm.xlu1 %2735, %v2981_v5   ;;  %1165 = vperm.xlu0 %2737, %v2999_v8  }
 0x212   :  { %v3883_v50 = vpop.permute.xlu2 %943 }
 0x213   :  { %v3881_v49 = vpop.permute.xlu1 %923  ;;  %8230 = vst [vmem:[#allocation203_spill] sm:$0xff] %v3883_v50  ;;  %v3885_v3 = vpop.permute.xlu0 %927 }
 0x214   :  { %8229 = vst [vmem:[#allocation202_spill] sm:$0xff] %v3881_v49  ;;  %v4368_v49 = vld [vmem:[%s7562_s1 + $0xa0] sm:$0xff] }
 0x215   :  { %8231 = vst [vmem:[#allocation204_spill] sm:$0xff] %v3885_v3  ;;  %v8288_v3 = vld [vmem:[#allocation26_spill] sm:$0xff] }
 0x216   :  { %8374 = vst [vmem:[#allocation271_spill] sm:$0xff] %v4368_v49 }
 0x218   :  { %1161 = vperm.xlu2 %2736, %v3004_v9  }
 0x219   :  { %1157 = vperm.xlu1 %2735, %v2976_v4   ;;  %1177 = vperm.xlu0 %2737, %v3017_v11  }
 0x21a   :  { %v3892_v6 = vpop.permute.xlu2 %949 }
 0x21b   :  { %v3890_v2 = vpop.permute.xlu1 %929  ;;  %8233 = vst [vmem:[#allocation206_spill] sm:$0xff] %v3892_v6  ;;  %v3894_v5 = vpop.permute.xlu0 %933  ;;  %v4490_v6 = vld [vmem:[#allocation2 + $0x100] sm:$0xff] }
 0x21c   :  { %8232 = vst [vmem:[#allocation205_spill] sm:$0xff] %v3890_v2  ;;  %v4332_v2 = vld [vmem:[%s7562_s1 + $0x70] sm:$0xff] }
 0x21d   :  { %8234 = vst [vmem:[#allocation207_spill] sm:$0xff] %v3894_v5  ;;  %v8283_v5 = vld [vmem:[#allocation27_spill] sm:$0xff] }
 0x21e   :  { %8369 = vst [vmem:[#allocation266_spill] sm:$0xff] %v4332_v2 }
 0x220   :  { %1173 = vperm.xlu2 %2736, %v3022_v12  }
 0x221   :  { %1169 = vperm.xlu1 %2735, %v2994_v7   ;;  %1189 = vperm.xlu0 %2737, %v3035_v14  }
 0x222   :  { %v3901_v8 = vpop.permute.xlu2 %955 }
 0x223   :  { %v3899_v1 = vpop.permute.xlu1 %935  ;;  %8236 = vst [vmem:[#allocation209_spill] sm:$0xff] %v3901_v8  ;;  %v3903_v4 = vpop.permute.xlu0 %939  ;;  %v4482_v8 = vld [vmem:[#allocation2 + $0x80] sm:$0xff] }
 0x224   :  { %8235 = vst [vmem:[#allocation208_spill] sm:$0xff] %v3899_v1  ;;  %v4296_v1 = vld [vmem:[%s7562_s1 + $0x40] sm:$0xff] }
 0x225   :  { %8237 = vst [vmem:[#allocation210_spill] sm:$0xff] %v3903_v4  ;;  %v4486_v4 = vld [vmem:[#allocation2 + $0x90] sm:$0xff] }
 0x226   :  { %8362 = vst [vmem:[#allocation259_spill] sm:$0xff] %v4296_v1 }
 0x228   :  { %1185 = vperm.xlu2 %2736, %v3040_v15  }
 0x229   :  { %1181 = vperm.xlu1 %2735, %v3012_v10   ;;  %1201 = vperm.xlu0 %2737, %v3053_v17  }
 0x22a   :  { %v3910_v11 = vpop.permute.xlu2 %961 }
 0x22b   :  { %v3908_v9 = vpop.permute.xlu1 %941  ;;  %8239 = vst [vmem:[#allocation212_spill] sm:$0xff] %v3910_v11  ;;  %v3912_v7 = vpop.permute.xlu0 %945 }
 0x22c   :  { %8238 = vst [vmem:[#allocation211_spill] sm:$0xff] %v3908_v9 }
 0x22d   :  { %8240 = vst [vmem:[#allocation213_spill] sm:$0xff] %v3912_v7  ;;  %v127_v7 = vlaneseq }
 0x22f   :  { %v4480_v9 = vand.u32 127, %v127_v7 }
 0x230   :  { %1197 = vperm.xlu2 %2736, %v3058_v18  }
 0x231   :  { %1193 = vperm.xlu1 %2735, %v3030_v13   ;;  %1213 = vperm.xlu0 %2737, %v3071_v20   ;;  %vm1520_vm0 = vcmp.lt.s32.totalorder %v4480_v9, 127  ;;  %vm482_vm2 = vcmp.lt.s32.totalorder %v4480_v9, 2  ;;  %vm547_vm3 = vcmp.ge.s32.totalorder %v4480_v9, 2  ;;  %vm2039_vm4 = vcmp.lt.s32.totalorder %v4480_v9, 126 }
 0x232   :  { %v3919_v14 = vpop.permute.xlu2 %967  ;;  %vm1001_vm5 = vcmp.lt.s32.totalorder %v4480_v9, 1  ;;  %vm1066_vm6 = vcmp.ge.s32.totalorder %v4480_v9, 1 }
 0x233   :  { %v3917_v12 = vpop.permute.xlu1 %947  ;;  %8242 = vst [vmem:[#allocation215_spill] sm:$0xff] %v3919_v14  ;;  %v3921_v10 = vpop.permute.xlu0 %951  ;;  %v4466_v14 = vld [vmem:[#allocation2 + $0x60] sm:$0xff] }
 0x234   :  { %8241 = vst [vmem:[#allocation214_spill] sm:$0xff] %v3917_v12 }
 0x235   :  { %8243 = vst [vmem:[#allocation216_spill] sm:$0xff] %v3921_v10  ;;  %v4470_v10 = vld [vmem:[#allocation2 + $0xd0] sm:$0xff] }
 0x238   :  { %1209 = vperm.xlu2 %2736, %v3076_v21  }
 0x239   :  { %1205 = vperm.xlu1 %2735, %v3048_v16   ;;  %1225 = vperm.xlu0 %2737, %v3089_v23  }
 0x23a   :  { %v3928_v17 = vpop.permute.xlu2 %973 }
 0x23b   :  { %v3926_v15 = vpop.permute.xlu1 %953  ;;  %8245 = vst [vmem:[#allocation218_spill] sm:$0xff] %v3928_v17  ;;  %v3930_v13 = vpop.permute.xlu0 %957 }
 0x23c   :  { %8244 = vst [vmem:[#allocation217_spill] sm:$0xff] %v3926_v15  ;;  %v4462_v15 = vld [vmem:[#allocation2 + $0x50] sm:$0xff] }
 0x23d   :  { %8246 = vst [vmem:[#allocation219_spill] sm:$0xff] %v3930_v13 }
 0x240   :  { %1221 = vperm.xlu2 %2736, %v3094_v24  }
 0x241   :  { %1217 = vperm.xlu1 %2735, %v3066_v19   ;;  %1237 = vperm.xlu0 %2737, %v3107_v26  }
 0x242   :  { %v3937_v20 = vpop.permute.xlu2 %979 }
 0x243   :  { %v3935_v18 = vpop.permute.xlu1 %959  ;;  %8248 = vst [vmem:[#allocation221_spill] sm:$0xff] %v3937_v20  ;;  %v3939_v16 = vpop.permute.xlu0 %963 }
 0x244   :  { %8247 = vst [vmem:[#allocation220_spill] sm:$0xff] %v3935_v18  ;;  %v4452_v18 = vld [vmem:[#allocation2 + $0xa0] sm:$0xff] }
 0x245   :  { %8249 = vst [vmem:[#allocation222_spill] sm:$0xff] %v3939_v16  ;;  %v4430_v16 = vld [vmem:[#allocation2] sm:$0xff] }
 0x248   :  { %1233 = vperm.xlu2 %2736, %v3112_v27  }
 0x249   :  { %1229 = vperm.xlu1 %2735, %v3084_v22   ;;  %1249 = vperm.xlu0 %2737, %v3125_v29  }
 0x24a   :  { %v3946_v23 = vpop.permute.xlu2 %985 }
 0x24b   :  { %v3944_v21 = vpop.permute.xlu1 %965  ;;  %8251 = vst [vmem:[#allocation224_spill] sm:$0xff] %v3946_v23  ;;  %v3948_v19 = vpop.permute.xlu0 %969  ;;  %v4417_v23 = vld [vmem:[#allocation2 + $0x40] sm:$0xff] }
 0x24c   :  { %8250 = vst [vmem:[#allocation223_spill] sm:$0xff] %v3944_v21 }
 0x24d   :  { %8252 = vst [vmem:[#allocation225_spill] sm:$0xff] %v3948_v19 }
 0x250   :  { %1245 = vperm.xlu2 %2736, %v3130_v30  }
 0x251   :  { %1241 = vperm.xlu1 %2735, %v3102_v25   ;;  %1261 = vperm.xlu0 %2737, %v3138_v31  }
 0x252   :  { %v3955_v26 = vpop.permute.xlu2 %991 }
 0x253   :  { %v3953_v24 = vpop.permute.xlu1 %971  ;;  %8254 = vst [vmem:[#allocation227_spill] sm:$0xff] %v3955_v26  ;;  %v3957_v22 = vpop.permute.xlu0 %975 }
 0x254   :  { %8253 = vst [vmem:[#allocation226_spill] sm:$0xff] %v3953_v24 }
 0x255   :  { %8255 = vst [vmem:[#allocation228_spill] sm:$0xff] %v3957_v22  ;;  %v4401_v22 = vld [vmem:[#allocation2 + $0x10] sm:$0xff] }
 0x258   :  { %1257 = vperm.xlu2 %2736, %v3145_v33  }
 0x259   :  { %1253 = vperm.xlu1 %2735, %v3120_v28   ;;  %1396 = vrot.lane.b32.xlu0 %v3151_v34, %s2923_s5 }
 0x25a   :  { %v3965_v25 = vpop.permute.xlu2 %997 }
 0x25b   :  { %v3963_v27 = vpop.permute.xlu1 %977  ;;  %8257 = vst [vmem:[#allocation230_spill] sm:$0xff] %v3965_v25  ;;  %v3967_v29 = vpop.permute.xlu0 %981  ;;  %v8282_v25 = vld [vmem:[#allocation20_spill] sm:$0xff] }
 0x25c   :  { %8256 = vst [vmem:[#allocation229_spill] sm:$0xff] %v3963_v27 }
 0x25d   :  { %8258 = vst [vmem:[#allocation231_spill] sm:$0xff] %v3967_v29  ;;  %v2769_v29 = vld [vmem:[%s7562_s1 + $0xb8] sm:$0xff] }
 0x260   :  { %1394 = vrot.lane.b32.xlu2 %v3155_v36, %s2923_s5 }
 0x261   :  { %1392 = vrot.lane.b32.xlu1 %v3140_v32, %s2923_s5  ;;  %1402 = vrot.lane.b32.xlu0 %v3165_v38, %s2923_s5 }
 0x262   :  { %v3977_v30 = vpop.permute.xlu2 %1141 }
 0x263   :  { %v3975_v28 = vpop.permute.xlu1 %983  ;;  %8260 = vst [vmem:[#allocation233_spill] sm:$0xff] %v3977_v30  ;;  %v3979_v31 = vpop.permute.xlu0 %987 }
 0x264   :  { %8259 = vst [vmem:[#allocation232_spill] sm:$0xff] %v3975_v28 }
 0x265   :  { %8261 = vst [vmem:[#allocation234_spill] sm:$0xff] %v3979_v31 }
 0x268   :  { %1400 = vrot.lane.b32.xlu2 %v3169_v40, %s2923_s5 }
 0x269   :  { %1398 = vrot.lane.b32.xlu1 %v3153_v35, %s2923_s5  ;;  %1408 = vrot.lane.b32.xlu0 %v3179_v42, %s2923_s5 }
 0x26a   :  { %v3989_v33 = vpop.permute.xlu2 %1153 }
 0x26b   :  { %v3987_v32 = vpop.permute.xlu1 %989  ;;  %8263 = vst [vmem:[#allocation236_spill] sm:$0xff] %v3989_v33  ;;  %v3991_v34 = vpop.permute.xlu0 %993  ;;  %v4314_v33 = vld [vmem:[%s7562_s1 + $0x58] sm:$0xff] }
 0x26c   :  { %8262 = vst [vmem:[#allocation235_spill] sm:$0xff] %v3987_v32  ;;  %v4350_v32 = vld [vmem:[%s7562_s1 + $0x88] sm:$0xff] }
 0x26d   :  { %8264 = vst [vmem:[#allocation237_spill] sm:$0xff] %v3991_v34 }
 0x26e   :  { %8365 = vst [vmem:[#allocation262_spill] sm:$0xff] %v4314_v33 }
 0x26f   :  { %8372 = vst [vmem:[#allocation269_spill] sm:$0xff] %v4350_v32 }
 0x270   :  { %1406 = vrot.lane.b32.xlu2 %v3183_v44, %s2923_s5 }
 0x271   :  { %1404 = vrot.lane.b32.xlu1 %v3167_v39, %s2923_s5  ;;  %1414 = vrot.lane.b32.xlu0 %v3193_v46, %s2923_s5 }
 0x272   :  { %v4001_v36 = vpop.permute.xlu2 %1161 }
 0x273   :  { %v3999_v35 = vpop.permute.xlu1 %995  ;;  %8266 = vst [vmem:[#allocation239_spill] sm:$0xff] %v4001_v36  ;;  %v4003_v38 = vpop.permute.xlu0 %999 }
 0x274   :  { %8265 = vst [vmem:[#allocation238_spill] sm:$0xff] %v3999_v35  ;;  %v2756_v35 = vld [vmem:[%s7562_s1 + $0x50] sm:$0xff] }
 0x275   :  { %8267 = vst [vmem:[#allocation240_spill] sm:$0xff] %v4003_v38  ;;  %v4290_v38 = vld [vmem:[%s7562_s1 + $0x38] sm:$0xff] }
 0x276   :  { %8361 = vst [vmem:[#allocation258_spill] sm:$0xff] %v4290_v38 }
 0x278   :  { %1412 = vrot.lane.b32.xlu2 %v3197_v48, %s2923_s5 }
 0x279   :  { %1410 = vrot.lane.b32.xlu1 %v3181_v43, %s2923_s5  ;;  %1420 = vrot.lane.b32.xlu0 %v3211_v52, %s2923_s5 }
 0x27a   :  { %v4013_v40 = vpop.permute.xlu2 %1173 }
 0x27b   :  { %v4011_v39 = vpop.permute.xlu1 %1137  ;;  %8269 = vst [vmem:[#allocation242_spill] sm:$0xff] %v4013_v40  ;;  %v4015_v42 = vpop.permute.xlu0 %1145  ;;  %v4269_v40 = vld [vmem:[%s7562_s1 + $0x20] sm:$0xff] }
 0x27c   :  { %8268 = vst [vmem:[#allocation241_spill] sm:$0xff] %v4011_v39  ;;  %v4275_v39 = vld [vmem:[%s7562_s1 + $0x28] sm:$0xff] }
 0x27d   :  { %8270 = vst [vmem:[#allocation243_spill] sm:$0xff] %v4015_v42 }
 0x27e   :  { %8357 = vst [vmem:[#allocation254_spill] sm:$0xff] %v4269_v40 }
 0x27f   :  { %8358 = vst [vmem:[#allocation255_spill] sm:$0xff] %v4275_v39 }
 0x280   :  { %1418 = vrot.lane.b32.xlu2 %v3215_v54, %s2923_s5  ;;  %v8277_v54 = vld [vmem:[#allocation21_spill] sm:$0xff] }
 0x281   :  { %1416 = vrot.lane.b32.xlu1 %v3195_v47, %s2923_s5  ;;  %1426 = vrot.lane.b32.xlu0 %v3229_v58, %s2923_s5 }
 0x282   :  { %v4025_v44 = vpop.permute.xlu2 %1185 }
 0x283   :  { %v4023_v43 = vpop.permute.xlu1 %1149  ;;  %8272 = vst [vmem:[#allocation245_spill] sm:$0xff] %v4025_v44  ;;  %v4027_v46 = vpop.permute.xlu0 %1165 }
 0x284   :  { %8271 = vst [vmem:[#allocation244_spill] sm:$0xff] %v4023_v43 }
 0x285   :  { %8273 = vst [vmem:[#allocation246_spill] sm:$0xff] %v4027_v46  ;;  %v2749_v46 = vld [vmem:[%s7562_s1 + $0x48] sm:$0xff] }
 0x288   :  { %1424 = vrot.lane.b32.xlu2 %v3233_v60, %s2923_s5 }
 0x289   :  { %1422 = vrot.lane.b32.xlu1 %v3213_v53, %s2923_s5  ;;  %1432 = vrot.lane.b32.xlu0 %v3247_v0, %s2923_s5  ;;  %v8278_v53 = vld [vmem:[#allocation25_spill] sm:$0xff] }
 0x28a   :  { %v4037_v48 = vpop.permute.xlu2 %1197 }
 0x28b   :  { %v4035_v47 = vpop.permute.xlu1 %1157  ;;  %8275 = vst [vmem:[#allocation248_spill] sm:$0xff] %v4037_v48  ;;  %v4039_v52 = vpop.permute.xlu0 %1177 }
 0x28c   :  { %8274 = vst [vmem:[#allocation247_spill] sm:$0xff] %v4035_v47  ;;  %v4254_v47 = vld [vmem:[%s7562_s1 + $0x18] sm:$0xff] }
 0x28d   :  { %8276 = vst [vmem:[#allocation249_spill] sm:$0xff] %v4039_v52 }
 0x290   :  { %1430 = vrot.lane.b32.xlu2 %v8277_v54, %s2923_s5 }
 0x291   :  { %1428 = vrot.lane.b32.xlu1 %v3231_v59, %s2923_s5  ;;  %1438 = vrot.lane.b32.xlu0 %v8278_v53, %s2923_s5  ;;  %v8284_v59 = vld [vmem:[#allocation31_spill] sm:$0xff] }
 0x292   :  { %v4049_v60 = vpop.permute.xlu2 %1209 }
 0x293   :  { %v4047_v58 = vpop.permute.xlu1 %1169  ;;  %8280 = vst [vmem:[#allocation25_spill] sm:$0xff] %v4049_v60  ;;  %v4051_v0 = vpop.permute.xlu0 %1189 }
 0x294   :  { %8279 = vst [vmem:[#allocation21_spill] sm:$0xff] %v4047_v58 }
 0x295   :  { %8281 = vst [vmem:[#allocation250_spill] sm:$0xff] %v4051_v0  ;;  %v8289_v0 = vld [vmem:[#allocation33_spill] sm:$0xff] }
 0x298   :  { %1436 = vrot.lane.b32.xlu2 %v8283_v5, %s2923_s5 }
 0x299   :  { %1434 = vrot.lane.b32.xlu1 %v8282_v25, %s2923_s5  ;;  %1444 = vrot.lane.b32.xlu0 %v8284_v59, %s2923_s5  ;;  %v8290_v25 = vld [vmem:[#allocation37_spill] sm:$0xff] }
 0x29a   :  { %v4061_v54 = vpop.permute.xlu2 %1221 }
 0x29b   :  { %v4059_v26 = vpop.permute.xlu1 %1181  ;;  %8286 = vst [vmem:[#allocation27_spill] sm:$0xff] %v4061_v54  ;;  %v4063_v53 = vpop.permute.xlu0 %1201  ;;  %v8295_v54 = vld [vmem:[#allocation39_spill] sm:$0xff] }
 0x29c   :  { %8285 = vst [vmem:[#allocation20_spill] sm:$0xff] %v4059_v26  ;;  %v8294_v26 = vld [vmem:[#allocation32_spill] sm:$0xff] }
 0x29d   :  { %8287 = vst [vmem:[#allocation31_spill] sm:$0xff] %v4063_v53 }
 0x2a0   :  { %1442 = vrot.lane.b32.xlu2 %v8289_v0, %s2923_s5 }
 0x2a1   :  { %1440 = vrot.lane.b32.xlu1 %v8288_v3, %s2923_s5  ;;  %1450 = vrot.lane.b32.xlu0 %v8290_v25, %s2923_s5  ;;  %v8296_v3 = vld [vmem:[#allocation44_spill] sm:$0xff] }
 0x2a2   :  { %v4073_v5 = vpop.permute.xlu2 %1233 }
 0x2a3   :  { %v4071_v60 = vpop.permute.xlu1 %1193  ;;  %8292 = vst [vmem:[#allocation33_spill] sm:$0xff] %v4073_v5  ;;  %v4075_v59 = vpop.permute.xlu0 %1213  ;;  %v8301_v5 = vld [vmem:[#allocation43_spill] sm:$0xff] }
 0x2a4   :  { %8291 = vst [vmem:[#allocation26_spill] sm:$0xff] %v4071_v60  ;;  %v8300_v60 = vld [vmem:[#allocation38_spill] sm:$0xff] }
 0x2a5   :  { %8293 = vst [vmem:[#allocation37_spill] sm:$0xff] %v4075_v59 }
 0x2a8   :  { %1448 = vrot.lane.b32.xlu2 %v8295_v54, %s2923_s5 }
 0x2a9   :  { %1446 = vrot.lane.b32.xlu1 %v8294_v26, %s2923_s5  ;;  %1456 = vrot.lane.b32.xlu0 %v8296_v3, %s2923_s5  ;;  %v8302_v26 = vld [vmem:[#allocation50_spill] sm:$0xff] }
 0x2aa   :  { %v4085_v0 = vpop.permute.xlu2 %1245 }
 0x2ab   :  { %v4083_v53 = vpop.permute.xlu1 %1205  ;;  %8298 = vst [vmem:[#allocation39_spill] sm:$0xff] %v4085_v0  ;;  %v4087_v25 = vpop.permute.xlu0 %1225  ;;  %v8307_v0 = vld [vmem:[#allocation51_spill] sm:$0xff] }
 0x2ac   :  { %8297 = vst [vmem:[#allocation32_spill] sm:$0xff] %v4083_v53  ;;  %v8306_v53 = vld [vmem:[#allocation45_spill] sm:$0xff] }
 0x2ad   :  { %8299 = vst [vmem:[#allocation44_spill] sm:$0xff] %v4087_v25 }
 0x2b0   :  { %1454 = vrot.lane.b32.xlu2 %v8301_v5, %s2923_s5 }
 0x2b1   :  { %1452 = vrot.lane.b32.xlu1 %v8300_v60, %s2923_s5  ;;  %1462 = vrot.lane.b32.xlu0 %v8302_v26, %s2923_s5  ;;  %v8308_v60 = vld [vmem:[#allocation56_spill] sm:$0xff] }
 0x2b2   :  { %v4097_v54 = vpop.permute.xlu2 %1257 }
 0x2b3   :  { %v4095_v59 = vpop.permute.xlu1 %1217  ;;  %8304 = vst [vmem:[#allocation43_spill] sm:$0xff] %v4097_v54  ;;  %v4099_v3 = vpop.permute.xlu0 %1237  ;;  %v8313_v54 = vld [vmem:[#allocation57_spill] sm:$0xff] }
 0x2b4   :  { %8303 = vst [vmem:[#allocation38_spill] sm:$0xff] %v4095_v59  ;;  %v8312_v59 = vld [vmem:[#allocation49_spill] sm:$0xff] }
 0x2b5   :  { %8305 = vst [vmem:[#allocation50_spill] sm:$0xff] %v4099_v3 }
 0x2b8   :  { %1460 = vrot.lane.b32.xlu2 %v8307_v0, %s2923_s5 }
 0x2b9   :  { %1458 = vrot.lane.b32.xlu1 %v8306_v53, %s2923_s5  ;;  %1468 = vrot.lane.b32.xlu0 %v8308_v60, %s2923_s5  ;;  %v8314_v53 = vld [vmem:[#allocation62_spill] sm:$0xff] }
 0x2ba   :  { %v4109_v5 = vpop.permute.xlu2 %1394 }
 0x2bb   :  { %v4107_v25 = vpop.permute.xlu1 %1229  ;;  %8310 = vst [vmem:[#allocation51_spill] sm:$0xff] %v4109_v5  ;;  %v4111_v26 = vpop.permute.xlu0 %1249 }
 0x2bc   :  { %8309 = vst [vmem:[#allocation45_spill] sm:$0xff] %v4107_v25  ;;  %v8318_v25 = vld [vmem:[#allocation55_spill] sm:$0xff] }
 0x2bd   :  { %8311 = vst [vmem:[#allocation56_spill] sm:$0xff] %v4111_v26  ;;  %v8319_v26 = vld [vmem:[#allocation63_spill] sm:$0xff] }
 0x2c0   :  { %1466 = vrot.lane.b32.xlu2 %v8313_v54, %s2923_s5 }
 0x2c1   :  { %1464 = vrot.lane.b32.xlu1 %v8312_v59, %s2923_s5  ;;  %1474 = vrot.lane.b32.xlu0 %v8314_v53, %s2923_s5  ;;  %v8320_v59 = vld [vmem:[#allocation68_spill] sm:$0xff] }
 0x2c2   :  { %v4121_v0 = vpop.permute.xlu2 %1400 }
 0x2c3   :  { %v4119_v3 = vpop.permute.xlu1 %1241  ;;  %8316 = vst [vmem:[#allocation57_spill] sm:$0xff] %v4121_v0  ;;  %v4123_v60 = vpop.permute.xlu0 %1261 }
 0x2c4   :  { %8315 = vst [vmem:[#allocation49_spill] sm:$0xff] %v4119_v3  ;;  %v8324_v3 = vld [vmem:[#allocation61_spill] sm:$0xff] }
 0x2c5   :  { %8317 = vst [vmem:[#allocation62_spill] sm:$0xff] %v4123_v60  ;;  %v8325_v60 = vld [vmem:[#allocation69_spill] sm:$0xff] }
 0x2c8   :  { %1472 = vrot.lane.b32.xlu2 %v8319_v26, %s2923_s5 }
 0x2c9   :  { %1470 = vrot.lane.b32.xlu1 %v8318_v25, %s2923_s5  ;;  %1480 = vrot.lane.b32.xlu0 %v8320_v59, %s2923_s5  ;;  %v8326_v25 = vld [vmem:[#allocation74_spill] sm:$0xff] }
 0x2ca   :  { %v4133_v54 = vpop.permute.xlu2 %1406 }
 0x2cb   :  { %v4131_v5 = vpop.permute.xlu1 %1253  ;;  %8322 = vst [vmem:[#allocation63_spill] sm:$0xff] %v4133_v54  ;;  %v4135_v53 = vpop.permute.xlu0 %1396  ;;  %v8331_v54 = vld [vmem:[#allocation75_spill] sm:$0xff] }
 0x2cc   :  { %8321 = vst [vmem:[#allocation55_spill] sm:$0xff] %v4131_v5  ;;  %v8330_v5 = vld [vmem:[#allocation67_spill] sm:$0xff] }
 0x2cd   :  { %8323 = vst [vmem:[#allocation68_spill] sm:$0xff] %v4135_v53 }
 0x2d0   :  { %1478 = vrot.lane.b32.xlu2 %v8325_v60, %s2923_s5 }
 0x2d1   :  { %1476 = vrot.lane.b32.xlu1 %v8324_v3, %s2923_s5  ;;  %1486 = vrot.lane.b32.xlu0 %v8326_v25, %s2923_s5  ;;  %v8332_v3 = vld [vmem:[#allocation80_spill] sm:$0xff] }
 0x2d2   :  { %v4145_v26 = vpop.permute.xlu2 %1412 }
 0x2d3   :  { %v4143_v0 = vpop.permute.xlu1 %1392  ;;  %8328 = vst [vmem:[#allocation69_spill] sm:$0xff] %v4145_v26  ;;  %v4147_v59 = vpop.permute.xlu0 %1402  ;;  %v8336_v26 = vld [vmem:[#allocation73_spill] sm:$0xff] }
 0x2d4   :  { %8327 = vst [vmem:[#allocation61_spill] sm:$0xff] %v4143_v0  ;;  %v2924_v0 = vmov 3  }
 0x2d5   :  { %8329 = vst [vmem:[#allocation74_spill] sm:$0xff] %v4147_v59  ;;  %2739 = vset.pattern.permute.xlu0 %v2924_v0  ;;  %2738 = vset.pattern.permute.xlu2 %v2924_v0  ;;  %v8347_v59 = vld [vmem:[#allocation97_spill] sm:$0xff] }
 0x2d6   :  { %2740 = vset.pattern.permute.xlu1 %v2924_v0  ;;  %v8342_v0 = vld [vmem:[#allocation87_spill] sm:$0xff]  ;;  %8353 = vst [vmem:[#allocation97_spill] sm:$0xff] %v4254_v47 }
 0x2d8   :  { %1484 = vrot.lane.b32.xlu2 %v8331_v54, %s2923_s5  ;;  %v8338_v54 = vld [vmem:[#allocation86_spill] sm:$0xff] }
 0x2d9   :  { %1482 = vrot.lane.b32.xlu1 %v8330_v5, %s2923_s5  ;;  %1492 = vrot.lane.b32.xlu0 %v8332_v3, %s2923_s5  ;;  %v8337_v5 = vld [vmem:[#allocation81_spill] sm:$0xff] }
 0x2da   :  { %v4157_v60 = vpop.permute.xlu2 %1418 }
 0x2db   :  { %v4155_v53 = vpop.permute.xlu1 %1398  ;;  %8334 = vst [vmem:[#allocation75_spill] sm:$0xff] %v4157_v60  ;;  %v4159_v25 = vpop.permute.xlu0 %1408 }
 0x2dc   :  { %8333 = vst [vmem:[#allocation67_spill] sm:$0xff] %v4155_v53 }
 0x2dd   :  { %8335 = vst [vmem:[#allocation80_spill] sm:$0xff] %v4159_v25  ;;  %v8341_v25 = vld [vmem:[#allocation79_spill] sm:$0xff] }
 0x2e0   :  { %1490 = vrot.lane.b32.xlu2 %v8337_v5, %s2923_s5 }
 0x2e1   :  { %1488 = vrot.lane.b32.xlu1 %v8336_v26, %s2923_s5  ;;  %1498 = vrot.lane.b32.xlu0 %v8338_v54, %s2923_s5 }
 0x2e2   :  { %v4169_v53 = vpop.permute.xlu2 %1424 }
 0x2e3   :  { %v4167_v3 = vpop.permute.xlu1 %1404  ;;  %v4171_v60 = vpop.permute.xlu0 %1414 }
 0x2e4   :  { %8339 = vst [vmem:[#allocation73_spill] sm:$0xff] %v4167_v3  ;;  %v8344_v3 = vld [vmem:[#allocation85_spill] sm:$0xff] }
 0x2e5   :  { %8340 = vst [vmem:[#allocation81_spill] sm:$0xff] %v4171_v60  ;;  %v8345_v60 = vld [vmem:[#allocation91_spill] sm:$0xff] }
 0x2e8   :  { %1496 = vrot.lane.b32.xlu2 %v8342_v0, %s2923_s5 }
 0x2e9   :  { %1494 = vrot.lane.b32.xlu1 %v8341_v25, %s2923_s5  ;;  %1504 = vrot.lane.b32.xlu0 %v8212_v62, %s2923_s5 }
 0x2ea   :  { %v4181_v5 = vpop.permute.xlu2 %1430 }
 0x2eb   :  { %v4179_v26 = vpop.permute.xlu1 %1410  ;;  %v4183_v54 = vpop.permute.xlu0 %1420 }
 0x2ec   :  { %8343 = vst [vmem:[#allocation86_spill] sm:$0xff] %v4183_v54  ;;  %v8346_v54 = vld [vmem:[#allocation98_spill] sm:$0xff] }
 0x2f0   :  { %1502 = vrot.lane.b32.xlu2 %v8211_v57, %s2923_s5 }
 0x2f1   :  { %1500 = vrot.lane.b32.xlu1 %v8344_v3, %s2923_s5  ;;  %1510 = vrot.lane.b32.xlu0 %v3483_v55, %s2923_s5 }
 0x2f2   :  { %v4193_v0 = vpop.permute.xlu2 %1436 }
 0x2f3   :  { %v4191_v25 = vpop.permute.xlu1 %1416  ;;  %v4195_v62 = vpop.permute.xlu0 %1426 }
 0x2f8   :  { %1508 = vrot.lane.b32.xlu2 %v8346_v54, %s2923_s5 }
 0x2f9   :  { %1506 = vrot.lane.b32.xlu1 %v8345_v60, %s2923_s5  ;;  %1516 = vrot.lane.b32.xlu0 %v8221_v51, %s2923_s5  ;;  %v4216_v60 = vld [vmem:[%s7562_s1 + $0x8] sm:$0xff] }
 0x2fa   :  { %v4205_v57 = vpop.permute.xlu2 %1442  ;;  %8348 = vst [vmem:[#allocation79_spill] sm:$0xff] %v4216_v60 }
 0x2fb   :  { %v4203_v3 = vpop.permute.xlu1 %1422  ;;  %v4207_v55 = vpop.permute.xlu0 %1432 }
 0x300   :  { %1514 = vrot.lane.b32.xlu2 %v3503_v45, %s2923_s5  ;;  %v4230_v45 = vld [vmem:[%s7562_s1] sm:$0xff] }
 0x301   :  { %1512 = vrot.lane.b32.xlu1 %v8347_v59, %s2923_s5  ;;  %1660 = vperm.xlu0 %2739, %v4216_v60   ;;  %8350 = vst [vmem:[#allocation85_spill] sm:$0xff] %v4230_v45  ;;  %v4236_v59 = vld [vmem:[%s7562_s1 + $0x30] sm:$0xff] }
 0x302   :  { %v4221_v54 = vpop.permute.xlu2 %1448  ;;  %8351 = vst [vmem:[#allocation91_spill] sm:$0xff] %v4236_v59 }
 0x303   :  { %v4219_v51 = vpop.permute.xlu1 %1428  ;;  %8349 = vst [vmem:[#allocation87_spill] sm:$0xff] %v4221_v54  ;;  %v4223_v58 = vpop.permute.xlu0 %1438 }
 0x308   :  { %1656 = vperm.xlu2 %2738, %v4230_v45  }
 0x309   :  { %1518 = vrot.lane.b32.xlu1 %v8222_v41, %s2923_s5  ;;  %1680 = vperm.xlu0 %2739, %v4236_v59   ;;  %v4248_v41 = vld [vmem:[%s7562_s1 + $0x10] sm:$0xff] }
 0x30a   :  { %v4241_v48 = vpop.permute.xlu2 %1454  ;;  %8352 = vst [vmem:[#allocation98_spill] sm:$0xff] %v4248_v41 }
 0x30b   :  { %v4239_v54 = vpop.permute.xlu1 %1434  ;;  %v4243_v52 = vpop.permute.xlu0 %1444 }
 0x310   :  { %1668 = vperm.xlu2 %2738, %v4254_v47  }
 0x311   :  { %1664 = vperm.xlu1 %2740, %v4248_v41   ;;  %1692 = vperm.xlu0 %2739, %v2749_v46   ;;  %v2752_v46 = vld [vmem:[%s7562_s1 + $0x60] sm:$0xff] }
 0x312   :  { %v4262_v43 = vpop.permute.xlu2 %1460 }
 0x313   :  { %v4260_v44 = vpop.permute.xlu1 %1440  ;;  %8355 = vst [vmem:[#allocation252_spill] sm:$0xff] %v4262_v43  ;;  %v4264_v42 = vpop.permute.xlu0 %1450 }
 0x314   :  { %8354 = vst [vmem:[#allocation251_spill] sm:$0xff] %v4260_v44 }
 0x315   :  { %8356 = vst [vmem:[#allocation253_spill] sm:$0xff] %v4264_v42 }
 0x318   :  { %1676 = vperm.xlu2 %2738, %v4275_v39  }
 0x319   :  { %1672 = vperm.xlu1 %2740, %v4269_v40   ;;  %1704 = vperm.xlu0 %2739, %v2752_v46   ;;  %v2755_v46 = vld [vmem:[%s7562_s1 + $0x78] sm:$0xff] }
 0x31a   :  { %v4283_v42 = vpop.permute.xlu2 %1466 }
 0x31b   :  { %v4281_v44 = vpop.permute.xlu1 %1446  ;;  %8359 = vst [vmem:[#allocation256_spill] sm:$0xff] %v4283_v42  ;;  %v4285_v43 = vpop.permute.xlu0 %1456 }
 0x31c   :  { %8360 = vst [vmem:[#allocation257_spill] sm:$0xff] %v4285_v43 }
 0x320   :  { %1688 = vperm.xlu2 %2738, %v4296_v1  }
 0x321   :  { %1684 = vperm.xlu1 %2740, %v4290_v38   ;;  %1716 = vperm.xlu0 %2739, %v2755_v46   ;;  %v2758_v46 = vld [vmem:[%s7562_s1 + $0x90] sm:$0xff] }
 0x322   :  { %v4304_v43 = vpop.permute.xlu2 %1472 }
 0x323   :  { %v4302_v42 = vpop.permute.xlu1 %1452  ;;  %8363 = vst [vmem:[#allocation260_spill] sm:$0xff] %v4304_v43  ;;  %v4306_v36 = vpop.permute.xlu0 %1462 }
 0x324   :  { %8364 = vst [vmem:[#allocation261_spill] sm:$0xff] %v4306_v36 }
 0x328   :  { %1700 = vperm.xlu2 %2738, %v4314_v33  }
 0x329   :  { %1696 = vperm.xlu1 %2740, %v2756_v35   ;;  %1728 = vperm.xlu0 %2739, %v2758_v46   ;;  %v2759_v35 = vld [vmem:[%s7562_s1 + $0x68] sm:$0xff] }
 0x32a   :  { %v4322_v36 = vpop.permute.xlu2 %1478  ;;  %v2761_v46 = vld [vmem:[%s7562_s1 + $0xa8] sm:$0xff] }
 0x32b   :  { %v4320_v43 = vpop.permute.xlu1 %1458  ;;  %8367 = vst [vmem:[#allocation264_spill] sm:$0xff] %v4322_v36  ;;  %v4324_v34 = vpop.permute.xlu0 %1468 }
 0x32c   :  { %8366 = vst [vmem:[#allocation263_spill] sm:$0xff] %v4320_v43 }
 0x32d   :  { %8368 = vst [vmem:[#allocation265_spill] sm:$0xff] %v4324_v34 }
 0x330   :  { %1712 = vperm.xlu2 %2738, %v4332_v2  }
 0x331   :  { %1708 = vperm.xlu1 %2740, %v2759_v35   ;;  %1740 = vperm.xlu0 %2739, %v2761_v46   ;;  %v2762_v35 = vld [vmem:[%s7562_s1 + $0x80] sm:$0xff] }
 0x332   :  { %v4340_v34 = vpop.permute.xlu2 %1484  ;;  %v2764_v46 = vld [vmem:[%s7562_s1 + $0xc0] sm:$0xff] }
 0x333   :  { %v4338_v36 = vpop.permute.xlu1 %1464  ;;  %8371 = vst [vmem:[#allocation268_spill] sm:$0xff] %v4340_v34  ;;  %v4342_v43 = vpop.permute.xlu0 %1474 }
 0x334   :  { %8370 = vst [vmem:[#allocation267_spill] sm:$0xff] %v4338_v36  ;;  %v1562_v50 = vsel %vm1520_vm0, %v4342_v43, %v4179_v26  ;;  %v1530_v2 = vsel %vm1520_vm0, %v4179_v26, %v4342_v43  ;;  %v4549_v43 = vld [vmem:[#allocation2 + $0x160] sm:$0xff] }
 0x338   :  { %1724 = vperm.xlu2 %2738, %v4350_v32  }
 0x339   :  { %1720 = vperm.xlu1 %2740, %v2762_v35   ;;  %1752 = vperm.xlu0 %2739, %v2764_v46   ;;  %v2765_v35 = vld [vmem:[%s7562_s1 + $0x98] sm:$0xff] }
 0x33a   :  { %v4358_v36 = vpop.permute.xlu2 %1490  ;;  %v2767_v46 = vld [vmem:[%s7562_s1 + $0xd8] sm:$0xff] }
 0x33b   :  { %v4356_v34 = vpop.permute.xlu1 %1470  ;;  %v4360_v31 = vpop.permute.xlu0 %1480  ;;  %v1570_v41 = vsel %vm1520_vm0, %v4358_v36, %v4195_v62 }
 0x33c   :  { %8373 = vst [vmem:[#allocation270_spill] sm:$0xff] %v4356_v34  ;;  %v1565_v33 = vsel %vm1520_vm0, %v4360_v31, %v4191_v25  ;;  %v1533_v26 = vsel %vm1520_vm0, %v4191_v25, %v4360_v31  ;;  %v4578_v31 = vld [vmem:[#allocation2 + $0x120] sm:$0xff]  ;;  %v4583_v25 = vld [vmem:[#allocation2 + $0x190] sm:$0xff] }
 0x340   :  { %1736 = vperm.xlu2 %2738, %v4368_v49   ;;  %v4513_v49 = vld [vmem:[#allocation2 + $0xc0] sm:$0xff] }
 0x341   :  { %1732 = vperm.xlu1 %2740, %v2765_v35   ;;  %1764 = vperm.xlu0 %2739, %v2767_v46   ;;  %v2768_v35 = vld [vmem:[%s7562_s1 + $0xb0] sm:$0xff] }
 0x342   :  { %v4376_v28 = vpop.permute.xlu2 %1496  ;;  %v2770_v46 = vld [vmem:[%s7562_s1 + $0xf0] sm:$0xff] }
 0x343   :  { %v4374_v34 = vpop.permute.xlu1 %1476  ;;  %v4378_v30 = vpop.permute.xlu0 %1486 }
 0x344   :  { %8375 = vst [vmem:[#allocation272_spill] sm:$0xff] %v4374_v34 }
 0x348   :  { %1748 = vperm.xlu2 %2738, %v2769_v29   ;;  %v2772_v29 = vld [vmem:[%s7562_s1 + $0xd0] sm:$0xff] }
 0x349   :  { %1744 = vperm.xlu1 %2740, %v2768_v35   ;;  %1776 = vperm.xlu0 %2739, %v2770_v46   ;;  %v2771_v35 = vld [vmem:[%s7562_s1 + $0xc8] sm:$0xff] }
 0x34a   :  { %v4391_v56 = vpop.permute.xlu2 %1502 }
 0x34b   :  { %v4389_v34 = vpop.permute.xlu1 %1482  ;;  %v4393_v27 = vpop.permute.xlu0 %1492 }
 0x34c   :  { %8376 = vst [vmem:[#allocation273_spill] sm:$0xff] %v4389_v34 }
 0x350   :  { %1760 = vperm.xlu2 %2738, %v2772_v29   ;;  %v2775_v29 = vld [vmem:[%s7562_s1 + $0xe8] sm:$0xff] }
 0x351   :  { %1756 = vperm.xlu1 %2740, %v2771_v35   ;;  %1913 = vrot.lane.b32.xlu0 %v4401_v22, %s2925_s12  ;;  %v2774_v35 = vld [vmem:[%s7562_s1 + $0xe0] sm:$0xff] }
 0x352   :  { %v4407_v34 = vpop.permute.xlu2 %1508 }
 0x353   :  { %v4405_v46 = vpop.permute.xlu1 %1488  ;;  %v4409_v24 = vpop.permute.xlu0 %1498 }
 0x358   :  { %1772 = vperm.xlu2 %2738, %v2775_v29   ;;  %v4434_v29 = vld [vmem:[#allocation2 + $0x70] sm:$0xff] }
 0x359   :  { %1768 = vperm.xlu1 %2740, %v2774_v35   ;;  %1919 = vrot.lane.b32.xlu0 %v4417_v23, %s2925_s12  ;;  %v2777_v35 = vld [vmem:[%s7562_s1 + $0xf8] sm:$0xff] }
 0x35a   :  { %v4423_v19 = vpop.permute.xlu2 %1514 }
 0x35b   :  { %v4421_v61 = vpop.permute.xlu1 %1494  ;;  %8377 = vst [vmem:[#allocation274_spill] sm:$0xff] %v4423_v19  ;;  %v4425_v21 = vpop.permute.xlu0 %1504 }
 0x35c   :  { %8378 = vst [vmem:[#allocation275_spill] sm:$0xff] %v4425_v21 }
 0x360   :  { %1911 = vrot.lane.b32.xlu2 %v4430_v16, %s2925_s12 }
 0x361   :  { %1780 = vperm.xlu1 %2740, %v2777_v35   ;;  %1925 = vrot.lane.b32.xlu0 %v4434_v29, %s2925_s12  ;;  %v4448_v35 = vld [vmem:[#allocation2 + $0x30] sm:$0xff] }
 0x362   :  { %v4440_v19 = vpop.permute.xlu2 %1656 }
 0x363   :  { %v4438_v20 = vpop.permute.xlu1 %1500  ;;  %8379 = vst [vmem:[#allocation276_spill] sm:$0xff] %v4440_v19  ;;  %v4442_v21 = vpop.permute.xlu0 %1510 }
 0x368   :  { %1917 = vrot.lane.b32.xlu2 %v4448_v35, %s2925_s12 }
 0x369   :  { %1915 = vrot.lane.b32.xlu1 %v4444_v63, %s2925_s12  ;;  %1931 = vrot.lane.b32.xlu0 %v4452_v18, %s2925_s12 }
 0x36a   :  { %v4458_v19 = vpop.permute.xlu2 %1668 }
 0x36b   :  { %v4456_v17 = vpop.permute.xlu1 %1506  ;;  %8380 = vst [vmem:[#allocation277_spill] sm:$0xff] %v4458_v19  ;;  %v4460_v13 = vpop.permute.xlu0 %1516 }
 0x370   :  { %1923 = vrot.lane.b32.xlu2 %v4466_v14, %s2925_s12 }
 0x371   :  { %1921 = vrot.lane.b32.xlu1 %v4462_v15, %s2925_s12  ;;  %1937 = vrot.lane.b32.xlu0 %v4470_v10, %s2925_s12 }
 0x372   :  { %v4476_v19 = vpop.permute.xlu2 %1676 }
 0x373   :  { %v4474_v12 = vpop.permute.xlu1 %1512  ;;  %8382 = vst [vmem:[#allocation279_spill] sm:$0xff] %v4476_v19  ;;  %v4478_v11 = vpop.permute.xlu0 %1660 }
 0x374   :  { %8381 = vst [vmem:[#allocation278_spill] sm:$0xff] %v4474_v12  ;;  %v4495_v12 = vadd.s32 128, %v4480_v9 }
 0x375   :  { %8383 = vst [vmem:[#allocation280_spill] sm:$0xff] %v4478_v11 }
 0x376   :  { %8384 = vst [vmem:[#allocation281_spill] sm:$0xff] %v4495_v12  ;;  %vm1586_vm1 = vcmp.lt.s32.totalorder %v4495_v12, 255  ;;  %v4520_v12 = vld [vmem:[#allocation2 + $0x130] sm:$0xff] }
 0x378   :  { %1929 = vrot.lane.b32.xlu2 %v4486_v4, %s2925_s12 }
 0x379   :  { %1927 = vrot.lane.b32.xlu1 %v4482_v8, %s2925_s12  ;;  %1943 = vrot.lane.b32.xlu0 %v4490_v6, %s2925_s12 }
 0x37a   :  { %v4499_v11 = vpop.permute.xlu2 %1688 }
 0x37b   :  { %v4497_v7 = vpop.permute.xlu1 %1518  ;;  %8385 = vst [vmem:[#allocation282_spill] sm:$0xff] %v4499_v11  ;;  %v4501_v19 = vpop.permute.xlu0 %1680 }
 0x37c   :  { %8386 = vst [vmem:[#allocation283_spill] sm:$0xff] %v4501_v19  ;;  %v7915_v19 = vmov 0.0  }
 0x37d   :  { %v4518_v11 = vsel %vm1586_vm1, 1.0, %v7915_v19 }
 0x37e   :  { %8387 = vst [vmem:[#allocation284_spill] sm:$0xff] %v4518_v11  ;;  %v1610_v32 = vmul.f32 %v4518_v11, %v1562_v50  ;;  %v4541_v50 = vld [vmem:[#allocation2 + $0xe0] sm:$0xff] }
 0x380   :  { %1935 = vrot.lane.b32.xlu2 %v4513_v49, %s2925_s12 }
 0x381   :  { %1933 = vrot.lane.b32.xlu1 %v4509_v37, %s2925_s12  ;;  %1949 = vrot.lane.b32.xlu0 %v4520_v12, %s2925_s12 }
 0x382   :  { %v4527_v59 = vpop.permute.xlu2 %1700 }
 0x383   :  { %v4525_v38 = vpop.permute.xlu1 %1664  ;;  %8389 = vst [vmem:[#allocation286_spill] sm:$0xff] %v4527_v59  ;;  %v1693_v40 = vpop.permute.xlu0 %1692  ;;  %v4545_v59 = vld [vmem:[#allocation2 + $0xf0] sm:$0xff] }
 0x384   :  { %8388 = vst [vmem:[#allocation285_spill] sm:$0xff] %v4525_v38  ;;  %v4533_v47 = vmul.f32 %v1693_v40, %v1530_v2  ;;  %v4535_v19 = vmul.f32 %v1693_v40, %v1610_v32  ;;  %v1616_v2 = vmul.f32 %v4518_v11, %v1565_v33  ;;  %v1568_v33 = vsel %vm1520_vm0, %v4378_v30, %v4203_v3 }
 0x386   :  { %8390 = vst [vmem:[#allocation287_spill] sm:$0xff] %v4533_v47 }
 0x387   :  { %8391 = vst [vmem:[#allocation288_spill] sm:$0xff] %v4535_v19 }
 0x388   :  { %1941 = vrot.lane.b32.xlu2 %v4545_v59, %s2925_s12 }
 0x389   :  { %1939 = vrot.lane.b32.xlu1 %v4541_v50, %s2925_s12  ;;  %1955 = vrot.lane.b32.xlu0 %v4549_v43, %s2925_s12 }
 0x38a   :  { %v4556_v40 = vpop.permute.xlu2 %1712 }
 0x38b   :  { %v4554_v32 = vpop.permute.xlu1 %1672  ;;  %8393 = vst [vmem:[#allocation290_spill] sm:$0xff] %v4556_v40  ;;  %v1705_v19 = vpop.permute.xlu0 %1704  ;;  %v4574_v40 = vld [vmem:[#allocation2 + $0x110] sm:$0xff] }
 0x38c   :  { %8392 = vst [vmem:[#allocation289_spill] sm:$0xff] %v4554_v32  ;;  %v4562_v47 = vmul.f32 %v1705_v19, %v1533_v26  ;;  %v4564_v38 = vmul.f32 %v1705_v19, %v1616_v2  ;;  %v1626_v19 = vmul.f32 %v4518_v11, %v1570_v41  ;;  %v1538_v2 = vsel %vm1520_vm0, %v4195_v62, %v4358_v36 }
 0x38d   :  { %v1622_v26 = vmul.f32 %v4518_v11, %v1568_v33  ;;  %v1536_v41 = vsel %vm1520_vm0, %v4203_v3, %v4378_v30  ;;  %v1573_v36 = vsel %vm1520_vm0, %v4376_v28, %v4207_v55  ;;  %v1571_v62 = vsel %vm1520_vm0, %v4393_v27, %v4219_v51  ;;  %v4614_v30 = vld [vmem:[#allocation2 + $0x140] sm:$0xff] }
 0x38e   :  { %8394 = vst [vmem:[#allocation291_spill] sm:$0xff] %v4562_v47  ;;  %v1632_v3 = vmul.f32 %v4518_v11, %v1573_v36  ;;  %v1541_v33 = vsel %vm1520_vm0, %v4207_v55, %v4376_v28  ;;  %v1576_v28 = vsel %vm1520_vm0, %v4391_v56, %v4223_v58  ;;  %v1574_v55 = vsel %vm1520_vm0, %v4409_v24, %v4239_v54 }
 0x38f   :  { %8395 = vst [vmem:[#allocation292_spill] sm:$0xff] %v4564_v38 }
 0x390   :  { %1947 = vrot.lane.b32.xlu2 %v4578_v31, %s2925_s12 }
 0x391   :  { %1945 = vrot.lane.b32.xlu1 %v4574_v40, %s2925_s12  ;;  %1961 = vrot.lane.b32.xlu0 %v4583_v25, %s2925_s12 }
 0x392   :  { %v1725_v47 = vpop.permute.xlu2 %1724 }
 0x393   :  { %v4592_v38 = vpop.permute.xlu1 %1684  ;;  %v1717_v32 = vpop.permute.xlu0 %1716  ;;  %v4598_v60 = vmul.f32 %v1725_v47, %v1538_v2  ;;  %v4600_v1 = vmul.f32 %v1725_v47, %v1626_v19  ;;  %v4618_v47 = vld [vmem:[#allocation2 + $0x150] sm:$0xff]  ;;  %v1628_v19 = vmul.f32 %v4518_v11, %v1571_v62  ;;  %v1638_v62 = vmul.f32 %v4518_v11, %v1576_v28 }
 0x394   :  { %8396 = vst [vmem:[#allocation293_spill] sm:$0xff] %v4592_v38  ;;  %v4602_v39 = vmul.f32 %v1717_v32, %v1536_v41  ;;  %v4604_v45 = vmul.f32 %v1717_v32, %v1622_v26  ;;  %v4623_v32 = vld [vmem:[#allocation2 + $0x1c0] sm:$0xff]  ;;  %v1539_v41 = vsel %vm1520_vm0, %v4219_v51, %v4393_v27  ;;  %v4654_v27 = vld [vmem:[#allocation2 + $0x170] sm:$0xff] }
 0x395   :  { %8397 = vst [vmem:[#allocation294_spill] sm:$0xff] %v4598_v60  ;;  %v4658_v51 = vld [vmem:[#allocation2 + $0x180] sm:$0xff] }
 0x396   :  { %8398 = vst [vmem:[#allocation295_spill] sm:$0xff] %v4600_v1  ;;  %v8444_v38 = vld [vmem:[#allocation8_spill] sm:$0xff] }
 0x397   :  { %8399 = vst [vmem:[#allocation296_spill] sm:$0xff] %v4602_v39 }
 0x398   :  { %8400 = vst [vmem:[#allocation297_spill] sm:$0xff] %v4604_v45  ;;  %1953 = vrot.lane.b32.xlu2 %v4618_v47, %s2925_s12 }
 0x399   :  { %1951 = vrot.lane.b32.xlu1 %v4614_v30, %s2925_s12  ;;  %1967 = vrot.lane.b32.xlu0 %v4623_v32, %s2925_s12 }
 0x39a   :  { %v1737_v26 = vpop.permute.xlu2 %1736 }
 0x39b   :  { %v4632_v2 = vpop.permute.xlu1 %1696  ;;  %v1729_v36 = vpop.permute.xlu0 %1728  ;;  %v4638_v45 = vmul.f32 %v1737_v26, %v1541_v33  ;;  %v4640_v39 = vmul.f32 %v1737_v26, %v1632_v3  ;;  %v4663_v3 = vld [vmem:[#allocation2 + $0x1f0] sm:$0xff]  ;;  %v1544_v33 = vsel %vm1520_vm0, %v4223_v58, %v4391_v56  ;;  %v1569_v56 = vsel %vm1520_vm0, %v4405_v46, %v4169_v53 }
 0x39c   :  { %8401 = vst [vmem:[#allocation298_spill] sm:$0xff] %v4632_v2  ;;  %v4642_v1 = vmul.f32 %v1729_v36, %v1539_v41  ;;  %v4644_v60 = vmul.f32 %v1729_v36, %v1628_v19  ;;  %v1634_v19 = vmul.f32 %v4518_v11, %v1574_v55  ;;  %v1542_v36 = vsel %vm1520_vm0, %v4239_v54, %v4409_v24  ;;  %v4694_v24 = vld [vmem:[#allocation2 + $0x1a0] sm:$0xff]  ;;  %v2805_v54 = vld [vmem:[#allocation2 + $0x1b0] sm:$0xff] }
 0x39d   :  { %8402 = vst [vmem:[#allocation299_spill] sm:$0xff] %v4638_v45  ;;  %v1579_v58 = vsel %vm1520_vm0, %v4407_v34, %v4243_v52  ;;  %v1624_v55 = vmul.f32 %v4518_v11, %v1569_v56 }
 0x39e   :  { %8403 = vst [vmem:[#allocation300_spill] sm:$0xff] %v4640_v39 }
 0x39f   :  { %8404 = vst [vmem:[#allocation301_spill] sm:$0xff] %v4642_v1 }
 0x3a0   :  { %8405 = vst [vmem:[#allocation302_spill] sm:$0xff] %v4644_v60  ;;  %1959 = vrot.lane.b32.xlu2 %v4658_v51, %s2925_s12 }
 0x3a1   :  { %1957 = vrot.lane.b32.xlu1 %v4654_v27, %s2925_s12  ;;  %1973 = vrot.lane.b32.xlu0 %v4663_v3, %s2925_s12 }
 0x3a2   :  { %v1749_v41 = vpop.permute.xlu2 %1748 }
 0x3a3   :  { %v4672_v26 = vpop.permute.xlu1 %1708  ;;  %v1741_v28 = vpop.permute.xlu0 %1740  ;;  %v4678_v60 = vmul.f32 %v1749_v41, %v1544_v33  ;;  %v4680_v1 = vmul.f32 %v1749_v41, %v1638_v62  ;;  %v1644_v62 = vmul.f32 %v4518_v11, %v1579_v58  ;;  %v4701_v33 = vld [vmem:[#allocation2 + $0x28] sm:$0xff]  ;;  %v1547_v41 = vsel %vm1520_vm0, %v4243_v52, %v4407_v34  ;;  %v4731_v52 = vld [vmem:[#allocation2 + $0x1d0] sm:$0xff] }
 0x3a4   :  { %8406 = vst [vmem:[#allocation303_spill] sm:$0xff] %v4672_v26  ;;  %v4682_v39 = vmul.f32 %v1741_v28, %v1542_v36  ;;  %v4684_v45 = vmul.f32 %v1741_v28, %v1634_v19  ;;  %v1537_v19 = vsel %vm1520_vm0, %v4169_v53, %v4405_v46  ;;  %v1572_v53 = vsel %vm1520_vm0, %v4421_v61, %v4181_v5  ;;  %v2808_v46 = vld [vmem:[#allocation2 + $0x1e0] sm:$0xff]  ;;  %v4903_v26 = vld [vmem:[#allocation2 + $0x128] sm:$0xff] }
 0x3a5   :  { %8407 = vst [vmem:[#allocation304_spill] sm:$0xff] %v4678_v60  ;;  %v1580_v34 = vsel %vm1520_vm0, %v4442_v21, %v4281_v44 }
 0x3a6   :  { %8408 = vst [vmem:[#allocation305_spill] sm:$0xff] %v4680_v1 }
 0x3a7   :  { %8409 = vst [vmem:[#allocation306_spill] sm:$0xff] %v4682_v39 }
 0x3a8   :  { %8410 = vst [vmem:[#allocation307_spill] sm:$0xff] %v4684_v45  ;;  %1965 = vrot.lane.b32.xlu2 %v2805_v54, %s2925_s12 }
 0x3a9   :  { %1963 = vrot.lane.b32.xlu1 %v4694_v24, %s2925_s12  ;;  %1979 = vrot.lane.b32.xlu0 %v4701_v33, %s2925_s12 }
 0x3aa   :  { %v1761_v28 = vpop.permute.xlu2 %1760 }
 0x3ab   :  { %v1721_v36 = vpop.permute.xlu1 %1720  ;;  %v4717_v54 = vpop.permute.xlu0 %1752  ;;  %v4719_v45 = vmul.f32 %v1761_v28, %v1547_v41  ;;  %v4721_v39 = vmul.f32 %v1761_v28, %v1644_v62  ;;  %v4737_v62 = vld [vmem:[#allocation2 + $0x58] sm:$0xff]  ;;  %v1646_v41 = vmul.f32 %v4518_v11, %v1580_v34  ;;  %v4777_v34 = vld [vmem:[#allocation2 + $0x88] sm:$0xff] }
 0x3ac   :  { %v4713_v56 = vmul.f32 %v1721_v36, %v1537_v19  ;;  %v4715_v58 = vmul.f32 %v1721_v36, %v1624_v55  ;;  %8413 = vst [vmem:[#allocation310_spill] sm:$0xff] %v4717_v54  ;;  %v1630_v55 = vmul.f32 %v4518_v11, %v1572_v53  ;;  %v1540_v19 = vsel %vm1520_vm0, %v4181_v5, %v4421_v61 }
 0x3ad   :  { %8414 = vst [vmem:[#allocation311_spill] sm:$0xff] %v4719_v45  ;;  %v1548_v53 = vsel %vm1520_vm0, %v4281_v44, %v4442_v21  ;;  %v1575_v61 = vsel %vm1520_vm0, %v4438_v20, %v4193_v0  ;;  %v1583_v5 = vsel %vm1520_vm0, %v4460_v13, %v4302_v42  ;;  %v4768_v21 = vld [vmem:[#allocation2 + $0x8] sm:$0xff]  ;;  %v4772_v44 = vld [vmem:[#allocation2 + $0x18] sm:$0xff] }
 0x3ae   :  { %8411 = vst [vmem:[#allocation308_spill] sm:$0xff] %v4713_v56 }
 0x3af   :  { %8412 = vst [vmem:[#allocation309_spill] sm:$0xff] %v4715_v58 }
 0x3b0   :  { %8415 = vst [vmem:[#allocation312_spill] sm:$0xff] %v4721_v39  ;;  %1971 = vrot.lane.b32.xlu2 %v2808_v46, %s2925_s12 }
 0x3b1   :  { %1969 = vrot.lane.b32.xlu1 %v4731_v52, %s2925_s12  ;;  %1985 = vrot.lane.b32.xlu0 %v4737_v62, %s2925_s12 }
 0x3b2   :  { %v4746_v28 = vpop.permute.xlu2 %1772 }
 0x3b3   :  { %v1733_v36 = vpop.permute.xlu1 %1732  ;;  %8416 = vst [vmem:[#allocation313_spill] sm:$0xff] %v4746_v28  ;;  %v1765_v39 = vpop.permute.xlu0 %1764 }
 0x3b4   :  { %v4752_v46 = vmul.f32 %v1733_v36, %v1540_v19  ;;  %v4754_v54 = vmul.f32 %v1733_v36, %v1630_v55  ;;  %v4756_v45 = vmul.f32 %v1765_v39, %v1548_v53  ;;  %v4758_v1 = vmul.f32 %v1765_v39, %v1646_v41 }
 0x3b5   :  { %v1636_v39 = vmul.f32 %v4518_v11, %v1575_v61  ;;  %v1543_v55 = vsel %vm1520_vm0, %v4193_v0, %v4438_v20  ;;  %v1652_v19 = vmul.f32 %v4518_v11, %v1583_v5  ;;  %v1551_v53 = vsel %vm1520_vm0, %v4302_v42, %v4460_v13  ;;  %v4804_v0 = vld [vmem:[#allocation2 + $0x38] sm:$0xff]  ;;  %v4808_v13 = vld [vmem:[#allocation2 + $0x48] sm:$0xff] }
 0x3b6   :  { %8417 = vst [vmem:[#allocation314_spill] sm:$0xff] %v4752_v46  ;;  %v1578_v20 = vsel %vm1520_vm0, %v4456_v17, %v4205_v57  ;;  %v4813_v5 = vld [vmem:[#allocation2 + $0xb8] sm:$0xff] }
 0x3b7   :  { %8418 = vst [vmem:[#allocation315_spill] sm:$0xff] %v4754_v54  ;;  %v1642_v42 = vmul.f32 %v4518_v11, %v1578_v20  ;;  %v4829_v20 = vld [vmem:[#allocation2 + $0x68] sm:$0xff] }
 0x3b8   :  { %8419 = vst [vmem:[#allocation316_spill] sm:$0xff] %v4756_v45  ;;  %1977 = vrot.lane.b32.xlu2 %v4772_v44, %s2925_s12 }
 0x3b9   :  { %8420 = vst [vmem:[#allocation317_spill] sm:$0xff] %v4758_v1  ;;  %1975 = vrot.lane.b32.xlu1 %v4768_v21, %s2925_s12  ;;  %1991 = vrot.lane.b32.xlu0 %v4777_v34, %s2925_s12 }
 0x3ba   :  { %v4786_v36 = vpop.permute.xlu2 %1911 }
 0x3bb   :  { %v1745_v41 = vpop.permute.xlu1 %1744  ;;  %8421 = vst [vmem:[#allocation318_spill] sm:$0xff] %v4786_v36  ;;  %v1777_v45 = vpop.permute.xlu0 %1776  ;;  %v8446_v36 = vld [vmem:[#allocation9_spill] sm:$0xff] }
 0x3bc   :  { %v4792_v61 = vmul.f32 %v1745_v41, %v1543_v55  ;;  %v4794_v1 = vmul.f32 %v1745_v41, %v1636_v39  ;;  %v4796_v28 = vmul.f32 %v1777_v45, %v1551_v53  ;;  %v4798_v60 = vmul.f32 %v1777_v45, %v1652_v19 }
 0x3bd   :  { %v1546_v45 = vsel %vm1520_vm0, %v4205_v57, %v4456_v17  ;;  %v4837_v17 = vld [vmem:[#allocation2 + $0xe8] sm:$0xff] }
 0x3be   :  { %8422 = vst [vmem:[#allocation319_spill] sm:$0xff] %v4792_v61 }
 0x3bf   :  { %8423 = vst [vmem:[#allocation320_spill] sm:$0xff] %v4794_v1  ;;  %v1552_v1 = vsel %vm1520_vm0, %v4241_v48, %v4497_v7 }
 0x3c0   :  { %8424 = vst [vmem:[#allocation321_spill] sm:$0xff] %v4796_v28  ;;  %1983 = vrot.lane.b32.xlu2 %v4808_v13, %s2925_s12  ;;  %v4851_v28 = vld [vmem:[#allocation2 + $0x98] sm:$0xff] }
 0x3c1   :  { %8425 = vst [vmem:[#allocation322_spill] sm:$0xff] %v4798_v60  ;;  %1981 = vrot.lane.b32.xlu1 %v4804_v0, %s2925_s12  ;;  %1997 = vrot.lane.b32.xlu0 %v4813_v5, %s2925_s12  ;;  %v4833_v60 = vld [vmem:[#allocation2 + $0x78] sm:$0xff] }
 0x3c2   :  { %v4821_v55 = vpop.permute.xlu2 %1917 }
 0x3c3   :  { %v1757_v39 = vpop.permute.xlu1 %1756  ;;  %8426 = vst [vmem:[#allocation323_spill] sm:$0xff] %v4821_v55  ;;  %v4827_v53 = vpop.permute.xlu0 %1913  ;;  %v4877_v55 = vld [vmem:[#allocation2 + $0xd8] sm:$0xff] }
 0x3c4   :  { %v4823_v19 = vmul.f32 %v1757_v39, %v1546_v45  ;;  %v4825_v41 = vmul.f32 %v1757_v39, %v1642_v42  ;;  %8429 = vst [vmem:[#allocation326_spill] sm:$0xff] %v4827_v53  ;;  %v1584_v39 = vsel %vm1520_vm0, %v4497_v7, %v4241_v48  ;;  %v2830_v53 = vld [vmem:[#allocation2 + $0x1a8] sm:$0xff] }
 0x3c6   :  { %8427 = vst [vmem:[#allocation324_spill] sm:$0xff] %v4823_v19  ;;  %v2821_v19 = vld [vmem:[#allocation2 + $0x118] sm:$0xff] }
 0x3c7   :  { %8428 = vst [vmem:[#allocation325_spill] sm:$0xff] %v4825_v41  ;;  %v4855_v41 = vld [vmem:[#allocation2 + $0xa8] sm:$0xff] }
 0x3c8   :  { %1989 = vrot.lane.b32.xlu2 %v4833_v60, %s2925_s12 }
 0x3c9   :  { %1987 = vrot.lane.b32.xlu1 %v4829_v20, %s2925_s12  ;;  %2003 = vrot.lane.b32.xlu0 %v4837_v17, %s2925_s12 }
 0x3ca   :  { %v4843_v42 = vpop.permute.xlu2 %1923 }
 0x3cb   :  { %v4841_v57 = vpop.permute.xlu1 %1768  ;;  %8431 = vst [vmem:[#allocation328_spill] sm:$0xff] %v4843_v42  ;;  %v4845_v45 = vpop.permute.xlu0 %1919  ;;  %v2927_v42 = vmov 4  }
 0x3cc   :  { %8430 = vst [vmem:[#allocation327_spill] sm:$0xff] %v4841_v57  ;;  %v1654_v57 = vmul.f32 %v4518_v11, %v1584_v39  ;;  %2741 = vset.pattern.permute.xlu0 %v2927_v42  ;;  %2742 = vset.pattern.permute.xlu1 %v2927_v42  ;;  %v4873_v39 = vld [vmem:[#allocation2 + $0xc8] sm:$0xff]  ;;  %v4925_v11 = vmul.f32 %v4462_v15, %v8446_v36 }
 0x3cd   :  { %8432 = vst [vmem:[#allocation329_spill] sm:$0xff] %v4845_v45  ;;  %2743 = vset.pattern.permute.xlu2 %v2927_v42  ;;  %v4892_v42 = vld [vmem:[#allocation2 + $0x108] sm:$0xff] }
 0x3ce   :  { %8447 = vst [vmem:[#allocation9_spill] sm:$0xff] %v4925_v11  ;;  %v8582_v11 = vld [vmem:[#allocation259_spill] sm:$0xff] }
 0x3d0   :  { %1995 = vrot.lane.b32.xlu2 %v4855_v41, %s2925_s12 }
 0x3d1   :  { %1993 = vrot.lane.b32.xlu1 %v4851_v28, %s2925_s12  ;;  %2009 = vrot.lane.b32.xlu0 %v2821_v19, %s2925_s12 }
 0x3d2   :  { %v4865_v54 = vpop.permute.xlu2 %1929 }
 0x3d3   :  { %v1781_v61 = vpop.permute.xlu1 %1780  ;;  %8433 = vst [vmem:[#allocation330_spill] sm:$0xff] %v4865_v54  ;;  %v4871_v56 = vpop.permute.xlu0 %1925 }
 0x3d4   :  { %v4867_v46 = vmul.f32 %v1781_v61, %v1552_v1  ;;  %v4869_v58 = vmul.f32 %v1781_v61, %v1654_v57  ;;  %8436 = vst [vmem:[#allocation333_spill] sm:$0xff] %v4871_v56  ;;  %v2824_v1 = vld [vmem:[#allocation2 + $0x148] sm:$0xff]  ;;  %v4888_v57 = vld [vmem:[#allocation2 + $0xf8] sm:$0xff] }
 0x3d6   :  { %8434 = vst [vmem:[#allocation331_spill] sm:$0xff] %v4867_v46 }
 0x3d7   :  { %8435 = vst [vmem:[#allocation332_spill] sm:$0xff] %v4869_v58  ;;  %v2827_v58 = vld [vmem:[#allocation2 + $0x178] sm:$0xff] }
 0x3d8   :  { %2001 = vrot.lane.b32.xlu2 %v4877_v55, %s2925_s12 }
 0x3d9   :  { %1999 = vrot.lane.b32.xlu1 %v4873_v39, %s2925_s12  ;;  %2015 = vrot.lane.b32.xlu0 %v2824_v1, %s2925_s12 }
 0x3da   :  { %v4884_v7 = vpop.permute.xlu2 %1935 }
 0x3db   :  { %v4882_v48 = vpop.permute.xlu1 %1915  ;;  %8437 = vst [vmem:[#allocation334_spill] sm:$0xff] %v4884_v7  ;;  %v4886_v61 = vpop.permute.xlu0 %1931 }
 0x3dc   :  { %8438 = vst [vmem:[#allocation335_spill] sm:$0xff] %v4886_v61  ;;  %v2829_v61 = vld [vmem:[#allocation2 + $0x138] sm:$0xff] }
 0x3e0   :  { %2007 = vrot.lane.b32.xlu2 %v4892_v42, %s2925_s12 }
 0x3e1   :  { %2005 = vrot.lane.b32.xlu1 %v4888_v57, %s2925_s12  ;;  %2021 = vrot.lane.b32.xlu0 %v2827_v58, %s2925_s12 }
 0x3e2   :  { %v4899_v54 = vpop.permute.xlu2 %1941 }
 0x3e3   :  { %v4897_v46 = vpop.permute.xlu1 %1921  ;;  %8440 = vst [vmem:[#allocation337_spill] sm:$0xff] %v4899_v54  ;;  %v4901_v7 = vpop.permute.xlu0 %1937  ;;  %v4915_v54 = vmul.f32 %v4417_v23, %v8444_v38 }
 0x3e4   :  { %8439 = vst [vmem:[#allocation336_spill] sm:$0xff] %v4897_v46  ;;  %v4929_v46 = vmul.f32 %v4737_v62, %v8446_v36  ;;  %v8456_v36 = vld [vmem:[#allocation13_spill] sm:$0xff] }
 0x3e5   :  { %8441 = vst [vmem:[#allocation338_spill] sm:$0xff] %v4901_v7  ;;  %v4919_v7 = vmul.f32 %v4808_v13, %v8444_v38  ;;  %v8452_v38 = vld [vmem:[#allocation11_spill] sm:$0xff] }
 0x3e6   :  { %8448 = vst [vmem:[#allocation341_spill] sm:$0xff] %v4929_v46  ;;  %v4941_v13 = vmul.f32 %v4509_v37, %v8452_v38  ;;  %v4945_v15 = vmul.f32 %v4813_v5, %v8452_v38  ;;  %v4961_v37 = vmul.f32 %v4768_v21, %v8456_v36  ;;  %v8460_v38 = vld [vmem:[#allocation15_spill] sm:$0xff] }
 0x3e8   :  { %2013 = vrot.lane.b32.xlu2 %v2829_v61, %s2925_s12  ;;  %8453 = vst [vmem:[#allocation11_spill] sm:$0xff] %v4941_v13 }
 0x3e9   :  { %2011 = vrot.lane.b32.xlu1 %v4903_v26, %s2925_s12  ;;  %2027 = vrot.lane.b32.xlu0 %v2830_v53, %s2925_s12  ;;  %8454 = vst [vmem:[#allocation343_spill] sm:$0xff] %v4945_v15  ;;  %v8552_v15 = vld [vmem:[#allocation125_spill] sm:$0xff] }
 0x3ea   :  { %v4911_v56 = vpop.permute.xlu2 %1947 }
 0x3eb   :  { %v4909_v2 = vpop.permute.xlu1 %1927  ;;  %8443 = vst [vmem:[#allocation340_spill] sm:$0xff] %v4911_v56  ;;  %v4921_v45 = vpop.permute.xlu0 %1943 }
 0x3ec   :  { %8442 = vst [vmem:[#allocation339_spill] sm:$0xff] %v4909_v2  ;;  %v8449_v2 = vld [vmem:[#allocation10_spill] sm:$0xff] }
 0x3ed   :  { %8445 = vst [vmem:[#allocation8_spill] sm:$0xff] %v4921_v45  ;;  %v4933_v56 = vmul.f32 %v4482_v8, %v8449_v2  ;;  %v4937_v23 = vmul.f32 %v4777_v34, %v8449_v2  ;;  %v8455_v45 = vld [vmem:[#allocation12_spill] sm:$0xff]  ;;  %v4957_v2 = vmul.f32 %v4430_v16, %v8456_v36  ;;  %v8457_v34 = vld [vmem:[#allocation14_spill] sm:$0xff]  ;;  %v4977_v16 = vmul.f32 %v4804_v0, %v8460_v38  ;;  %v8462_v36 = vld [vmem:[#allocation17_spill] sm:$0xff] }
 0x3ee   :  { %v4949_v62 = vmul.f32 %v4444_v63, %v8455_v45  ;;  %v4953_v8 = vmul.f32 %v4701_v33, %v8455_v45  ;;  %v4965_v5 = vmul.f32 %v4541_v50, %v8457_v34  ;;  %v4969_v63 = vmul.f32 %v4837_v17, %v8457_v34  ;;  %v8461_v45 = vld [vmem:[#allocation16_spill] sm:$0xff]  ;;  %v2831_v0 = vld [vmem:[#allocation2 + $0x158] sm:$0xff] }
 0x3ef   :  { %8450 = vst [vmem:[#allocation10_spill] sm:$0xff] %v4933_v56  ;;  %v4973_v33 = vmul.f32 %v4448_v35, %v8460_v38  ;;  %v4981_v21 = vmul.f32 %v4401_v22, %v8461_v45  ;;  %v4985_v50 = vmul.f32 %v4772_v44, %v8461_v45  ;;  %v4989_v17 = vmul.f32 %v4574_v40, %v8462_v36  ;;  %v8465_v35 = vld [vmem:[#allocation18_spill] sm:$0xff]  ;;  %v2832_v22 = vld [vmem:[#allocation2 + $0x168] sm:$0xff]  ;;  %v8466_v38 = vld [vmem:[#allocation19_spill] sm:$0xff] }
 0x3f0   :  { %8451 = vst [vmem:[#allocation342_spill] sm:$0xff] %v4937_v23  ;;  %v4992_v34 = vmul.f32 %v2821_v19, %v8462_v36  ;;  %2019 = vrot.lane.b32.xlu2 %v2832_v22, %s2925_s12  ;;  %v5002_v44 = vmul.f32 %v4833_v60, %v8465_v35  ;;  %v5006_v40 = vmul.f32 %v4466_v14, %v8466_v38  ;;  %v2833_v36 = vld [vmem:[#allocation2 + $0x1d8] sm:$0xff]  ;;  %v8569_v56 = vld [vmem:[#allocation129_spill] sm:$0xff] }
 0x3f1   :  { %8458 = vst [vmem:[#allocation12_spill] sm:$0xff] %v4965_v5  ;;  %2017 = vrot.lane.b32.xlu1 %v2831_v0, %s2925_s12  ;;  %v5010_v19 = vmul.f32 %v4829_v20, %v8466_v38  ;;  %2033 = vrot.lane.b32.xlu0 %v2833_v36, %s2925_s12  ;;  %v8472_v60 = vld [vmem:[#allocation23_spill] sm:$0xff]  ;;  %v8473_v20 = vld [vmem:[#allocation24_spill] sm:$0xff] }
 0x3f2   :  { %8459 = vst [vmem:[#allocation13_spill] sm:$0xff] %v4969_v63  ;;  %v4996_v63 = vmul.f32 %v4434_v29, %v8465_v35  ;;  %v8469_v29 = vld [vmem:[#allocation22_spill] sm:$0xff]  ;;  %v5022_v35 = vmul.f32 %v4452_v18, %v8472_v60  ;;  %v5026_v14 = vmul.f32 %v4855_v41, %v8472_v60  ;;  %v5030_v38 = vmul.f32 %v4486_v4, %v8473_v20  ;;  %v8481_v41 = vld [vmem:[#allocation29_spill] sm:$0xff]  ;;  %v8546_v5 = vld [vmem:[#allocation59_spill] sm:$0xff] }
 0x3f3   :  { %8463 = vst [vmem:[#allocation14_spill] sm:$0xff] %v4989_v17  ;;  %v5014_v45 = vmul.f32 %v4614_v30, %v8469_v29  ;;  %v5032_v30 = vpop.permute.xlu1 %1933  ;;  %v5049_v60 = vmul.f32 %v4470_v10, %v8481_v41  ;;  %v5051_v4 = vpop.permute.xlu0 %1949  ;;  %v8543_v17 = vld [vmem:[#allocation120_spill] sm:$0xff]  ;;  %v8566_v23 = vld [vmem:[#allocation71_spill] sm:$0xff] }
 0x3f4   :  { %8464 = vst [vmem:[#allocation15_spill] sm:$0xff] %v4992_v34  ;;  %v5018_v34 = vmul.f32 %v2824_v1, %v8469_v29  ;;  %v5038_v1 = vmul.f32 %v4851_v28, %v8473_v20  ;;  %v8478_v29 = vld [vmem:[#allocation28_spill] sm:$0xff] }
 0x3f5   :  { %8467 = vst [vmem:[#allocation16_spill] sm:$0xff] %v5006_v40  ;;  %v5042_v18 = vmul.f32 %v4654_v27, %v8478_v29  ;;  %v8581_v40 = vld [vmem:[#allocation134_spill] sm:$0xff] }
 0x3f6   :  { %8468 = vst [vmem:[#allocation17_spill] sm:$0xff] %v5010_v19 }
 0x3f7   :  { %8470 = vst [vmem:[#allocation18_spill] sm:$0xff] %v5014_v45  ;;  %v5034_v45 = vpop.permute.xlu2 %1953 }
 0x3f8   :  { %8471 = vst [vmem:[#allocation19_spill] sm:$0xff] %v5018_v34  ;;  %v5045_v34 = vmul.f32 %v2827_v58, %v8478_v29  ;;  %v8486_v58 = vld [vmem:[#allocation34_spill] sm:$0xff]  ;;  %v8489_v29 = vld [vmem:[#allocation35_spill] sm:$0xff] }
 0x3f9   :  { %8474 = vst [vmem:[#allocation22_spill] sm:$0xff] %v5030_v38  ;;  %v5067_v20 = vmul.f32 %v4694_v24, %v8486_v58  ;;  %v5070_v10 = vmul.f32 %v2830_v53, %v8486_v58  ;;  %v8495_v24 = vld [vmem:[#allocation40_spill] sm:$0xff]  ;;  %v8559_v38 = vld [vmem:[#allocation127_spill] sm:$0xff] }
 0x3fa   :  { %8475 = vst [vmem:[#allocation23_spill] sm:$0xff] %v5032_v30  ;;  %v8483_v30 = vld [vmem:[#allocation30_spill] sm:$0xff]  ;;  %v5090_v53 = vmul.f32 %v4731_v52, %v8495_v24 }
 0x3fb   :  { %8476 = vst [vmem:[#allocation24_spill] sm:$0xff] %v5034_v45  ;;  %v5055_v45 = vmul.f32 %v4877_v55, %v8481_v41  ;;  %v5059_v28 = vmul.f32 %v4513_v49, %v8483_v30  ;;  %v5063_v27 = vmul.f32 %v4873_v39, %v8483_v30  ;;  %v5078_v55 = vmul.f32 %v4892_v42, %v8489_v29  ;;  %v8492_v49 = vld [vmem:[#allocation36_spill] sm:$0xff] }
 0x3fc   :  { %8477 = vst [vmem:[#allocation344_spill] sm:$0xff] %v5038_v1  ;;  %v5082_v41 = vmul.f32 %v4545_v59, %v8492_v49  ;;  %v5086_v39 = vmul.f32 %v4888_v57, %v8492_v49  ;;  %v5093_v30 = vmul.f32 %v2833_v36, %v8495_v24  ;;  %v8501_v59 = vld [vmem:[#allocation42_spill] sm:$0xff]  ;;  %v8507_v49 = vld [vmem:[#allocation48_spill] sm:$0xff] }
 0x3fd   :  { %8479 = vst [vmem:[#allocation28_spill] sm:$0xff] %v5042_v18  ;;  %v5110_v52 = vmul.f32 %v4903_v26, %v8501_v59  ;;  %v8504_v57 = vld [vmem:[#allocation46_spill] sm:$0xff]  ;;  %v5123_v24 = vmul.f32 %v4618_v47, %v8507_v49  ;;  %v5126_v26 = vmul.f32 %v2831_v0, %v8507_v49  ;;  %v8518_v47 = vld [vmem:[#allocation72_spill] sm:$0xff] }
 0x3fe   :  { %8480 = vst [vmem:[#allocation345_spill] sm:$0xff] %v5045_v34  ;;  %v5114_v36 = vmul.f32 %v4549_v43, %v8504_v57  ;;  %v8520_v49 = vld [vmem:[#allocation78_spill] sm:$0xff]  ;;  %v2836_v34 = vld [vmem:[#allocation2 + $0x1c8] sm:$0xff] }
 0x3ff   :  { %8482 = vst [vmem:[#allocation29_spill] sm:$0xff] %v5051_v4  ;;  %v5074_v4 = vmul.f32 %v4490_v6, %v8489_v29  ;;  %v8498_v6 = vld [vmem:[#allocation41_spill] sm:$0xff]  ;;  %v5104_v29 = vmul.f32 %v4578_v31, %v8501_v59  ;;  %v2835_v31 = vld [vmem:[#allocation2 + $0x198] sm:$0xff] }
 0x400   :  { %8484 = vst [vmem:[#allocation30_spill] sm:$0xff] %v5059_v28  ;;  %v5097_v58 = vmul.f32 %v4520_v12, %v8498_v6  ;;  %v5100_v42 = vmul.f32 %v2829_v61, %v8498_v6  ;;  %v5117_v12 = vmul.f32 %v2832_v22, %v8504_v57  ;;  %v2834_v61 = vld [vmem:[#allocation2 + $0x188] sm:$0xff]  ;;  %2025 = vrot.lane.b32.xlu2 %v2835_v31, %s2925_s12  ;;  %v8510_v6 = vld [vmem:[#allocation52_spill] sm:$0xff]  ;;  %v8514_v57 = vld [vmem:[#allocation54_spill] sm:$0xff] }
 0x401   :  { %8485 = vst [vmem:[#allocation346_spill] sm:$0xff] %v5063_v27  ;;  %2023 = vrot.lane.b32.xlu1 %v2834_v61, %s2925_s12  ;;  %v5130_v43 = vmul.f32 %v4583_v25, %v8510_v6  ;;  %v5133_v22 = vmul.f32 %v2835_v31, %v8510_v6  ;;  %v8513_v59 = vld [vmem:[#allocation85_spill] sm:$0xff]  ;;  %v8521_v25 = vld [vmem:[#allocation111_spill] sm:$0xff]  ;;  %v5151_v6 = vpop.permute.xlu1 %1939 }
 0x402   :  { %8487 = vst [vmem:[#allocation34_spill] sm:$0xff] %v5067_v20  ;;  %2175 = vperm.xlu0 %2741, %v8513_v59   ;;  %v8519_v20 = vld [vmem:[#allocation108_spill] sm:$0xff]  ;;  %v519_v31 = vsel %vm482_vm2, %v8521_v25, %v8520_v49  ;;  %v5153_v59 = vpop.permute.xlu2 %1959  ;;  %v8551_v28 = vld [vmem:[#allocation65_spill] sm:$0xff] }
 0x403   :  { %8488 = vst [vmem:[#allocation347_spill] sm:$0xff] %v5070_v10  ;;  %v516_v0 = vsel %vm482_vm2, %v8519_v20, %v8518_v47 }
 0x404   :  { %8490 = vst [vmem:[#allocation35_spill] sm:$0xff] %v5074_v4 }
 0x405   :  { %8491 = vst [vmem:[#allocation348_spill] sm:$0xff] %v5078_v55 }
 0x406   :  { %8493 = vst [vmem:[#allocation36_spill] sm:$0xff] %v5082_v41  ;;  %v8544_v41 = vld [vmem:[#allocation76_spill] sm:$0xff] }
 0x407   :  { %8494 = vst [vmem:[#allocation349_spill] sm:$0xff] %v5086_v39  ;;  %v2838_v39 = vld [vmem:[#allocation2 + $0x1b8] sm:$0xff] }
 0x408   :  { %8496 = vst [vmem:[#allocation40_spill] sm:$0xff] %v5090_v53  ;;  %v8516_v53 = vmov 0.0   ;;  %2031 = vrot.lane.b32.xlu2 %v2836_v34, %s2925_s12 }
 0x409   :  { %8497 = vst [vmem:[#allocation350_spill] sm:$0xff] %v5093_v30  ;;  %v5138_v30 = vmul.f32 %v4658_v51, %v8514_v57  ;;  %v5141_v10 = vsel %vm547_vm3, 1.0, %v8516_v53  ;;  %v5156_v51 = vmul.f32 %v2834_v61, %v8514_v57  ;;  %v2837_v61 = vld [vmem:[#allocation2 + $0x1f8] sm:$0xff]  ;;  %2029 = vrot.lane.b32.xlu1 %v2838_v39, %s2925_s12 }
 0x40a   :  { %8499 = vst [vmem:[#allocation41_spill] sm:$0xff] %v5097_v58  ;;  %v8549_v39 = vld [vmem:[#allocation123_spill] sm:$0xff]  ;;  %v5287_v58 = vpop.permute.xlu1 %1945  ;;  %v5289_v1 = vpop.permute.xlu2 %1965 }
 0x40b   :  { %8500 = vst [vmem:[#allocation351_spill] sm:$0xff] %v5100_v42  ;;  %v524_v42 = vsel %vm482_vm2, %v8552_v15, %v8551_v28 }
 0x40c   :  { %8502 = vst [vmem:[#allocation42_spill] sm:$0xff] %v5104_v29  ;;  %v5169_v29 = vpop.permute.xlu0 %1955 }
 0x40d   :  { %8503 = vst [vmem:[#allocation352_spill] sm:$0xff] %v5110_v52 }
 0x40e   :  { %8505 = vst [vmem:[#allocation46_spill] sm:$0xff] %v5114_v36  ;;  %v8550_v36 = vld [vmem:[#allocation255_spill] sm:$0xff] }
 0x40f   :  { %8506 = vst [vmem:[#allocation353_spill] sm:$0xff] %v5117_v12  ;;  %v8547_v12 = vld [vmem:[#allocation122_spill] sm:$0xff]  ;;  %2195 = vperm.xlu0 %2741, %v8550_v36  }
 0x410   :  { %8508 = vst [vmem:[#allocation48_spill] sm:$0xff] %v5123_v24  ;;  %v8529_v24 = vld [vmem:[#allocation114_spill] sm:$0xff]  ;;  %2037 = vrot.lane.b32.xlu2 %v2837_v61, %s2925_s12 }
 0x411   :  { %8509 = vst [vmem:[#allocation354_spill] sm:$0xff] %v5126_v26  ;;  %v8528_v26 = vld [vmem:[#allocation84_spill] sm:$0xff] }
 0x412   :  { %8511 = vst [vmem:[#allocation52_spill] sm:$0xff] %v5130_v43  ;;  %v522_v52 = vsel %vm482_vm2, %v8529_v24, %v8528_v26 }
 0x413   :  { %8512 = vst [vmem:[#allocation355_spill] sm:$0xff] %v5133_v22  ;;  %v8541_v22 = vld [vmem:[#allocation119_spill] sm:$0xff] }
 0x414   :  { %8515 = vst [vmem:[#allocation85_spill] sm:$0xff] %v5138_v30  ;;  %v8525_v30 = vld [vmem:[#allocation58_spill] sm:$0xff]  ;;  %v5313_v13 = vpop.permute.xlu0 %1961 }
 0x415   :  { %8517 = vst [vmem:[#allocation54_spill] sm:$0xff] %v5141_v10  ;;  %v5160_v53 = vmul.f32 %v4623_v32, %v8525_v30  ;;  %v5163_v18 = vmul.f32 %v2836_v34, %v8525_v30  ;;  %v5182_v32 = vsel %vm482_vm2, %v8518_v47, %v8519_v20  ;;  %v8534_v30 = vld [vmem:[#allocation47_spill] sm:$0xff]  ;;  %v8537_v20 = vld [vmem:[#allocation117_spill] sm:$0xff] }
 0x416   :  { %8522 = vst [vmem:[#allocation72_spill] sm:$0xff] %v5151_v6  ;;  %v8531_v6 = vld [vmem:[#allocation64_spill] sm:$0xff] }
 0x417   :  { %8523 = vst [vmem:[#allocation108_spill] sm:$0xff] %v5153_v59  ;;  %v5173_v59 = vmul.f32 %v4663_v3, %v8531_v6  ;;  %v5176_v57 = vmul.f32 %v2837_v61, %v8531_v6  ;;  %v5195_v3 = vsel %vm482_vm2, %v8520_v49, %v8521_v25  ;;  %v5198_v6 = vmul.f32 %v5141_v10, %v519_v31 }
 0x418   :  { %8524 = vst [vmem:[#allocation78_spill] sm:$0xff] %v5156_v51  ;;  %v8535_v51 = vld [vmem:[#allocation116_spill] sm:$0xff]  ;;  %2207 = vperm.xlu0 %2741, %v8582_v11   ;;  %v8586_v11 = vld [vmem:[#allocation135_spill] sm:$0xff] }
 0x419   :  { %8526 = vst [vmem:[#allocation111_spill] sm:$0xff] %v5160_v53  ;;  %v5217_v49 = vsel %vm482_vm2, %v8534_v30, %v8535_v51  ;;  %v8540_v53 = vld [vmem:[#allocation53_spill] sm:$0xff] }
 0x41a   :  { %8527 = vst [vmem:[#allocation58_spill] sm:$0xff] %v5163_v18  ;;  %v515_v18 = vsel %vm482_vm2, %v8535_v51, %v8534_v30  ;;  %v518_v51 = vsel %vm482_vm2, %v8541_v22, %v8540_v53  ;;  %v8542_v30 = vld [vmem:[#allocation96_spill] sm:$0xff] }
 0x41b   :  { %8530 = vst [vmem:[#allocation84_spill] sm:$0xff] %v5169_v29  ;;  %v5189_v29 = vmul.f32 %v5141_v10, %v516_v0  ;;  %v5208_v0 = vsel %vm482_vm2, %v8528_v26, %v8529_v24  ;;  %v5226_v31 = vmul.f32 %v5141_v10, %v515_v18  ;;  %v8538_v24 = vld [vmem:[#allocation70_spill] sm:$0xff]  ;;  %v8539_v26 = vld [vmem:[#allocation121_spill] sm:$0xff]  ;;  %v528_v43 = vsel %vm482_vm2, %v8543_v17, %v8542_v30 }
 0x41c   :  { %8532 = vst [vmem:[#allocation114_spill] sm:$0xff] %v5173_v59  ;;  %v5211_v59 = vmul.f32 %v5141_v10, %v522_v52  ;;  %v517_v52 = vsel %vm482_vm2, %v8539_v26, %v8538_v24  ;;  %v5247_v18 = vsel %vm482_vm2, %v8540_v53, %v8541_v22  ;;  %v8545_v53 = vld [vmem:[#allocation124_spill] sm:$0xff]  ;;  %v5281_v27 = vmul.f32 %v5141_v10, %v528_v43 }
 0x41d   :  { %8533 = vst [vmem:[#allocation64_spill] sm:$0xff] %v5176_v57  ;;  %v8536_v57 = vld [vmem:[#allocation90_spill] sm:$0xff]  ;;  %v520_v22 = vsel %vm482_vm2, %v8545_v53, %v8544_v41  ;;  %v5295_v36 = vsel %vm482_vm2, %v8544_v41, %v8545_v53  ;;  %v5301_v43 = vsel %vm482_vm2, %v8546_v5, %v8547_v12 }
 0x41e   :  { %v525_v47 = vsel %vm482_vm2, %v8537_v20, %v8536_v57  ;;  %v5223_v25 = vsel %vm482_vm2, %v8536_v57, %v8537_v20  ;;  %v5253_v20 = vsel %vm482_vm2, %v8542_v30, %v8543_v17  ;;  %v521_v17 = vsel %vm482_vm2, %v8547_v12, %v8546_v5  ;;  %v8548_v30 = vld [vmem:[#allocation101_spill] sm:$0xff]  ;;  %8553 = vst [vmem:[#allocation47_spill] sm:$0xff] %v5287_v58  ;;  %v8558_v12 = vld [vmem:[#allocation82_spill] sm:$0xff] }
 0x41f   :  { %v5241_v57 = vmul.f32 %v5141_v10, %v525_v47  ;;  %v5261_v47 = vsel %vm482_vm2, %v8538_v24, %v8539_v26  ;;  %v531_v34 = vsel %vm482_vm2, %v8549_v39, %v8548_v30  ;;  %v557_v24 = vmul.f32 %v5141_v10, %v517_v52  ;;  %8554 = vst [vmem:[#allocation116_spill] sm:$0xff] %v5289_v1  ;;  %v8556_v1 = vld [vmem:[#allocation126_spill] sm:$0xff] }
 0x420   :  { %v5278_v26 = vmul.f32 %v5141_v10, %v518_v51  ;;  %v5307_v52 = vsel %vm482_vm2, %v8548_v30, %v8549_v39  ;;  %v8555_v51 = vld [vmem:[#allocation106_spill] sm:$0xff]  ;;  %8557 = vst [vmem:[#allocation90_spill] sm:$0xff] %v5313_v13  ;;  %v5316_v41 = vmul.f32 %v5141_v10, %v520_v22  ;;  %v5319_v53 = vmul.f32 %v5141_v10, %v521_v17 }
 0x421   :  { %v534_v58 = vsel %vm482_vm2, %v8556_v1, %v8555_v51  ;;  %v5322_v5 = vmul.f32 %v5141_v10, %v531_v34  ;;  %v523_v30 = vsel %vm482_vm2, %v8559_v38, %v8558_v12  ;;  %v5332_v39 = vsel %vm482_vm2, %v8558_v12, %v8559_v38  ;;  %v8564_v38 = vld [vmem:[#allocation88_spill] sm:$0xff]  ;;  %v8565_v12 = vld [vmem:[#allocation130_spill] sm:$0xff] }
 0x422   :  { %v5338_v22 = vsel %vm482_vm2, %v8551_v28, %v8552_v15  ;;  %v5341_v17 = vmul.f32 %v5141_v10, %v524_v42  ;;  %v5347_v34 = vsel %vm482_vm2, %v8555_v51, %v8556_v1  ;;  %v5350_v13 = vmul.f32 %v5141_v10, %v534_v58  ;;  %v8567_v15 = vld [vmem:[#allocation128_spill] sm:$0xff]  ;;  %v8568_v42 = vld [vmem:[#allocation109_spill] sm:$0xff] }
 0x423   :  { %8560 = vst [vmem:[#allocation117_spill] sm:$0xff] %v5338_v22  ;;  %v526_v55 = vsel %vm482_vm2, %v8565_v12, %v8564_v38  ;;  %v527_v28 = vsel %vm482_vm2, %v8567_v15, %v8566_v23  ;;  %v537_v4 = vsel %vm482_vm2, %v8569_v56, %v8568_v42  ;;  %v5365_v1 = vmul.f32 %v5141_v10, %v523_v30  ;;  %v8573_v30 = vld [vmem:[#allocation94_spill] sm:$0xff]  ;;  %v8575_v22 = vld [vmem:[#allocation77_spill] sm:$0xff] }
 0x424   :  { %8561 = vst [vmem:[#allocation70_spill] sm:$0xff] %v5341_v17  ;;  %v5371_v58 = vsel %vm482_vm2, %v8564_v38, %v8565_v12  ;;  %v5377_v51 = vsel %vm482_vm2, %v8566_v23, %v8567_v15  ;;  %v5383_v19 = vsel %vm482_vm2, %v8568_v42, %v8569_v56  ;;  %v8576_v38 = vld [vmem:[#allocation131_spill] sm:$0xff]  ;;  %v8578_v17 = vld [vmem:[#allocation132_spill] sm:$0xff]  ;;  %v2839_v15 = vld [vmem:[#allocation2 + $0x1e8] sm:$0xff]  ;;  %v5400_v56 = vmul.f32 %v5141_v10, %v526_v55 }
 0x425   :  { %8562 = vst [vmem:[#allocation121_spill] sm:$0xff] %v5347_v34  ;;  %v8574_v34 = vld [vmem:[#allocation133_spill] sm:$0xff]  ;;  %v530_v12 = vsel %vm482_vm2, %v8576_v38, %v8575_v22  ;;  %2035 = vrot.lane.b32.xlu1 %v2839_v15, %s2925_s12  ;;  %v5403_v42 = vmul.f32 %v5141_v10, %v527_v28  ;;  %v5423_v55 = vsel %vm482_vm2, %v8575_v22, %v8576_v38  ;;  %v8585_v28 = vld [vmem:[#allocation115_spill] sm:$0xff] }
 0x426   :  { %8563 = vst [vmem:[#allocation53_spill] sm:$0xff] %v5350_v13  ;;  %v529_v13 = vsel %vm482_vm2, %v8574_v34, %v8573_v30  ;;  %v5417_v61 = vsel %vm482_vm2, %v8573_v30, %v8574_v34  ;;  %v543_v15 = vsel %vm482_vm2, %v8586_v11, %v8585_v28  ;;  %v5437_v34 = vpop.permute.xlu2 %1971  ;;  %v5443_v22 = vmul.f32 %v5141_v10, %v530_v12 }
 0x427   :  { %8570 = vst [vmem:[#allocation119_spill] sm:$0xff] %v5371_v58  ;;  %v8577_v58 = vld [vmem:[#allocation112_spill] sm:$0xff]  ;;  %v5440_v30 = vmul.f32 %v5141_v10, %v529_v13 }
 0x428   :  { %8571 = vst [vmem:[#allocation96_spill] sm:$0xff] %v5377_v51  ;;  %v540_v23 = vsel %vm482_vm2, %v8578_v17, %v8577_v58  ;;  %v8580_v51 = vld [vmem:[#allocation83_spill] sm:$0xff] }
 0x429   :  { %8572 = vst [vmem:[#allocation120_spill] sm:$0xff] %v5383_v19  ;;  %v5406_v19 = vmul.f32 %v5141_v10, %v537_v4  ;;  %v533_v46 = vsel %vm482_vm2, %v8581_v40, %v8580_v51  ;;  %v5429_v4 = vsel %vm482_vm2, %v8577_v58, %v8578_v17  ;;  %v5446_v38 = vmul.f32 %v5141_v10, %v540_v23  ;;  %v8591_v17 = vld [vmem:[#allocation99_spill] sm:$0xff]  ;;  %v8592_v58 = vld [vmem:[#allocation136_spill] sm:$0xff] }
 0x42a   :  { %8583 = vst [vmem:[#allocation124_spill] sm:$0xff] %v5423_v55  ;;  %v5452_v55 = vpop.permute.xlu0 %1967  ;;  %v5464_v13 = vsel %vm482_vm2, %v8580_v51, %v8581_v40  ;;  %v5467_v12 = vmul.f32 %v5141_v10, %v533_v46  ;;  %v5473_v23 = vsel %vm482_vm2, %v8585_v28, %v8586_v11  ;;  %v8602_v40 = vld [vmem:[#allocation137_spill] sm:$0xff]  ;;  %v8603_v51 = vld [vmem:[#allocation118_spill] sm:$0xff] }
 0x42b   :  { %8579 = vst [vmem:[#allocation76_spill] sm:$0xff] %v5406_v19  ;;  %v5435_v19 = vpop.permute.xlu1 %1951 }
 0x42c   :  { %8584 = vst [vmem:[#allocation59_spill] sm:$0xff] %v5429_v4  ;;  %v532_v4 = vsel %vm482_vm2, %v8592_v58, %v8591_v17 }
 0x42d   :  { %8587 = vst [vmem:[#allocation122_spill] sm:$0xff] %v5435_v19  ;;  %v5491_v28 = vmul.f32 %v5141_v10, %v532_v4 }
 0x42e   :  { %8588 = vst [vmem:[#allocation101_spill] sm:$0xff] %v5437_v34  ;;  %v5458_v34 = vsel %vm482_vm2, %v8591_v17, %v8592_v58  ;;  %v8599_v17 = vld [vmem:[#allocation104_spill] sm:$0xff]  ;;  %v8600_v58 = vld [vmem:[#allocation139_spill] sm:$0xff] }
 0x42f   :  { %8589 = vst [vmem:[#allocation123_spill] sm:$0xff] %v5443_v22  ;;  %v535_v19 = vsel %vm482_vm2, %v8600_v58, %v8599_v17  ;;  %v5510_v4 = vsel %vm482_vm2, %v8599_v17, %v8600_v58  ;;  %v8615_v58 = vld [vmem:[#allocation79_spill] sm:$0xff] }
 0x430   :  { %8590 = vst [vmem:[#allocation255_spill] sm:$0xff] %v5446_v38  ;;  %v8611_v38 = vld [vmem:[#allocation142_spill] sm:$0xff]  ;;  %2179 = vperm.xlu1 %2742, %v8615_v58  }
 0x431   :  { %8593 = vst [vmem:[#allocation65_spill] sm:$0xff] %v5452_v55  ;;  %v5476_v55 = vmul.f32 %v5141_v10, %v543_v15  ;;  %v8621_v58 = vld [vmem:[#allocation262_spill] sm:$0xff] }
 0x432   :  { %8594 = vst [vmem:[#allocation125_spill] sm:$0xff] %v5458_v34  ;;  %v8601_v34 = vld [vmem:[#allocation89_spill] sm:$0xff]  ;;  %2219 = vperm.xlu0 %2741, %v8621_v58   ;;  %v8627_v58 = vld [vmem:[#allocation148_spill] sm:$0xff] }
 0x433   :  { %8595 = vst [vmem:[#allocation106_spill] sm:$0xff] %v5464_v13  ;;  %v536_v46 = vsel %vm482_vm2, %v8602_v40, %v8601_v34  ;;  %v8604_v13 = vld [vmem:[#allocation138_spill] sm:$0xff]  ;;  %v5497_v11 = vsel %vm482_vm2, %v8601_v34, %v8602_v40  ;;  %v8612_v40 = vld [vmem:[#allocation95_spill] sm:$0xff] }
 0x434   :  { %8596 = vst [vmem:[#allocation126_spill] sm:$0xff] %v5467_v12  ;;  %v546_v12 = vsel %vm482_vm2, %v8604_v13, %v8603_v51  ;;  %v5503_v15 = vsel %vm482_vm2, %v8603_v51, %v8604_v13  ;;  %v5526_v51 = vmul.f32 %v5141_v10, %v536_v46  ;;  %v8620_v46 = vld [vmem:[#allocation144_spill] sm:$0xff] }
 0x435   :  { %8597 = vst [vmem:[#allocation82_spill] sm:$0xff] %v5473_v23  ;;  %v8608_v23 = vld [vmem:[#allocation141_spill] sm:$0xff]  ;;  %v5529_v17 = vmul.f32 %v5141_v10, %v546_v12 }
 0x436   :  { %8598 = vst [vmem:[#allocation127_spill] sm:$0xff] %v5476_v55  ;;  %v749_v55 = vmul.f32 %v8608_v23, %v557_v24  ;;  %v750_v13 = vmul.f32 %v8608_v23, %v5261_v47  ;;  %v5523_v24 = vmul.f32 %v5141_v10, %v535_v19  ;;  %v8618_v47 = vld [vmem:[#allocation110_spill] sm:$0xff]  ;;  %v8619_v23 = vld [vmem:[#allocation145_spill] sm:$0xff] }
 0x437   :  { %8605 = vst [vmem:[#allocation88_spill] sm:$0xff] %v5491_v28  ;;  %v8610_v28 = vld [vmem:[#allocation107_spill] sm:$0xff]  ;;  %v541_v12 = vsel %vm482_vm2, %v8619_v23, %v8618_v47 }
 0x438   :  { %8606 = vst [vmem:[#allocation130_spill] sm:$0xff] %v5497_v11  ;;  %v538_v34 = vsel %vm482_vm2, %v8611_v38, %v8610_v28  ;;  %v8613_v11 = vld [vmem:[#allocation140_spill] sm:$0xff] }
 0x439   :  { %8607 = vst [vmem:[#allocation71_spill] sm:$0xff] %v5503_v15  ;;  %v539_v22 = vsel %vm482_vm2, %v8613_v11, %v8612_v40  ;;  %v8616_v15 = vld [vmem:[#allocation98_spill] sm:$0xff]  ;;  %v5543_v19 = vsel %vm482_vm2, %v8612_v40, %v8613_v11  ;;  %v754_v11 = vmul.f32 %v8620_v46, %v5195_v3  ;;  %v5563_v40 = vpop.permute.xlu1 %1957  ;;  %v8628_v3 = vld [vmem:[#allocation147_spill] sm:$0xff] }
 0x43a   :  { %8609 = vst [vmem:[#allocation128_spill] sm:$0xff] %v5510_v4  ;;  %2183 = vperm.xlu2 %2743, %v8616_v15   ;;  %v5537_v4 = vsel %vm482_vm2, %v8610_v28, %v8611_v38  ;;  %v753_v15 = vmul.f32 %v8620_v46, %v5198_v6  ;;  %v5556_v38 = vmul.f32 %v5141_v10, %v539_v22  ;;  %v8626_v22 = vld [vmem:[#allocation113_spill] sm:$0xff]  ;;  %v5582_v46 = vpop.permute.xlu0 %1973 }
 0x43b   :  { %8614 = vst [vmem:[#allocation109_spill] sm:$0xff] %v5529_v17  ;;  %v5553_v17 = vmul.f32 %v5141_v10, %v538_v34  ;;  %v5559_v28 = vadd.f32 %v749_v55, %v4949_v62  ;;  %v5568_v6 = vadd.f32 %v750_v13, %v4953_v8  ;;  %v5574_v34 = vsel %vm482_vm2, %v8618_v47, %v8619_v23  ;;  %v8630_v13 = vld [vmem:[#allocation149_spill] sm:$0xff] }
 0x43c   :  { %8617 = vst [vmem:[#allocation129_spill] sm:$0xff] %v5543_v19  ;;  %v5565_v19 = vpop.permute.xlu2 %1977  ;;  %v544_v62 = vsel %vm482_vm2, %v8627_v58, %v8626_v22  ;;  %v759_v55 = vmul.f32 %v8628_v3, %v5211_v59  ;;  %v760_v8 = vmul.f32 %v8628_v3, %v5208_v0  ;;  %v747_v47 = vmul.f32 %v8630_v13, %v5189_v29 }
 0x43d   :  { %8622 = vst [vmem:[#allocation94_spill] sm:$0xff] %v5559_v28  ;;  %v748_v23 = vmul.f32 %v8630_v13, %v5182_v32  ;;  %v5603_v0 = vadd.f32 %v754_v11, %v4919_v7  ;;  %v5609_v29 = vsel %vm482_vm2, %v8626_v22, %v8627_v58  ;;  %v8651_v13 = vld [vmem:[#allocation157_spill] sm:$0xff] }
 0x43e   :  { %8623 = vst [vmem:[#allocation133_spill] sm:$0xff] %v5563_v40  ;;  %v5594_v40 = vadd.f32 %v753_v15, %v4915_v54  ;;  %v5612_v54 = vmul.f32 %v5141_v10, %v544_v62  ;;  %v8635_v15 = vld [vmem:[#allocation153_spill] sm:$0xff]  ;;  %v5626_v22 = vadd.f32 %v760_v8, %v5002_v44  ;;  %v5629_v58 = vadd.f32 %v747_v47, %v4981_v21  ;;  %v8641_v44 = vld [vmem:[#allocation266_spill] sm:$0xff] }
 0x43f   :  { %8624 = vst [vmem:[#allocation77_spill] sm:$0xff] %v5565_v19  ;;  %v5585_v19 = vmul.f32 %v5141_v10, %v541_v12  ;;  %v771_v11 = vmul.f32 %v8635_v15, %v5281_v27  ;;  %v772_v21 = vmul.f32 %v8635_v15, %v5253_v20  ;;  %2231 = vperm.xlu0 %2741, %v8641_v44   ;;  %v8642_v62 = vld [vmem:[#allocation154_spill] sm:$0xff]  ;;  %v8695_v10 = vld [vmem:[#allocation336_spill] sm:$0xff] }
 0x440   :  { %8625 = vst [vmem:[#allocation131_spill] sm:$0xff] %v5568_v6  ;;  %v8631_v6 = vld [vmem:[#allocation151_spill] sm:$0xff]  ;;  %v755_v3 = vmul.f32 %v8642_v62, %v5316_v41  ;;  %v761_v47 = vmul.f32 %v8651_v13, %v5365_v1  ;;  %v8659_v1 = vld [vmem:[#allocation160_spill] sm:$0xff] }
 0x441   :  { %8629 = vst [vmem:[#allocation112_spill] sm:$0xff] %v5582_v46  ;;  %v745_v59 = vmul.f32 %v8631_v6, %v5226_v31  ;;  %v8632_v46 = vld [vmem:[#allocation150_spill] sm:$0xff]  ;;  %v746_v32 = vmul.f32 %v8631_v6, %v5217_v49  ;;  %v5617_v31 = vadd.f32 %v759_v55, %v4996_v63  ;;  %v5632_v49 = vadd.f32 %v748_v23, %v4985_v50  ;;  %v8637_v63 = vld [vmem:[#allocation97_spill] sm:$0xff]  ;;  %v5657_v55 = vpop.permute.xlu1 %1963 }
 0x442   :  { %v765_v28 = vmul.f32 %v8632_v46, %v5241_v57  ;;  %v766_v12 = vmul.f32 %v8632_v46, %v5223_v25  ;;  %v8634_v25 = vld [vmem:[#allocation152_spill] sm:$0xff]  ;;  %8636 = vst [vmem:[#allocation83_spill] sm:$0xff] %v5626_v22  ;;  %2187 = vperm.xlu1 %2742, %v8637_v63   ;;  %v8638_v6 = vld [vmem:[#allocation254_spill] sm:$0xff]  ;;  %v1980_v41 = vpop.permute.xlu0 %1979  ;;  %v8652_v23 = vld [vmem:[#allocation9_spill] sm:$0xff]  ;;  %v767_v15 = vmul.f32 %v8659_v1, %v5400_v56 }
 0x443   :  { %8633 = vst [vmem:[#allocation132_spill] sm:$0xff] %v5617_v31  ;;  %v751_v57 = vmul.f32 %v8634_v25, %v5278_v26  ;;  %v752_v7 = vmul.f32 %v8634_v25, %v5247_v18  ;;  %2191 = vperm.xlu2 %2743, %v8638_v6   ;;  %v5637_v26 = vadd.f32 %v745_v59, %v4957_v2  ;;  %v8661_v63 = vld [vmem:[#allocation53_spill] sm:$0xff]  ;;  %v8669_v56 = vld [vmem:[#allocation258_spill] sm:$0xff] }
 0x444   :  { %v5640_v18 = vadd.f32 %v765_v28, %v5022_v35  ;;  %v5643_v27 = vadd.f32 %v766_v12, %v5026_v14  ;;  %v5649_v50 = vadd.f32 %v746_v32, %v4961_v37  ;;  %v756_v2 = vmul.f32 %v8642_v62, %v5295_v36  ;;  %v8643_v35 = vld [vmem:[#allocation155_spill] sm:$0xff]  ;;  %8644 = vst [vmem:[#allocation115_spill] sm:$0xff] %v5657_v55  ;;  %v5659_v14 = vpop.permute.xlu2 %1983  ;;  %v8654_v12 = vld [vmem:[#allocation341_spill] sm:$0xff]  ;;  %v8822_v55 = vld [vmem:[#allocation72_spill] sm:$0xff] }
 0x445   :  { %v757_v28 = vmul.f32 %v8643_v35, %v5319_v53  ;;  %8645 = vst [vmem:[#allocation135_spill] sm:$0xff] %v5659_v14  ;;  %v5662_v20 = vadd.f32 %v751_v57, %v4973_v33  ;;  %v5665_v46 = vadd.f32 %v752_v7, %v4977_v16  ;;  %v5668_v37 = vadd.f32 %v771_v11, %v5049_v60  ;;  %v8647_v53 = vld [vmem:[#allocation156_spill] sm:$0xff]  ;;  %v8658_v57 = vld [vmem:[#allocation158_spill] sm:$0xff]  ;;  %v8660_v11 = vld [vmem:[#allocation117_spill] sm:$0xff] }
 0x446   :  { %8639 = vst [vmem:[#allocation134_spill] sm:$0xff] %v5640_v18  ;;  %v758_v36 = vmul.f32 %v8643_v35, %v5301_v43  ;;  %v777_v8 = vmul.f32 %v8647_v53, %v5322_v5  ;;  %v5678_v33 = vsel %vm2039_vm4, %v4882_v48, %v1980_v41  ;;  %v5683_v16 = vsel %vm2039_vm4, %v1980_v41, %v4882_v48  ;;  %v8656_v48 = vld [vmem:[#allocation16_spill] sm:$0xff]  ;;  %v8664_v62 = vld [vmem:[#allocation17_spill] sm:$0xff] }
 0x447   :  { %8640 = vst [vmem:[#allocation259_spill] sm:$0xff] %v5643_v27  ;;  %v5686_v60 = vadd.f32 %v772_v21, %v5055_v45  ;;  %v762_v43 = vmul.f32 %v8651_v13, %v5332_v39  ;;  %v778_v5 = vmul.f32 %v8647_v53, %v5307_v52  ;;  %v5695_v59 = vadd.f32 %v755_v3, %v8652_v23  ;;  %v8657_v45 = vld [vmem:[#allocation70_spill] sm:$0xff]  ;;  %v8662_v52 = vld [vmem:[#allocation159_spill] sm:$0xff]  ;;  %v8663_v21 = vld [vmem:[#allocation121_spill] sm:$0xff] }
 0x448   :  { %8646 = vst [vmem:[#allocation99_spill] sm:$0xff] %v5668_v37  ;;  %v5698_v32 = vadd.f32 %v756_v2, %v8654_v12  ;;  %v5701_v25 = vadd.f32 %v757_v28, %v8656_v48  ;;  %v763_v7 = vmul.f32 %v8658_v57, %v8657_v45  ;;  %v764_v39 = vmul.f32 %v8658_v57, %v8660_v11  ;;  %v8665_v2 = vld [vmem:[#allocation35_spill] sm:$0xff]  ;;  %v8670_v13 = vld [vmem:[#allocation10_spill] sm:$0xff]  ;;  %v8674_v45 = vld [vmem:[#allocation348_spill] sm:$0xff] }
 0x449   :  { %8648 = vst [vmem:[#allocation136_spill] sm:$0xff] %v5678_v33  ;;  %v783_v6 = vmul.f32 %v8662_v52, %v8661_v63  ;;  %v784_v44 = vmul.f32 %v8662_v52, %v8663_v21  ;;  %v5714_v3 = vadd.f32 %v758_v36, %v8664_v62  ;;  %v5717_v35 = vadd.f32 %v777_v8, %v8665_v2  ;;  %v8667_v28 = vld [vmem:[#allocation119_spill] sm:$0xff]  ;;  %v8672_v12 = vld [vmem:[#allocation342_spill] sm:$0xff]  ;;  %v8676_v36 = vld [vmem:[#allocation161_spill] sm:$0xff] }
 0x44a   :  { %8649 = vst [vmem:[#allocation104_spill] sm:$0xff] %v5683_v16  ;;  %v768_v41 = vmul.f32 %v8659_v1, %v8667_v28  ;;  %v8668_v53 = vld [vmem:[#allocation91_spill] sm:$0xff]  ;;  %v5724_v23 = vadd.f32 %v761_v47, %v8670_v13  ;;  %v5727_v48 = vadd.f32 %v762_v43, %v8672_v12  ;;  %v5730_v57 = vadd.f32 %v778_v5, %v8674_v45  ;;  %v8677_v11 = vld [vmem:[#allocation269_spill] sm:$0xff]  ;;  %v8678_v63 = vld [vmem:[#allocation22_spill] sm:$0xff] }
 0x44b   :  { %8650 = vst [vmem:[#allocation139_spill] sm:$0xff] %v5686_v60  ;;  %2199 = vperm.xlu1 %2742, %v8668_v53   ;;  %2203 = vperm.xlu2 %2743, %v8669_v56   ;;  %v769_v8 = vmul.f32 %v8676_v36, %v5403_v42  ;;  %v5736_v1 = vadd.f32 %v763_v7, %v8678_v63  ;;  %v8679_v52 = vld [vmem:[#allocation96_spill] sm:$0xff]  ;;  %v8681_v47 = vld [vmem:[#allocation162_spill] sm:$0xff]  ;;  %v5744_v53 = vpop.permute.xlu1 %1969  ;;  %v8685_v56 = vld [vmem:[#allocation11_spill] sm:$0xff]  ;;  %v1986_v63 = vpop.permute.xlu0 %1985 }
 0x44c   :  { %8653 = vst [vmem:[#allocation89_spill] sm:$0xff] %v5695_v59  ;;  %2243 = vperm.xlu0 %2741, %v8677_v11   ;;  %v770_v21 = vmul.f32 %v8676_v36, %v8679_v52  ;;  %v8680_v62 = vld [vmem:[#allocation76_spill] sm:$0xff]  ;;  %v5746_v5 = vpop.permute.xlu2 %1989  ;;  %v5749_v42 = vadd.f32 %v767_v15, %v8685_v56  ;;  %v8688_v7 = vld [vmem:[#allocation41_spill] sm:$0xff]  ;;  %v8690_v36 = vld [vmem:[#allocation351_spill] sm:$0xff]  ;;  %v5768_v15 = vsel %vm2039_vm4, %v8695_v10, %v1986_v63 }
 0x44d   :  { %8655 = vst [vmem:[#allocation137_spill] sm:$0xff] %v5698_v32  ;;  %v789_v2 = vmul.f32 %v8681_v47, %v8680_v62  ;;  %v8682_v28 = vld [vmem:[#allocation120_spill] sm:$0xff]  ;;  %v5755_v45 = vadd.f32 %v783_v6, %v8688_v7  ;;  %v5758_v11 = vadd.f32 %v784_v44, %v8690_v36  ;;  %v8692_v52 = vld [vmem:[#allocation343_spill] sm:$0xff]  ;;  %v8698_v44 = vld [vmem:[#allocation30_spill] sm:$0xff] }
 0x44e   :  { %8666 = vst [vmem:[#allocation118_spill] sm:$0xff] %v5717_v35  ;;  %v790_v43 = vmul.f32 %v8681_v47, %v8682_v28  ;;  %v8687_v13 = vld [vmem:[#allocation344_spill] sm:$0xff]  ;;  %v5761_v62 = vadd.f32 %v768_v41, %v8692_v52  ;;  %v8694_v47 = vld [vmem:[#allocation163_spill] sm:$0xff]  ;;  %v5778_v56 = vadd.f32 %v769_v8, %v8698_v44  ;;  %v8702_v52 = vld [vmem:[#allocation346_spill] sm:$0xff] }
 0x44f   :  { %8671 = vst [vmem:[#allocation138_spill] sm:$0xff] %v5724_v23  ;;  %v5752_v12 = vadd.f32 %v764_v39, %v8687_v13  ;;  %v773_v28 = vmul.f32 %v8694_v47, %v5440_v30  ;;  %v5773_v39 = vsel %vm2039_vm4, %v1986_v63, %v8695_v10  ;;  %v774_v6 = vmul.f32 %v8694_v47, %v5417_v61  ;;  %v8699_v41 = vld [vmem:[#allocation123_spill] sm:$0xff]  ;;  %v8700_v13 = vld [vmem:[#allocation164_spill] sm:$0xff]  ;;  %v8705_v10 = vld [vmem:[#allocation353_spill] sm:$0xff] }
 0x450   :  { %8673 = vst [vmem:[#allocation141_spill] sm:$0xff] %v5727_v48  ;;  %v775_v7 = vmul.f32 %v8700_v13, %v8699_v41  ;;  %v8701_v30 = vld [vmem:[#allocation124_spill] sm:$0xff]  ;;  %v5791_v63 = vadd.f32 %v790_v43, %v8705_v10  ;;  %v8708_v61 = vld [vmem:[#allocation165_spill] sm:$0xff]  ;;  %v8710_v44 = vld [vmem:[#allocation166_spill] sm:$0xff] }
 0x451   :  { %8675 = vst [vmem:[#allocation107_spill] sm:$0xff] %v5730_v57  ;;  %v776_v36 = vmul.f32 %v8700_v13, %v8701_v30  ;;  %v8709_v8 = vld [vmem:[#allocation88_spill] sm:$0xff]  ;;  %v8711_v16 = vld [vmem:[#allocation125_spill] sm:$0xff]  ;;  %v8714_v30 = vld [vmem:[#allocation167_spill] sm:$0xff] }
 0x452   :  { %8683 = vst [vmem:[#allocation142_spill] sm:$0xff] %v5744_v53  ;;  %v779_v33 = vmul.f32 %v8710_v44, %v8709_v8  ;;  %v780_v41 = vmul.f32 %v8710_v44, %v8711_v16  ;;  %v8712_v53 = vld [vmem:[#allocation59_spill] sm:$0xff]  ;;  %v8717_v43 = vld [vmem:[#allocation106_spill] sm:$0xff]  ;;  %v2840_v8 = vld [vmem:[%s7562_s1 + $0x48] sm:$0xff] }
 0x453   :  { %8684 = vst [vmem:[#allocation95_spill] sm:$0xff] %v5746_v5  ;;  %v5785_v5 = vadd.f32 %v770_v21, %v8702_v52  ;;  %v796_v13 = vmul.f32 %v8708_v61, %v8712_v53  ;;  %v8713_v21 = vld [vmem:[#allocation126_spill] sm:$0xff]  ;;  %v782_v10 = vmul.f32 %v8714_v30, %v8717_v43  ;;  %2211 = vperm.xlu1 %2742, %v2840_v8   ;;  %v8720_v53 = vld [vmem:[#allocation13_spill] sm:$0xff]  ;;  %v8727_v43 = vld [vmem:[#allocation271_spill] sm:$0xff] }
 0x454   :  { %8686 = vst [vmem:[#allocation140_spill] sm:$0xff] %v5749_v42  ;;  %v781_v52 = vmul.f32 %v8714_v30, %v8713_v21  ;;  %v2841_v16 = vld [vmem:[%s7562_s1 + $0x50] sm:$0xff]  ;;  %v8724_v21 = vld [vmem:[#allocation349_spill] sm:$0xff]  ;;  %2255 = vperm.xlu0 %2741, %v8727_v43   ;;  %v8728_v8 = vld [vmem:[#allocation52_spill] sm:$0xff] }
 0x455   :  { %8689 = vst [vmem:[#allocation79_spill] sm:$0xff] %v5755_v45  ;;  %2215 = vperm.xlu2 %2743, %v2841_v16   ;;  %v5823_v30 = vadd.f32 %v776_v36, %v8724_v21  ;;  %v8730_v45 = vld [vmem:[#allocation169_spill] sm:$0xff]  ;;  %v5839_v36 = vpop.permute.xlu2 %1995  ;;  %v8735_v21 = vld [vmem:[#allocation14_spill] sm:$0xff]  ;;  %v8816_v35 = vld [vmem:[#allocation180_spill] sm:$0xff] }
 0x456   :  { %8691 = vst [vmem:[#allocation98_spill] sm:$0xff] %v5758_v11  ;;  %v785_v16 = vmul.f32 %v8730_v45, %v5523_v24  ;;  %v8741_v24 = vld [vmem:[#allocation42_spill] sm:$0xff]  ;;  %v8818_v42 = vld [vmem:[#allocation191_spill] sm:$0xff]  ;;  %v8835_v18 = vld [vmem:[#allocation225_spill] sm:$0xff] }
 0x457   :  { %8693 = vst [vmem:[#allocation110_spill] sm:$0xff] %v5761_v62  ;;  %v8817_v62 = vld [vmem:[#allocation217_spill] sm:$0xff]  ;;  %v8819_v60 = vld [vmem:[#allocation219_spill] sm:$0xff]  ;;  %v8830_v23 = vld [vmem:[#allocation222_spill] sm:$0xff] }
 0x458   :  { %8696 = vst [vmem:[#allocation145_spill] sm:$0xff] %v5768_v15  ;;  %v8703_v15 = vld [vmem:[#allocation46_spill] sm:$0xff] }
 0x459   :  { %8697 = vst [vmem:[#allocation144_spill] sm:$0xff] %v5773_v39  ;;  %v5788_v14 = vadd.f32 %v789_v2, %v8703_v15  ;;  %v8707_v39 = vld [vmem:[#allocation255_spill] sm:$0xff]  ;;  %v8715_v2 = vld [vmem:[#allocation12_spill] sm:$0xff]  ;;  %v2848_v32 = vld [vmem:[%s7562_s1 + $0x90] sm:$0xff] }
 0x45a   :  { %8706 = vst [vmem:[#allocation113_spill] sm:$0xff] %v5791_v63  ;;  %v795_v47 = vmul.f32 %v8708_v61, %v8707_v39  ;;  %v5804_v15 = vadd.f32 %v773_v28, %v8715_v2  ;;  %v8718_v63 = vld [vmem:[#allocation127_spill] sm:$0xff]  ;;  %v8719_v39 = vld [vmem:[#allocation168_spill] sm:$0xff]  ;;  %v5817_v61 = vadd.f32 %v774_v6, %v8720_v53 }
 0x45b   :  { %8704 = vst [vmem:[#allocation262_spill] sm:$0xff] %v5788_v14  ;;  %v801_v14 = vmul.f32 %v8719_v39, %v8718_v63  ;;  %v8722_v28 = vld [vmem:[#allocation36_spill] sm:$0xff]  ;;  %v8726_v63 = vld [vmem:[#allocation82_spill] sm:$0xff] }
 0x45c   :  { %8716 = vst [vmem:[#allocation148_spill] sm:$0xff] %v5804_v15  ;;  %v5820_v44 = vadd.f32 %v775_v7, %v8722_v28  ;;  %v802_v2 = vmul.f32 %v8719_v39, %v8726_v63  ;;  %v5829_v11 = vadd.f32 %v795_v47, %v8728_v8  ;;  %v8731_v15 = vld [vmem:[#allocation128_spill] sm:$0xff]  ;;  %v8732_v7 = vld [vmem:[#allocation170_spill] sm:$0xff]  ;;  %v5837_v28 = vpop.permute.xlu1 %1975  ;;  %v5842_v39 = vadd.f32 %v779_v33, %v8735_v21  ;;  %v8737_v63 = vld [vmem:[#allocation15_spill] sm:$0xff] }
 0x45d   :  { %8721 = vst [vmem:[#allocation147_spill] sm:$0xff] %v5817_v61  ;;  %v786_v6 = vmul.f32 %v8730_v45, %v8731_v15  ;;  %v787_v53 = vmul.f32 %v8732_v7, %v5526_v51  ;;  %v5845_v43 = vadd.f32 %v780_v41, %v8737_v63  ;;  %v8739_v47 = vld [vmem:[#allocation355_spill] sm:$0xff]  ;;  %v5853_v45 = vpop.permute.xlu0 %1991  ;;  %v8744_v15 = vld [vmem:[#allocation352_spill] sm:$0xff]  ;;  %v8749_v21 = vld [vmem:[#allocation109_spill] sm:$0xff] }
 0x45e   :  { %8723 = vst [vmem:[#allocation149_spill] sm:$0xff] %v5820_v44  ;;  %v5848_v8 = vadd.f32 %v796_v13, %v8739_v47  ;;  %v5856_v51 = vadd.f32 %v782_v10, %v8744_v15  ;;  %v8750_v41 = vld [vmem:[#allocation171_spill] sm:$0xff]  ;;  %v8832_v44 = vld [vmem:[#allocation186_spill] sm:$0xff] }
 0x45f   :  { %8725 = vst [vmem:[#allocation151_spill] sm:$0xff] %v5823_v30  ;;  %v807_v63 = vmul.f32 %v8750_v41, %v8749_v21  ;;  %v8754_v10 = vld [vmem:[#allocation71_spill] sm:$0xff] }
 0x460   :  { %8729 = vst [vmem:[#allocation150_spill] sm:$0xff] %v5829_v11  ;;  %v5851_v11 = vadd.f32 %v781_v52, %v8741_v24  ;;  %v8753_v52 = vld [vmem:[#allocation172_spill] sm:$0xff]  ;;  %v808_v15 = vmul.f32 %v8750_v41, %v8754_v10 }
 0x461   :  { %8733 = vst [vmem:[#allocation152_spill] sm:$0xff] %v5837_v28  ;;  %v8746_v28 = vld [vmem:[#allocation111_spill] sm:$0xff]  ;;  %v791_v47 = vmul.f32 %v8753_v52, %v5553_v17  ;;  %v792_v24 = vmul.f32 %v8753_v52, %v5537_v4  ;;  %v8762_v4 = vld [vmem:[#allocation178_spill] sm:$0xff] }
 0x462   :  { %8734 = vst [vmem:[#allocation153_spill] sm:$0xff] %v5839_v36  ;;  %v5859_v61 = vadd.f32 %v801_v14, %v8746_v28  ;;  %v8748_v36 = vld [vmem:[#allocation130_spill] sm:$0xff]  ;;  %v803_v52 = vmul.f32 %v8762_v4, %v5612_v54  ;;  %v8767_v54 = vld [vmem:[#allocation28_spill] sm:$0xff] }
 0x463   :  { %8736 = vst [vmem:[#allocation97_spill] sm:$0xff] %v5842_v39  ;;  %v788_v33 = vmul.f32 %v8732_v7, %v8748_v36  ;;  %v8755_v14 = vld [vmem:[#allocation18_spill] sm:$0xff]  ;;  %v8759_v36 = vld [vmem:[#allocation48_spill] sm:$0xff]  ;;  %v5906_v10 = vadd.f32 %v791_v47, %v8767_v54  ;;  %v8777_v47 = vld [vmem:[#allocation129_spill] sm:$0xff] }
 0x464   :  { %8738 = vst [vmem:[#allocation254_spill] sm:$0xff] %v5845_v43  ;;  %v8751_v43 = vld [vmem:[#allocation58_spill] sm:$0xff]  ;;  %v5875_v28 = vadd.f32 %v785_v16, %v8755_v14  ;;  %v5881_v21 = vadd.f32 %v787_v53, %v8759_v36  ;;  %v804_v53 = vmul.f32 %v8762_v4, %v5609_v29  ;;  %v8773_v29 = vld [vmem:[#allocation173_spill] sm:$0xff]  ;;  %v2844_v4 = vld [vmem:[%s7562_s1 + $0xb8] sm:$0xff] }
 0x465   :  { %8740 = vst [vmem:[#allocation266_spill] sm:$0xff] %v5848_v8  ;;  %v5866_v13 = vadd.f32 %v802_v2, %v8751_v43  ;;  %v8761_v2 = vld [vmem:[#allocation175_spill] sm:$0xff]  ;;  %v8763_v16 = vld [vmem:[#allocation354_spill] sm:$0xff]  ;;  %2267 = vperm.xlu0 %2741, %v2844_v4  }
 0x466   :  { %8742 = vst [vmem:[#allocation154_spill] sm:$0xff] %v5851_v11  ;;  %v797_v43 = vmul.f32 %v8761_v2, %v5585_v19  ;;  %v798_v17 = vmul.f32 %v8761_v2, %v5574_v34  ;;  %v5892_v41 = vadd.f32 %v788_v33, %v8763_v16  ;;  %v2842_v19 = vld [vmem:[%s7562_s1 + $0x60] sm:$0xff]  ;;  %v2843_v34 = vld [vmem:[%s7562_s1 + $0x68] sm:$0xff]  ;;  %v5916_v2 = vmul.f32 %v8773_v29, %v5556_v38  ;;  %v8775_v16 = vld [vmem:[#allocation34_spill] sm:$0xff] }
 0x467   :  { %8743 = vst [vmem:[#allocation155_spill] sm:$0xff] %v5853_v45  ;;  %2223 = vperm.xlu1 %2742, %v2842_v19   ;;  %2227 = vperm.xlu2 %2743, %v2843_v34   ;;  %v8769_v33 = vld [vmem:[#allocation345_spill] sm:$0xff]  ;;  %v5926_v19 = vmul.f32 %v8773_v29, %v8777_v47  ;;  %v8782_v38 = vld [vmem:[#allocation200_spill] sm:$0xff]  ;;  %v8813_v39 = vld [vmem:[#allocation215_spill] sm:$0xff] }
 0x468   :  { %8745 = vst [vmem:[#allocation156_spill] sm:$0xff] %v5856_v51  ;;  %v5909_v14 = vadd.f32 %v792_v24, %v8769_v33  ;;  %v8779_v24 = vmov 0.0   ;;  %v8781_v34 = vld [vmem:[#allocation181_spill] sm:$0xff]  ;;  %v5937_v33 = vpop.permute.xlu1 %1981  ;;  %v8789_v47 = vld [vmem:[#allocation184_spill] sm:$0xff] }
 0x469   :  { %8747 = vst [vmem:[#allocation157_spill] sm:$0xff] %v5859_v61  ;;  %v8757_v61 = vld [vmem:[#allocation19_spill] sm:$0xff]  ;;  %v1034_v54 = vsel %vm1001_vm5, %v8782_v38, %v8781_v34 }
 0x46a   :  { %8752 = vst [vmem:[#allocation9_spill] sm:$0xff] %v5866_v13  ;;  %v5878_v7 = vadd.f32 %v786_v6, %v8757_v61  ;;  %v8765_v61 = vld [vmem:[#allocation114_spill] sm:$0xff] }
 0x46b   :  { %8756 = vst [vmem:[#allocation341_spill] sm:$0xff] %v5875_v28  ;;  %v5895_v6 = vadd.f32 %v807_v63, %v8765_v61  ;;  %v8771_v63 = vld [vmem:[#allocation64_spill] sm:$0xff]  ;;  %v5922_v61 = vadd.f32 %v797_v43, %v8775_v16  ;;  %v8785_v43 = vld [vmem:[#allocation347_spill] sm:$0xff] }
 0x46c   :  { %8758 = vst [vmem:[#allocation16_spill] sm:$0xff] %v5878_v7  ;;  %v5912_v36 = vadd.f32 %v808_v15, %v8771_v63  ;;  %v5931_v15 = vsel %vm1066_vm6, 1.0, %v8779_v24  ;;  %v5939_v63 = vpop.permute.xlu2 %2001  ;;  %v5942_v4 = vadd.f32 %v798_v17, %v8785_v43  ;;  %v8787_v16 = vld [vmem:[#allocation40_spill] sm:$0xff]  ;;  %v5962_v17 = vsel %vm1001_vm5, %v8781_v34, %v8782_v38  ;;  %v8799_v34 = vld [vmem:[#allocation210_spill] sm:$0xff]  ;;  %v8806_v7 = vld [vmem:[#allocation193_spill] sm:$0xff] }
 0x46d   :  { %8760 = vst [vmem:[#allocation70_spill] sm:$0xff] %v5881_v21  ;;  %v5945_v29 = vadd.f32 %v803_v52, %v8787_v16  ;;  %v1998_v21 = vpop.permute.xlu0 %1997  ;;  %v8795_v52 = vld [vmem:[#allocation23_spill] sm:$0xff]  ;;  %v8807_v28 = vld [vmem:[#allocation212_spill] sm:$0xff]  ;;  %v8812_v24 = vld [vmem:[#allocation194_spill] sm:$0xff] }
 0x46e   :  { %8764 = vst [vmem:[#allocation158_spill] sm:$0xff] %v5892_v41  ;;  %v5967_v43 = vsel %vm2039_vm4, %v8795_v52, %v1998_v21  ;;  %v5972_v16 = vsel %vm2039_vm4, %v1998_v21, %v8795_v52 }
 0x46f   :  { %8766 = vst [vmem:[#allocation160_spill] sm:$0xff] %v5895_v6  ;;  %v8792_v6 = vld [vmem:[#allocation206_spill] sm:$0xff] }
 0x470   :  { %8768 = vst [vmem:[#allocation117_spill] sm:$0xff] %v5906_v10 }
 0x471   :  { %8770 = vst [vmem:[#allocation53_spill] sm:$0xff] %v5909_v14  ;;  %v8803_v14 = vld [vmem:[#allocation211_spill] sm:$0xff] }
 0x472   :  { %8772 = vst [vmem:[#allocation159_spill] sm:$0xff] %v5912_v36  ;;  %v8791_v36 = vld [vmem:[#allocation187_spill] sm:$0xff] }
 0x473   :  { %8774 = vst [vmem:[#allocation121_spill] sm:$0xff] %v5916_v2  ;;  %v1040_v41 = vsel %vm1001_vm5, %v8792_v6, %v8791_v36 }
 0x474   :  { %8776 = vst [vmem:[#allocation17_spill] sm:$0xff] %v5922_v61  ;;  %v8793_v61 = vld [vmem:[#allocation350_spill] sm:$0xff]  ;;  %v6083_v57 = vpop.permute.xlu2 %2007 }
 0x475   :  { %8778 = vst [vmem:[#allocation35_spill] sm:$0xff] %v5926_v19  ;;  %v8790_v19 = vld [vmem:[#allocation203_spill] sm:$0xff]  ;;  %v5956_v13 = vadd.f32 %v804_v53, %v8793_v61  ;;  %v8798_v61 = vld [vmem:[#allocation182_spill] sm:$0xff] }
 0x476   :  { %8780 = vst [vmem:[#allocation119_spill] sm:$0xff] %v5931_v15  ;;  %v1037_v2 = vsel %vm1001_vm5, %v8790_v19, %v8789_v47  ;;  %v5981_v53 = vsel %vm1001_vm5, %v8789_v47, %v8790_v19  ;;  %v1035_v38 = vsel %vm1001_vm5, %v8799_v34, %v8798_v61  ;;  %v6001_v19 = vmul.f32 %v5931_v15, %v1040_v41  ;;  %v8802_v47 = vld [vmem:[#allocation174_spill] sm:$0xff]  ;;  %v8805_v41 = vld [vmem:[#allocation213_spill] sm:$0xff] }
 0x477   :  { %8783 = vst [vmem:[#allocation91_spill] sm:$0xff] %v5937_v33  ;;  %v5992_v52 = vmul.f32 %v5931_v15, %v1037_v2  ;;  %v1036_v10 = vsel %vm1001_vm5, %v8803_v14, %v8802_v47  ;;  %v6011_v2 = vsel %vm1001_vm5, %v8798_v61, %v8799_v34  ;;  %v6028_v33 = vmul.f32 %v5931_v15, %v1035_v38  ;;  %v8808_v34 = vld [vmem:[#allocation177_spill] sm:$0xff] }
 0x478   :  { %8784 = vst [vmem:[#allocation258_spill] sm:$0xff] %v5939_v63  ;;  %v1046_v63 = vsel %vm1001_vm5, %v8807_v28, %v8806_v7  ;;  %v6047_v38 = vsel %vm1001_vm5, %v8802_v47, %v8803_v14  ;;  %v2847_v14 = vld [vmem:[%s7562_s1 + $0xd0] sm:$0xff] }
 0x479   :  { %8786 = vst [vmem:[#allocation10_spill] sm:$0xff] %v5942_v4  ;;  %v8801_v4 = vld [vmem:[#allocation209_spill] sm:$0xff]  ;;  %2279 = vperm.xlu0 %2741, %v2847_v14   ;;  %v6071_v47 = vmul.f32 %v5931_v15, %v1046_v63  ;;  %v6098_v14 = vsel %vm1001_vm5, %v8812_v24, %v8813_v39 }
 0x47a   :  { %8788 = vst [vmem:[#allocation342_spill] sm:$0xff] %v5945_v29  ;;  %v5975_v29 = vmul.f32 %v5931_v15, %v1034_v54  ;;  %v5998_v54 = vsel %vm1001_vm5, %v8791_v36, %v8792_v6  ;;  %v8804_v36 = vld [vmem:[#allocation185_spill] sm:$0xff] }
 0x47b   :  { %8794 = vst [vmem:[#allocation348_spill] sm:$0xff] %v5956_v13  ;;  %v8800_v13 = vld [vmem:[#allocation190_spill] sm:$0xff]  ;;  %v1038_v8 = vsel %vm1001_vm5, %v8805_v41, %v8804_v36  ;;  %v6056_v45 = vsel %vm1001_vm5, %v8804_v36, %v8805_v41  ;;  %v8811_v36 = vld [vmem:[#allocation216_spill] sm:$0xff] }
 0x47c   :  { %8796 = vst [vmem:[#allocation161_spill] sm:$0xff] %v5967_v43  ;;  %v1043_v21 = vsel %vm1001_vm5, %v8801_v4, %v8800_v13  ;;  %v6017_v6 = vsel %vm1001_vm5, %v8800_v13, %v8801_v4  ;;  %v8809_v43 = vld [vmem:[#allocation214_spill] sm:$0xff]  ;;  %v2845_v4 = vld [vmem:[%s7562_s1 + $0x78] sm:$0xff] }
 0x47d   :  { %8797 = vst [vmem:[#allocation269_spill] sm:$0xff] %v5972_v16  ;;  %v6031_v61 = vmul.f32 %v5931_v15, %v1043_v21  ;;  %v1039_v13 = vsel %vm1001_vm5, %v8809_v43, %v8808_v34  ;;  %2235 = vperm.xlu1 %2742, %v2845_v4   ;;  %v2846_v16 = vld [vmem:[%s7562_s1 + $0x80] sm:$0xff]  ;;  %v6050_v21 = vmul.f32 %v5931_v15, %v1036_v10 }
 0x47e   :  { %2239 = vperm.xlu2 %2743, %v2846_v16   ;;  %v6062_v16 = vsel %vm1001_vm5, %v8806_v7, %v8807_v28  ;;  %v6068_v10 = vmul.f32 %v5931_v15, %v1038_v8  ;;  %v8810_v4 = vld [vmem:[#allocation188_spill] sm:$0xff]  ;;  %v1049_v28 = vsel %vm1001_vm5, %v8813_v39, %v8812_v24  ;;  %v6081_v7 = vpop.permute.xlu1 %1987  ;;  %8815 = vst [vmem:[#allocation96_spill] sm:$0xff] %v6083_v57 }
 0x47f   :  { %v1041_v41 = vsel %vm1001_vm5, %v8811_v36, %v8810_v4  ;;  %8814 = vst [vmem:[#allocation22_spill] sm:$0xff] %v6081_v7  ;;  %v6089_v8 = vsel %vm1001_vm5, %v8808_v34, %v8809_v43  ;;  %v6092_v63 = vmul.f32 %v5931_v15, %v1039_v13  ;;  %v1042_v57 = vsel %vm1001_vm5, %v8817_v62, %v8816_v35  ;;  %v2004_v7 = vpop.permute.xlu0 %2003  ;;  %v8820_v34 = vld [vmem:[#allocation197_spill] sm:$0xff]  ;;  %v8821_v13 = vld [vmem:[#allocation218_spill] sm:$0xff] }
 0x480   :  { %v1044_v43 = vsel %vm1001_vm5, %v8819_v60, %v8818_v42  ;;  %v1052_v37 = vsel %vm1001_vm5, %v8821_v13, %v8820_v34  ;;  %v6115_v39 = vsel %vm2039_vm4, %v8822_v55, %v2004_v7  ;;  %v6120_v24 = vsel %vm2039_vm4, %v2004_v7, %v8822_v55  ;;  %v8827_v7 = vld [vmem:[#allocation198_spill] sm:$0xff] }
 0x481   :  { %8823 = vst [vmem:[#allocation76_spill] sm:$0xff] %v6115_v39  ;;  %v6126_v51 = vsel %vm1001_vm5, %v8810_v4, %v8811_v36  ;;  %v6129_v11 = vmul.f32 %v5931_v15, %v1041_v41  ;;  %v6132_v48 = vmul.f32 %v5931_v15, %v1049_v28  ;;  %v6138_v39 = vsel %vm1001_vm5, %v8816_v35, %v8817_v62  ;;  %v8825_v36 = vld [vmem:[#allocation183_spill] sm:$0xff]  ;;  %v8826_v41 = vld [vmem:[#allocation220_spill] sm:$0xff] }
 0x482   :  { %8824 = vst [vmem:[#allocation162_spill] sm:$0xff] %v6120_v24  ;;  %v6141_v55 = vmul.f32 %v5931_v15, %v1042_v57  ;;  %v6147_v4 = vsel %vm1001_vm5, %v8820_v34, %v8821_v13  ;;  %v1045_v28 = vsel %vm1001_vm5, %v8826_v41, %v8825_v36  ;;  %v8828_v24 = vld [vmem:[#allocation221_spill] sm:$0xff]  ;;  %v6161_v57 = vsel %vm1001_vm5, %v8818_v42, %v8819_v60  ;;  %v8833_v60 = vld [vmem:[#allocation223_spill] sm:$0xff] }
 0x483   :  { %v1055_v35 = vsel %vm1001_vm5, %v8828_v24, %v8827_v7  ;;  %v6164_v62 = vmul.f32 %v5931_v15, %v1044_v43  ;;  %v6167_v34 = vmul.f32 %v5931_v15, %v1052_v37  ;;  %v8829_v13 = vld [vmem:[#allocation93_spill] sm:$0xff]  ;;  %v6177_v30 = vsel %vm1001_vm5, %v8825_v36, %v8826_v41  ;;  %v8834_v43 = vld [vmem:[#allocation195_spill] sm:$0xff] }
 0x484   :  { %v1047_v27 = vsel %vm1001_vm5, %v8830_v23, %v8829_v13  ;;  %8831 = vst [vmem:[#allocation120_spill] sm:$0xff] %v6177_v30  ;;  %v1048_v42 = vsel %vm1001_vm5, %v8833_v60, %v8832_v44  ;;  %v1050_v37 = vsel %vm1001_vm5, %v8835_v18, %v8834_v43  ;;  %v2849_v36 = vld [vmem:[%s7562_s1 + $0x98] sm:$0xff]  ;;  %v6194_v41 = vmul.f32 %v5931_v15, %v1045_v28  ;;  %v2850_v28 = vld [vmem:[%s7562_s1 + $0xe8] sm:$0xff] }
 0x485   :  { %2247 = vperm.xlu1 %2742, %v2848_v32   ;;  %v6200_v30 = vsel %vm1001_vm5, %v8829_v13, %v8830_v23  ;;  %v6206_v59 = vsel %vm1001_vm5, %v8827_v7, %v8828_v24  ;;  %v6209_v32 = vmul.f32 %v5931_v15, %v1055_v35  ;;  %2291 = vperm.xlu0 %2741, %v2850_v28   ;;  %v8842_v13 = vld [vmem:[#allocation201_spill] sm:$0xff]  ;;  %v8843_v24 = vld [vmem:[#allocation224_spill] sm:$0xff] }
 0x486   :  { %2251 = vperm.xlu2 %2743, %v2849_v36   ;;  %8836 = vst [vmem:[#allocation11_spill] sm:$0xff] %v6194_v41  ;;  %v6215_v36 = vmul.f32 %v5931_v15, %v1047_v27  ;;  %v6221_v23 = vsel %vm1001_vm5, %v8832_v44, %v8833_v60  ;;  %v6227_v7 = vsel %vm1001_vm5, %v8843_v24, %v8842_v13  ;;  %v8845_v35 = vld [vmem:[#allocation189_spill] sm:$0xff]  ;;  %v6235_v27 = vpop.permute.xlu2 %2013  ;;  %v8853_v13 = vld [vmem:[#allocation228_spill] sm:$0xff] }
 0x487   :  { %8837 = vst [vmem:[#allocation344_spill] sm:$0xff] %v6200_v30  ;;  %v6238_v41 = vmul.f32 %v5931_v15, %v1048_v42  ;;  %v6244_v44 = vsel %vm1001_vm5, %v8834_v43, %v8835_v18  ;;  %v6247_v60 = vmul.f32 %v5931_v15, %v1050_v37  ;;  %v8857_v30 = vld [vmem:[#allocation231_spill] sm:$0xff] }
 0x488   :  { %8838 = vst [vmem:[#allocation41_spill] sm:$0xff] %v6206_v59  ;;  %v8846_v59 = vld [vmem:[#allocation226_spill] sm:$0xff]  ;;  %v8858_v43 = vld [vmem:[#allocation47_spill] sm:$0xff] }
 0x489   :  { %8839 = vst [vmem:[#allocation351_spill] sm:$0xff] %v6209_v32  ;;  %v1051_v28 = vsel %vm1001_vm5, %v8846_v59, %v8845_v35  ;;  %v6233_v32 = vpop.permute.xlu1 %1993 }
 0x48a   :  { %8840 = vst [vmem:[#allocation343_spill] sm:$0xff] %v6215_v36  ;;  %v6278_v36 = vmul.f32 %v5931_v15, %v1051_v28  ;;  %v8867_v28 = vld [vmem:[#allocation234_spill] sm:$0xff] }
 0x48b   :  { %8841 = vst [vmem:[#allocation163_spill] sm:$0xff] %v6221_v23  ;;  %v8854_v23 = vld [vmem:[#allocation192_spill] sm:$0xff] }
 0x48c   :  { %8844 = vst [vmem:[#allocation336_spill] sm:$0xff] %v6227_v7  ;;  %v8852_v7 = vld [vmem:[#allocation103_spill] sm:$0xff] }
 0x48d   :  { %8847 = vst [vmem:[#allocation30_spill] sm:$0xff] %v6233_v32  ;;  %v1053_v24 = vsel %vm1001_vm5, %v8853_v13, %v8852_v7  ;;  %v2010_v32 = vpop.permute.xlu0 %2009  ;;  %v6284_v22 = vsel %vm1001_vm5, %v8852_v7, %v8853_v13 }
 0x48e   :  { %8848 = vst [vmem:[#allocation123_spill] sm:$0xff] %v6235_v27  ;;  %v8855_v27 = vld [vmem:[#allocation229_spill] sm:$0xff]  ;;  %v6264_v37 = vsel %vm2039_vm4, %v8858_v43, %v2010_v32 }
 0x48f   :  { %8849 = vst [vmem:[#allocation164_spill] sm:$0xff] %v6238_v41  ;;  %v1054_v42 = vsel %vm1001_vm5, %v8855_v27, %v8854_v23  ;;  %v8856_v41 = vld [vmem:[#allocation199_spill] sm:$0xff] }
 0x490   :  { %8850 = vst [vmem:[#allocation124_spill] sm:$0xff] %v6244_v44  ;;  %v1056_v18 = vsel %vm1001_vm5, %v8857_v30, %v8856_v41  ;;  %v6269_v44 = vsel %vm2039_vm4, %v2010_v32, %v8858_v43  ;;  %v6289_v32 = vmul.f32 %v5931_v15, %v1053_v24  ;;  %v8864_v43 = vld [vmem:[#allocation92_spill] sm:$0xff]  ;;  %v6308_v24 = vmul.f32 %v5931_v15, %v1054_v42 }
 0x491   :  { %8851 = vst [vmem:[#allocation346_spill] sm:$0xff] %v6247_v60  ;;  %v6275_v60 = vsel %vm1001_vm5, %v8845_v35, %v8846_v59  ;;  %v8866_v35 = vld [vmem:[#allocation202_spill] sm:$0xff]  ;;  %v6314_v7 = vsel %vm1001_vm5, %v8856_v41, %v8857_v30  ;;  %v2851_v41 = vld [vmem:[%s7562_s1 + $0xa8] sm:$0xff] }
 0x492   :  { %8859 = vst [vmem:[#allocation46_spill] sm:$0xff] %v6264_v37  ;;  %v8863_v37 = vld [vmem:[#allocation233_spill] sm:$0xff]  ;;  %2259 = vperm.xlu1 %2742, %v2851_v41  }
 0x493   :  { %8860 = vst [vmem:[#allocation353_spill] sm:$0xff] %v6269_v44  ;;  %v1266_v31 = vmul.f32 %v8863_v37, %v6028_v33  ;;  %v8865_v44 = vld [vmem:[#allocation232_spill] sm:$0xff]  ;;  %v1267_v13 = vmul.f32 %v8863_v37, %v6011_v2  ;;  %v6305_v33 = vsel %vm1001_vm5, %v8854_v23, %v8855_v27  ;;  %v8872_v27 = vld [vmem:[#allocation235_spill] sm:$0xff]  ;;  %v8873_v37 = vld [vmem:[#allocation205_spill] sm:$0xff] }
 0x494   :  { %8861 = vst [vmem:[#allocation255_spill] sm:$0xff] %v6275_v60  ;;  %v1057_v59 = vsel %vm1001_vm5, %v8865_v44, %v8864_v43  ;;  %v1059_v60 = vsel %vm1001_vm5, %v8867_v28, %v8866_v35  ;;  %v6323_v2 = vsel %vm1001_vm5, %v8864_v43, %v8865_v44  ;;  %v8871_v23 = vld [vmem:[#allocation196_spill] sm:$0xff]  ;;  %v2852_v44 = vld [vmem:[%s7562_s1 + $0xb0] sm:$0xff]  ;;  %v6346_v43 = vsel %vm1001_vm5, %v8866_v35, %v8867_v28  ;;  %v6369_v28 = vpop.permute.xlu2 %2019 }
 0x495   :  { %8862 = vst [vmem:[#allocation165_spill] sm:$0xff] %v6278_v36  ;;  %v6317_v36 = vmul.f32 %v5931_v15, %v1056_v18  ;;  %v1060_v42 = vsel %vm1001_vm5, %v8872_v27, %v8871_v23  ;;  %2263 = vperm.xlu2 %2743, %v2852_v44   ;;  %v6340_v18 = vmul.f32 %v5931_v15, %v1057_v59  ;;  %v8877_v44 = vld [vmem:[#allocation236_spill] sm:$0xff] }
 0x496   :  { %8868 = vst [vmem:[#allocation88_spill] sm:$0xff] %v6305_v33  ;;  %v8874_v33 = vld [vmem:[#allocation237_spill] sm:$0xff]  ;;  %v6355_v41 = vadd.f32 %v1267_v13, %v5632_v49  ;;  %v6361_v59 = vsel %vm1001_vm5, %v8871_v23, %v8872_v27  ;;  %v1273_v35 = vmul.f32 %v8877_v44, %v6056_v45  ;;  %v8884_v13 = vld [vmem:[#allocation238_spill] sm:$0xff]  ;;  %v2016_v23 = vpop.permute.xlu0 %2015  ;;  %v8885_v27 = vld [vmem:[#allocation239_spill] sm:$0xff] }
 0x497   :  { %8869 = vst [vmem:[#allocation166_spill] sm:$0xff] %v6308_v24  ;;  %v1062_v30 = vsel %vm1001_vm5, %v8874_v33, %v8873_v37  ;;  %v6352_v24 = vadd.f32 %v1266_v31, %v5629_v58  ;;  %v6372_v31 = vmul.f32 %v5931_v15, %v1060_v42  ;;  %v6378_v58 = vsel %vm1001_vm5, %v8873_v37, %v8874_v33 }
 0x498   :  { %8870 = vst [vmem:[#allocation125_spill] sm:$0xff] %v6323_v2  ;;  %v6349_v2 = vmul.f32 %v5931_v15, %v1059_v60  ;;  %v6367_v60 = vpop.permute.xlu1 %1999  ;;  %v6381_v49 = vmul.f32 %v5931_v15, %v1062_v30  ;;  %v1277_v42 = vmul.f32 %v8885_v27, %v5998_v54  ;;  %v8889_v30 = vld [vmem:[#allocation208_spill] sm:$0xff] }
 0x499   :  { %8875 = vst [vmem:[#allocation59_spill] sm:$0xff] %v6340_v18  ;;  %v1272_v18 = vmul.f32 %v8877_v44, %v6068_v10  ;;  %v8883_v10 = vld [vmem:[#allocation102_spill] sm:$0xff]  ;;  %v1276_v44 = vmul.f32 %v8885_v27, %v6001_v19  ;;  %v8891_v19 = vld [vmem:[#allocation241_spill] sm:$0xff] }
 0x49a   :  { %8876 = vst [vmem:[#allocation126_spill] sm:$0xff] %v6361_v59  ;;  %v1063_v45 = vsel %vm1001_vm5, %v8884_v13, %v8883_v10  ;;  %v1265_v54 = vmul.f32 %v8891_v19, %v5962_v17  ;;  %v8892_v27 = vld [vmem:[#allocation242_spill] sm:$0xff] }
 0x49b   :  { %8878 = vst [vmem:[#allocation167_spill] sm:$0xff] %v6367_v60  ;;  %v8890_v60 = vld [vmem:[#allocation240_spill] sm:$0xff]  ;;  %v6428_v17 = vmul.f32 %v5931_v15, %v1063_v45 }
 0x49c   :  { %8879 = vst [vmem:[#allocation12_spill] sm:$0xff] %v6369_v28  ;;  %v8886_v28 = vld [vmem:[#allocation122_spill] sm:$0xff]  ;;  %v1065_v59 = vsel %vm1001_vm5, %v8890_v60, %v8889_v30 }
 0x49d   :  { %8880 = vst [vmem:[#allocation106_spill] sm:$0xff] %v6372_v31  ;;  %v6394_v33 = vsel %vm2039_vm4, %v8886_v28, %v2016_v23  ;;  %v6399_v37 = vsel %vm2039_vm4, %v2016_v23, %v8886_v28  ;;  %v1264_v31 = vmul.f32 %v8891_v19, %v5975_v29  ;;  %v6415_v28 = vadd.f32 %v1273_v35, %v5603_v0  ;;  %v8893_v23 = vld [vmem:[#allocation243_spill] sm:$0xff]  ;;  %v2853_v35 = vld [vmem:[%s7562_s1 + $0xc0] sm:$0xff] }
 0x49e   :  { %8881 = vst [vmem:[#allocation127_spill] sm:$0xff] %v6378_v58  ;;  %v1282_v58 = vmul.f32 %v8892_v27, %v6031_v61  ;;  %v6425_v29 = vsel %vm1001_vm5, %v8883_v10, %v8884_v13  ;;  %v1269_v0 = vmul.f32 %v8893_v23, %v6047_v38  ;;  %v6442_v61 = vadd.f32 %v1276_v44, %v5701_v25  ;;  %v8902_v10 = vld [vmem:[#allocation94_spill] sm:$0xff] }
 0x49f   :  { %8882 = vst [vmem:[#allocation168_spill] sm:$0xff] %v6381_v49  ;;  %v1283_v49 = vmul.f32 %v8892_v27, %v6017_v6  ;;  %v6439_v6 = vmul.f32 %v5931_v15, %v1065_v59  ;;  %2271 = vperm.xlu1 %2742, %v2853_v35   ;;  %v6453_v38 = vadd.f32 %v1277_v42, %v5714_v3  ;;  %v8904_v3 = vld [vmem:[#allocation245_spill] sm:$0xff] }
 0x4a0   :  { %8887 = vst [vmem:[#allocation13_spill] sm:$0xff] %v6394_v33  ;;  %v6412_v33 = vadd.f32 %v1272_v18, %v5594_v40  ;;  %v6434_v40 = vsel %vm1001_vm5, %v8889_v30, %v8890_v60  ;;  %v2854_v60 = vld [vmem:[%s7562_s1 + $0xc8] sm:$0xff]  ;;  %v6456_v59 = vadd.f32 %v1264_v31, %v5637_v26  ;;  %v6459_v25 = vadd.f32 %v1265_v54, %v5649_v50  ;;  %v6474_v26 = vpop.permute.xlu1 %2005  ;;  %v6476_v31 = vpop.permute.xlu2 %2025  ;;  %v8907_v50 = vld [vmem:[#allocation131_spill] sm:$0xff] }
 0x4a1   :  { %8888 = vst [vmem:[#allocation36_spill] sm:$0xff] %v6399_v37  ;;  %v1268_v37 = vmul.f32 %v8893_v23, %v6050_v21  ;;  %v8899_v21 = vld [vmem:[#allocation244_spill] sm:$0xff]  ;;  %2275 = vperm.xlu2 %2743, %v2854_v60   ;;  %v6468_v45 = vadd.f32 %v1283_v49, %v5752_v12  ;;  %v1288_v42 = vmul.f32 %v8904_v3, %v6071_v47  ;;  %v8909_v47 = vld [vmem:[#allocation247_spill] sm:$0xff]  ;;  %v8910_v54 = vld [vmem:[#allocation133_spill] sm:$0xff] }
 0x4a2   :  { %8894 = vst [vmem:[#allocation349_spill] sm:$0xff] %v6425_v29  ;;  %v1270_v18 = vmul.f32 %v8899_v21, %v5992_v52  ;;  %v6462_v52 = vadd.f32 %v1282_v58, %v5736_v1  ;;  %v1271_v44 = vmul.f32 %v8899_v21, %v5981_v53  ;;  %v6479_v30 = vadd.f32 %v1269_v0, %v8907_v50  ;;  %v8908_v1 = vld [vmem:[#allocation246_spill] sm:$0xff]  ;;  %v2022_v53 = vpop.permute.xlu0 %2021  ;;  %v8914_v23 = vld [vmem:[#allocation248_spill] sm:$0xff] }
 0x4a3   :  { %8895 = vst [vmem:[#allocation82_spill] sm:$0xff] %v6428_v17  ;;  %v6465_v13 = vadd.f32 %v1268_v37, %v8902_v10  ;;  %v1278_v58 = vmul.f32 %v8908_v1, %v6129_v11  ;;  %v1279_v12 = vmul.f32 %v8908_v1, %v6126_v51  ;;  %v1289_v49 = vmul.f32 %v8904_v3, %v6062_v16  ;;  %v8913_v16 = vld [vmem:[#allocation249_spill] sm:$0xff]  ;;  %v8920_v3 = vld [vmem:[#allocation83_spill] sm:$0xff]  ;;  %v8923_v50 = vld [vmem:[#allocation134_spill] sm:$0xff] }
 0x4a4   :  { %8896 = vst [vmem:[#allocation271_spill] sm:$0xff] %v6434_v40  ;;  %v6488_v37 = vadd.f32 %v1270_v18, %v5662_v20  ;;  %v1274_v19 = vmul.f32 %v8909_v47, %v6092_v63  ;;  %v6495_v27 = vsel %vm2039_vm4, %v8910_v54, %v2022_v53  ;;  %v6500_v11 = vsel %vm2039_vm4, %v2022_v53, %v8910_v54  ;;  %v8929_v54 = vld [vmem:[#allocation138_spill] sm:$0xff]  ;;  %v8954_v40 = vld [vmem:[#allocation139_spill] sm:$0xff]  ;;  %v8998_v29 = vld [vmem:[#allocation256_spill] sm:$0xff] }
 0x4a5   :  { %8897 = vst [vmem:[#allocation52_spill] sm:$0xff] %v6439_v6  ;;  %v1275_v51 = vmul.f32 %v8909_v47, %v6089_v8  ;;  %v1284_v20 = vmul.f32 %v8913_v16, %v6164_v62  ;;  %v1294_v0 = vmul.f32 %v8914_v23, %v6132_v48  ;;  %v1295_v63 = vmul.f32 %v8914_v23, %v6098_v14  ;;  %v8916_v8 = vld [vmem:[#allocation21_spill] sm:$0xff]  ;;  %v8928_v47 = vld [vmem:[#allocation259_spill] sm:$0xff] }
 0x4a6   :  { %8898 = vst [vmem:[#allocation169_spill] sm:$0xff] %v6442_v61  ;;  %v6511_v21 = vadd.f32 %v1271_v44, %v5665_v46  ;;  %v6514_v18 = vadd.f32 %v1288_v42, %v5778_v56  ;;  %v1285_v35 = vmul.f32 %v8913_v16, %v6161_v57  ;;  %v1280_v60 = vmul.f32 %v8916_v8, %v6141_v55  ;;  %v8918_v14 = vld [vmem:[#allocation25_spill] sm:$0xff]  ;;  %v8919_v56 = vld [vmem:[#allocation132_spill] sm:$0xff]  ;;  %v8930_v23 = vld [vmem:[#allocation343_spill] sm:$0xff] }
 0x4a7   :  { %8900 = vst [vmem:[#allocation128_spill] sm:$0xff] %v6453_v38  ;;  %v6521_v62 = vadd.f32 %v1289_v49, %v5785_v5  ;;  %v1281_v48 = vmul.f32 %v8916_v8, %v6138_v39  ;;  %v1300_v10 = vmul.f32 %v8918_v14, %v6167_v34  ;;  %v1301_v46 = vmul.f32 %v8918_v14, %v6147_v4  ;;  %v8921_v42 = vld [vmem:[#allocation89_spill] sm:$0xff]  ;;  %v2855_v5 = vld [vmem:[%s7562_s1 + $0xd8] sm:$0xff]  ;;  %v2856_v39 = vld [vmem:[%s7562_s1 + $0xe0] sm:$0xff] }
 0x4a8   :  { %8901 = vst [vmem:[#allocation170_spill] sm:$0xff] %v6462_v52  ;;  %v6530_v44 = vadd.f32 %v1278_v58, %v8919_v56  ;;  %v6533_v57 = vadd.f32 %v1279_v12, %v8920_v3  ;;  %v6536_v55 = vadd.f32 %v1274_v19, %v8921_v42  ;;  %2283 = vperm.xlu1 %2742, %v2855_v5   ;;  %v8922_v4 = vld [vmem:[#allocation137_spill] sm:$0xff]  ;;  %v8926_v49 = vld [vmem:[#allocation151_spill] sm:$0xff]  ;;  %v8931_v8 = vld [vmem:[#allocation250_spill] sm:$0xff]  ;;  %v6568_v3 = vpop.permute.xlu2 %2031 }
 0x4a9   :  { %8903 = vst [vmem:[#allocation14_spill] sm:$0xff] %v6468_v45  ;;  %2287 = vperm.xlu2 %2743, %v2856_v39   ;;  %v6545_v34 = vadd.f32 %v1275_v51, %v8922_v4  ;;  %v6548_v1 = vadd.f32 %v1284_v20, %v8923_v50  ;;  %v8924_v58 = vld [vmem:[#allocation149_spill] sm:$0xff]  ;;  %v6554_v53 = vadd.f32 %v1295_v63, %v8926_v49  ;;  %v8932_v51 = vld [vmem:[#allocation344_spill] sm:$0xff]  ;;  %v6566_v20 = vpop.permute.xlu1 %2011  ;;  %v8936_v63 = vld [vmem:[#allocation154_spill] sm:$0xff] }
 0x4aa   :  { %8905 = vst [vmem:[#allocation15_spill] sm:$0xff] %v6474_v26  ;;  %v6551_v12 = vadd.f32 %v1294_v0, %v8924_v58  ;;  %v6557_v19 = vadd.f32 %v1285_v35, %v8928_v47  ;;  %v6560_v16 = vadd.f32 %v1280_v60, %v8929_v54  ;;  %v1290_v14 = vmul.f32 %v8931_v8, %v8930_v23  ;;  %v8935_v0 = vld [vmem:[#allocation141_spill] sm:$0xff]  ;;  %v8938_v35 = vld [vmem:[#allocation156_spill] sm:$0xff]  ;;  %v8940_v60 = vld [vmem:[#allocation11_spill] sm:$0xff]  ;;  %v2028_v58 = vpop.permute.xlu0 %2027 }
 0x4ab   :  { %8906 = vst [vmem:[#allocation355_spill] sm:$0xff] %v6476_v31  ;;  %v1291_v56 = vmul.f32 %v8931_v8, %v8932_v51  ;;  %v6571_v42 = vadd.f32 %v1281_v48, %v8935_v0  ;;  %v6574_v5 = vadd.f32 %v1300_v10, %v8936_v63  ;;  %v6577_v39 = vadd.f32 %v1301_v46, %v8938_v35  ;;  %v8941_v4 = vld [vmem:[#allocation20_spill] sm:$0xff]  ;;  %v8943_v54 = vld [vmem:[#allocation346_spill] sm:$0xff]  ;;  %v8944_v23 = vld [vmem:[#allocation31_spill] sm:$0xff] }
 0x4ac   :  { %8911 = vst [vmem:[#allocation42_spill] sm:$0xff] %v6495_v27  ;;  %v1286_v50 = vmul.f32 %v8941_v4, %v8940_v60  ;;  %v8942_v49 = vld [vmem:[#allocation120_spill] sm:$0xff]  ;;  %v1296_v8 = vmul.f32 %v8944_v23, %v8943_v54  ;;  %v8945_v51 = vld [vmem:[#allocation115_spill] sm:$0xff]  ;;  %v8950_v35 = vld [vmem:[#allocation26_spill] sm:$0xff] }
 0x4ad   :  { %8912 = vst [vmem:[#allocation352_spill] sm:$0xff] %v6500_v11  ;;  %v1287_v47 = vmul.f32 %v8941_v4, %v8942_v49  ;;  %v6588_v48 = vsel %vm2039_vm4, %v8945_v51, %v2028_v58  ;;  %v6593_v10 = vsel %vm2039_vm4, %v2028_v58, %v8945_v51  ;;  %v8948_v46 = vld [vmem:[#allocation124_spill] sm:$0xff]  ;;  %v8951_v4 = vld [vmem:[#allocation163_spill] sm:$0xff]  ;;  %v8952_v54 = vld [vmem:[#allocation37_spill] sm:$0xff]  ;;  %v6607_v6 = vadd.f32 %v1291_v56, %v8954_v40 }
 0x4ae   :  { %8915 = vst [vmem:[#allocation111_spill] sm:$0xff] %v6514_v18  ;;  %v1297_v0 = vmul.f32 %v8944_v23, %v8948_v46  ;;  %v8949_v63 = vld [vmem:[#allocation164_spill] sm:$0xff]  ;;  %v1293_v49 = vmul.f32 %v8950_v35, %v8951_v4  ;;  %v1302_v15 = vmul.f32 %v8952_v54, %v6289_v32  ;;  %v1303_v58 = vmul.f32 %v8952_v54, %v6284_v22  ;;  %v8955_v51 = vld [vmem:[#allocation165_spill] sm:$0xff]  ;;  %v8962_v32 = vld [vmem:[#allocation255_spill] sm:$0xff] }
 0x4af   :  { %8917 = vst [vmem:[#allocation130_spill] sm:$0xff] %v6521_v62  ;;  %v1292_v60 = vmul.f32 %v8950_v35, %v8949_v63  ;;  %v8956_v23 = vld [vmem:[#allocation32_spill] sm:$0xff]  ;;  %v8958_v63 = vld [vmem:[#allocation27_spill] sm:$0xff]  ;;  %v8960_v35 = vld [vmem:[#allocation41_spill] sm:$0xff] }
 0x4b0   :  { %8925 = vst [vmem:[#allocation109_spill] sm:$0xff] %v6551_v12  ;;  %v1298_v46 = vmul.f32 %v8956_v23, %v8955_v51  ;;  %v6619_v4 = vmul.f32 %v8958_v63, %v8960_v35  ;;  %v8963_v40 = vld [vmem:[#allocation44_spill] sm:$0xff]  ;;  %v8965_v22 = vld [vmem:[#allocation110_spill] sm:$0xff]  ;;  %v9000_v31 = vld [vmem:[#allocation281_spill] sm:$0xff] }
 0x4b1   :  { %8927 = vst [vmem:[#allocation171_spill] sm:$0xff] %v6554_v53  ;;  %v1308_v56 = vmul.f32 %v8963_v40, %v6317_v36  ;;  %v6629_v54 = vadd.f32 %v1287_v47, %v8965_v22  ;;  %v8966_v51 = vld [vmem:[#allocation118_spill] sm:$0xff]  ;;  %v8968_v36 = vld [vmem:[#allocation107_spill] sm:$0xff]  ;;  %v8990_v12 = vld [vmem:[#allocation88_spill] sm:$0xff]  ;;  %vm2105_vm7 = vcmp.lt.s32.totalorder %v9000_v31, 254 }
 0x4b2   :  { %8933 = vst [vmem:[#allocation58_spill] sm:$0xff] %v6566_v20  ;;  %v8971_v47 = vld [vmem:[#allocation147_spill] sm:$0xff]  ;;  %v8974_v22 = vld [vmem:[#allocation98_spill] sm:$0xff]  ;;  %v2034_v53 = vpop.permute.xlu0 %2033  ;;  %v9003_v27 = vld [vmem:[#allocation80_spill] sm:$0xff] }
 0x4b3   :  { %8934 = vst [vmem:[#allocation172_spill] sm:$0xff] %v6568_v3  ;;  %v8957_v3 = vld [vmem:[#allocation351_spill] sm:$0xff]  ;;  %v9004_v11 = vld [vmem:[#allocation260_spill] sm:$0xff] }
 0x4b4   :  { %8937 = vst [vmem:[#allocation71_spill] sm:$0xff] %v6574_v5  ;;  %v6615_v20 = vmul.f32 %v8958_v63, %v8957_v3  ;;  %v2857_v3 = vld [vmem:[%s7562_s1 + $0xf0] sm:$0xff]  ;;  %v6641_v63 = vadd.f32 %v1297_v0, %v8968_v36  ;;  %v8978_v0 = vld [vmem:[#allocation68_spill] sm:$0xff]  ;;  %v9009_v18 = vld [vmem:[#allocation67_spill] sm:$0xff] }
 0x4b5   :  { %8939 = vst [vmem:[#allocation18_spill] sm:$0xff] %v6577_v39  ;;  %v8953_v39 = vld [vmem:[#allocation99_spill] sm:$0xff]  ;;  %2295 = vperm.xlu1 %2742, %v2857_v3   ;;  %v8976_v3 = vld [vmem:[#allocation97_spill] sm:$0xff]  ;;  %v8979_v36 = vld [vmem:[#allocation252_spill] sm:$0xff] }
 0x4b6   :  { %8946 = vst [vmem:[#allocation19_spill] sm:$0xff] %v6588_v48  ;;  %v6604_v5 = vadd.f32 %v1290_v14, %v8953_v39  ;;  %v1299_v14 = vmul.f32 %v8956_v23, %v8962_v32  ;;  %v8964_v39 = vld [vmem:[#allocation140_spill] sm:$0xff]  ;;  %v2858_v23 = vld [vmem:[%s7562_s1 + $0xf8] sm:$0xff]  ;;  %v6647_v32 = vadd.f32 %v1293_v49, %v8971_v47  ;;  %v6666_v49 = vpop.permute.xlu1 %2017 }
 0x4b7   :  { %8947 = vst [vmem:[#allocation48_spill] sm:$0xff] %v6593_v10  ;;  %v6626_v48 = vadd.f32 %v1286_v50, %v8964_v39  ;;  %v6632_v10 = vadd.f32 %v1296_v8, %v8966_v51  ;;  %2299 = vperm.xlu2 %2743, %v2858_v23   ;;  %v8970_v50 = vld [vmem:[#allocation148_spill] sm:$0xff]  ;;  %v8972_v8 = vld [vmem:[#allocation79_spill] sm:$0xff]  ;;  %v6653_v51 = vadd.f32 %v1303_v58, %v8974_v22  ;;  %v8984_v58 = vld [vmem:[#allocation262_spill] sm:$0xff] }
 0x4b8   :  { %8959 = vst [vmem:[#allocation175_spill] sm:$0xff] %v6615_v20  ;;  %v6644_v35 = vadd.f32 %v1292_v60, %v8970_v50  ;;  %v6650_v39 = vadd.f32 %v1302_v15, %v8972_v8  ;;  %v6660_v23 = vmul.f32 %v8963_v40, %v6314_v7  ;;  %v1555_v60 = vsel %vm1520_vm0, %v8979_v36, %v8978_v0  ;;  %v6668_v50 = vpop.permute.xlu2 %2037  ;;  %v8982_v15 = vld [vmem:[#allocation254_spill] sm:$0xff]  ;;  %v8988_v7 = vld [vmem:[#allocation61_spill] sm:$0xff] }
 0x4b9   :  { %8961 = vst [vmem:[#allocation178_spill] sm:$0xff] %v6619_v4  ;;  %v6656_v4 = vadd.f32 %v1298_v46, %v8976_v3  ;;  %v6671_v47 = vadd.f32 %v1299_v14, %v8982_v15  ;;  %v6674_v8 = vadd.f32 %v1308_v56, %v8984_v58  ;;  %v8986_v46 = vld [vmem:[#allocation166_spill] sm:$0xff]  ;;  %v8989_v40 = vld [vmem:[#allocation257_spill] sm:$0xff] }
 0x4ba   :  { %8967 = vst [vmem:[#allocation354_spill] sm:$0xff] %v6632_v10  ;;  %v8987_v22 = vld [vmem:[#allocation38_spill] sm:$0xff]  ;;  %v1553_v20 = vsel %vm1520_vm0, %v8989_v40, %v8988_v7 }
 0x4bb   :  { %8969 = vst [vmem:[#allocation114_spill] sm:$0xff] %v6641_v63  ;;  %v6678_v3 = vmul.f32 %v8987_v22, %v8986_v46  ;;  %v8992_v14 = vld [vmem:[#allocation50_spill] sm:$0xff] }
 0x4bc   :  { %8973 = vst [vmem:[#allocation28_spill] sm:$0xff] %v6650_v39  ;;  %v6690_v15 = vmul.f32 %v8992_v14, %v6349_v2  ;;  %v8994_v56 = vld [vmem:[#allocation142_spill] sm:$0xff]  ;;  %v1523_v2 = vsel %vm1520_vm0, %v8978_v0, %v8979_v36  ;;  %v1561_v0 = vsel %vm1520_vm0, %v9004_v11, %v9003_v27  ;;  %v9006_v36 = vld [vmem:[#allocation152_spill] sm:$0xff] }
 0x4bd   :  { %8975 = vst [vmem:[#allocation345_spill] sm:$0xff] %v6653_v51  ;;  %v6695_v58 = vsel %vm2039_vm4, %v8994_v56, %v2034_v53  ;;  %v6700_v46 = vsel %vm2039_vm4, %v2034_v53, %v8994_v56  ;;  %v9010_v51 = vld [vmem:[#allocation261_spill] sm:$0xff] }
 0x4be   :  { %8977 = vst [vmem:[#allocation64_spill] sm:$0xff] %v6656_v4 }
 0x4bf   :  { %8980 = vst [vmem:[#allocation173_spill] sm:$0xff] %v6666_v49  ;;  %v6686_v49 = vmul.f32 %v8987_v22, %v8990_v12  ;;  %v8999_v22 = vld [vmem:[#allocation284_spill] sm:$0xff] }
 0x4c0   :  { %8981 = vst [vmem:[#allocation34_spill] sm:$0xff] %v6668_v50  ;;  %v8997_v50 = vld [vmem:[#allocation74_spill] sm:$0xff]  ;;  %v1596_v17 = vmul.f32 %v8999_v22, %v1555_v60  ;;  %v1592_v53 = vmul.f32 %v8999_v22, %v1553_v20  ;;  %v2184_v45 = vpop.permute.xlu2 %2183 }
 0x4c1   :  { %8983 = vst [vmem:[#allocation129_spill] sm:$0xff] %v6671_v47  ;;  %v1558_v12 = vsel %vm1520_vm0, %v8998_v29, %v8997_v50  ;;  %v1526_v56 = vsel %vm1520_vm0, %v8997_v50, %v8998_v29  ;;  %v9005_v20 = vld [vmem:[#allocation318_spill] sm:$0xff]  ;;  %v9007_v29 = vld [vmem:[#allocation276_spill] sm:$0xff] }
 0x4c2   :  { %8985 = vst [vmem:[#allocation181_spill] sm:$0xff] %v6674_v8  ;;  %v2072_v60 = vsel %vm2039_vm4, %v9006_v36, %v9005_v20  ;;  %v9008_v8 = vmov 0.0  }
 0x4c3   :  { %8991 = vst [vmem:[#allocation200_spill] sm:$0xff] %v6686_v49  ;;  %v6739_v62 = vsel %vm2105_vm7, 1.0, %v9008_v8 }
 0x4c4   :  { %8993 = vst [vmem:[#allocation347_spill] sm:$0xff] %v6690_v15 }
 0x4c5   :  { %8995 = vst [vmem:[#allocation40_spill] sm:$0xff] %v6695_v58  ;;  %v6714_v58 = vmul.f32 %v8992_v14, %v6346_v43  ;;  %v1521_v43 = vsel %vm1520_vm0, %v8988_v7, %v8989_v40  ;;  %v1784_v14 = vmul.f32 %v9007_v29, %v1592_v53  ;;  %v1556_v7 = vsel %vm1520_vm0, %v9010_v51, %v9009_v18  ;;  %v9013_v53 = vld [vmem:[#allocation267_spill] sm:$0xff] }
 0x4c6   :  { %8996 = vst [vmem:[#allocation184_spill] sm:$0xff] %v6700_v46  ;;  %v9002_v46 = vld [vmem:[#allocation285_spill] sm:$0xff]  ;;  %v1783_v50 = vmul.f32 %v9007_v29, %v1521_v43  ;;  %v1529_v40 = vsel %vm1520_vm0, %v9003_v27, %v9004_v11  ;;  %v1608_v29 = vmul.f32 %v8999_v22, %v1561_v0  ;;  %v2040_v27 = vsel %vm2039_vm4, %v9005_v20, %v9006_v36  ;;  %v2176_v11 = vpop.permute.xlu0 %2175 }
 0x4c7   :  { %9001 = vst [vmem:[#allocation203_spill] sm:$0xff] %v6714_v58  ;;  %v1787_v26 = vmul.f32 %v9002_v46, %v1523_v2  ;;  %v1788_v31 = vmul.f32 %v9002_v46, %v1596_v17  ;;  %v1602_v2 = vmul.f32 %v8999_v22, %v1558_v12  ;;  %v6749_v17 = vsel %vm1520_vm0, %v9009_v18, %v9010_v51  ;;  %v9011_v46 = vld [vmem:[#allocation104_spill] sm:$0xff]  ;;  %v9012_v12 = vld [vmem:[#allocation57_spill] sm:$0xff]  ;;  %v6764_v51 = vpop.permute.xlu1 %2023 }
 0x4c8   :  { %v2115_v8 = vmul.f32 %v6739_v62, %v9011_v46  ;;  %v1557_v43 = vsel %vm1520_vm0, %v9013_v53, %v9012_v12  ;;  %v2111_v18 = vmul.f32 %v6739_v62, %v2072_v60  ;;  %9014 = vst [vmem:[#allocation187_spill] sm:$0xff] %v6764_v51  ;;  %v9015_v46 = vld [vmem:[#allocation136_spill] sm:$0xff]  ;;  %v1847_v0 = vadd.f32 %v1783_v50, %v6456_v59  ;;  %v9018_v20 = vld [vmem:[#allocation329_spill] sm:$0xff]  ;;  %v9019_v59 = vld [vmem:[#allocation135_spill] sm:$0xff] }
 0x4c9   :  { %v1851_v39 = vadd.f32 %v1787_v26, %v6465_v13  ;;  %v1852_v52 = vadd.f32 %v1788_v31, %v6479_v30  ;;  %v2306_v47 = vmul.f32 %v2184_v45, %v9015_v46  ;;  %v1848_v13 = vadd.f32 %v1784_v14, %v6459_v25  ;;  %v9021_v14 = vld [vmem:[#allocation51_spill] sm:$0xff]  ;;  %v9035_v58 = vld [vmem:[#allocation145_spill] sm:$0xff] }
 0x4ca   :  { %v2307_v4 = vmul.f32 %v2184_v45, %v2115_v8  ;;  %v2302_v26 = vmul.f32 %v2176_v11, %v2040_v27  ;;  %v2303_v60 = vmul.f32 %v2176_v11, %v2111_v18  ;;  %v6775_v51 = vmul.f32 %v8999_v22, %v1556_v7  ;;  %v9022_v7 = vld [vmem:[#allocation263_spill] sm:$0xff]  ;;  %v9025_v8 = vld [vmem:[#allocation289_spill] sm:$0xff]  ;;  %v9027_v18 = vld [vmem:[#allocation264_spill] sm:$0xff] }
 0x4cb   :  { %v1600_v30 = vmul.f32 %v8999_v22, %v1557_v43  ;;  %v6778_v31 = vadd.f32 %v2306_v47, %v1851_v39  ;;  %v1525_v45 = vsel %vm1520_vm0, %v9012_v12, %v9013_v53  ;;  %v2076_v25 = vsel %vm2039_vm4, %v9019_v59, %v9018_v20  ;;  %v9026_v43 = vld [vmem:[#allocation81_spill] sm:$0xff]  ;;  %v9028_v46 = vld [vmem:[#allocation279_spill] sm:$0xff] }
 0x4cc   :  { %v6780_v63 = vadd.f32 %v2307_v4, %v1852_v52  ;;  %v2366_v36 = vadd.f32 %v2302_v26, %v1847_v0  ;;  %v6790_v50 = vadd.f32 %v2303_v60, %v1848_v13  ;;  %v1554_v39 = vsel %vm1520_vm0, %v9022_v7, %v9021_v14  ;;  %v9023_v52 = vld [vmem:[#allocation63_spill] sm:$0xff]  ;;  %v9024_v4 = vld [vmem:[#allocation270_spill] sm:$0xff]  ;;  %v9029_v26 = vld [vmem:[#allocation73_spill] sm:$0xff] }
 0x4cd   :  { %9016 = vst [vmem:[#allocation206_spill] sm:$0xff] %v6778_v31  ;;  %v1560_v47 = vsel %vm1520_vm0, %v9024_v4, %v9023_v52  ;;  %v1791_v12 = vmul.f32 %v9025_v8, %v1525_v45  ;;  %v1792_v53 = vmul.f32 %v9025_v8, %v1600_v30  ;;  %v1564_v27 = vsel %vm1520_vm0, %v9027_v18, %v9026_v43  ;;  %v9030_v60 = vld [vmem:[#allocation265_spill] sm:$0xff] }
 0x4ce   :  { %9017 = vst [vmem:[#allocation350_spill] sm:$0xff] %v6780_v63  ;;  %v1522_v11 = vsel %vm1520_vm0, %v9021_v14, %v9022_v7  ;;  %v1793_v0 = vmul.f32 %v9028_v46, %v1526_v56  ;;  %v1794_v13 = vmul.f32 %v9028_v46, %v1602_v2  ;;  %2430 = vxpose.xlu0.b32.start [1/16] %v2366_v36, 128  ;;  %v9031_v2 = vld [vmem:[#allocation69_spill] sm:$0xff]  ;;  %v9032_v36 = vld [vmem:[#allocation272_spill] sm:$0xff] }
 0x4cf   :  { %9020 = vst [vmem:[#allocation23_spill] sm:$0xff] %v6790_v50  ;;  %v6816_v30 = vsel %vm1520_vm0, %v9030_v60, %v9029_v26  ;;  %v1532_v45 = vsel %vm1520_vm0, %v9026_v43, %v9027_v18  ;;  %v1528_v14 = vsel %vm1520_vm0, %v9023_v52, %v9024_v4  ;;  %v2119_v56 = vmul.f32 %v6739_v62, %v2076_v25  ;;  %v9033_v43 = vld [vmem:[#allocation144_spill] sm:$0xff]  ;;  %v6838_v63 = vpop.permute.xlu1 %2029  ;;  %v2192_v52 = vpop.permute.xlu2 %2191 }
 0x4d0   :  { %v1563_v7 = vsel %vm1520_vm0, %v9032_v36, %v9031_v2  ;;  %v1606_v8 = vmul.f32 %v8999_v22, %v1560_v47  ;;  %v2044_v46 = vsel %vm2039_vm4, %v9018_v20, %v9019_v59  ;;  %v2121_v18 = vmul.f32 %v6739_v62, %v9033_v43  ;;  %9034 = vst [vmem:[#allocation182_spill] sm:$0xff] %v6838_v63  ;;  %v2196_v50 = vpop.permute.xlu0 %2195  ;;  %v9036_v59 = vld [vmem:[#allocation282_spill] sm:$0xff] }
 0x4d1   :  { %v1855_v25 = vadd.f32 %v1791_v12, %v6412_v33  ;;  %v1856_v4 = vadd.f32 %v1792_v53, %v6415_v28  ;;  %v2310_v10 = vmul.f32 %v2192_v52, %v2044_v46  ;;  %v2311_v38 = vmul.f32 %v2192_v52, %v2119_v56  ;;  %v9037_v33 = vld [vmem:[#allocation293_spill] sm:$0xff]  ;;  %v9039_v53 = vld [vmem:[#allocation95_spill] sm:$0xff] }
 0x4d2   :  { %v1857_v47 = vadd.f32 %v1793_v0, %v6536_v55  ;;  %v1858_v61 = vadd.f32 %v1794_v13, %v6545_v34  ;;  %v2312_v31 = vmul.f32 %v2196_v50, %v9035_v58  ;;  %v2313_v20 = vmul.f32 %v2196_v50, %v2121_v18  ;;  %v9038_v12 = vld [vmem:[#allocation333_spill] sm:$0xff]  ;;  %v9042_v13 = vld [vmem:[#allocation86_spill] sm:$0xff] }
 0x4d3   :  { %v1799_v15 = vmul.f32 %v9036_v59, %v1529_v40  ;;  %v1800_v43 = vmul.f32 %v9036_v59, %v1608_v29  ;;  %v6847_v63 = vadd.f32 %v2310_v10, %v1855_v25  ;;  %v6849_v49 = vadd.f32 %v2311_v38, %v1856_v4  ;;  %v9040_v29 = vld [vmem:[#allocation339_spill] sm:$0xff]  ;;  %v9045_v46 = vld [vmem:[#allocation273_spill] sm:$0xff] }
 0x4d4   :  { %v1797_v28 = vmul.f32 %v9037_v33, %v1528_v14  ;;  %v2079_v55 = vsel %vm2039_vm4, %v9039_v53, %v9038_v12  ;;  %v6856_v0 = vadd.f32 %v2312_v31, %v1857_v47  ;;  %v6858_v34 = vadd.f32 %v2313_v20, %v1858_v61  ;;  %v9041_v38 = vld [vmem:[#allocation155_spill] sm:$0xff]  ;;  %v9043_v14 = vld [vmem:[#allocation268_spill] sm:$0xff] }
 0x4d5   :  { %v1594_v58 = vmul.f32 %v8999_v22, %v1554_v39  ;;  %v1614_v40 = vmul.f32 %v8999_v22, %v1564_v27  ;;  %v1798_v10 = vmul.f32 %v9037_v33, %v1606_v8  ;;  %v2080_v50 = vsel %vm2039_vm4, %v9041_v38, %v9040_v29  ;;  %v9044_v31 = vld [vmem:[#allocation75_spill] sm:$0xff]  ;;  %v9046_v8 = vld [vmem:[#allocation280_spill] sm:$0xff] }
 0x4d6   :  { %v1567_v56 = vsel %vm1520_vm0, %v9043_v14, %v9042_v13  ;;  %v1566_v61 = vsel %vm1520_vm0, %v9045_v46, %v9044_v31  ;;  %v1531_v39 = vsel %vm1520_vm0, %v9031_v2, %v9032_v36  ;;  %v1612_v27 = vmul.f32 %v8999_v22, %v1563_v7 }
 0x4d7   :  { %v1785_v18 = vmul.f32 %v9046_v8, %v1522_v11  ;;  %v1786_v52 = vmul.f32 %v9046_v8, %v1594_v58  ;;  %v1863_v25 = vadd.f32 %v1799_v15, %v6560_v16  ;;  %v2125_v4 = vmul.f32 %v6739_v62, %v2079_v55  ;;  %v6890_v2 = vpop.permute.xlu1 %2035  ;;  %v2204_v11 = vpop.permute.xlu2 %2203  ;;  %v9049_v55 = vld [vmem:[#allocation298_spill] sm:$0xff] }
 0x4d8   :  { %v1864_v47 = vadd.f32 %v1800_v43, %v6571_v42  ;;  %v1861_v20 = vadd.f32 %v1797_v28, %v6530_v44  ;;  %v2047_v59 = vsel %vm2039_vm4, %v9038_v12, %v9039_v53  ;;  %9047 = vst [vmem:[#allocation210_spill] sm:$0xff] %v6890_v2  ;;  %v2127_v36 = vmul.f32 %v6739_v62, %v2080_v50  ;;  %v2208_v42 = vpop.permute.xlu0 %2207  ;;  %v9048_v43 = vld [vmem:[#allocation286_spill] sm:$0xff]  ;;  %v9051_v2 = vld [vmem:[#allocation77_spill] sm:$0xff] }
 0x4d9   :  { %v1862_v7 = vadd.f32 %v1798_v10, %v6533_v57  ;;  %v2048_v16 = vsel %vm2039_vm4, %v9040_v29, %v9041_v38  ;;  %v2316_v15 = vmul.f32 %v2204_v11, %v2047_v59  ;;  %v2317_v44 = vmul.f32 %v2204_v11, %v2125_v4  ;;  %v9050_v10 = vld [vmem:[#allocation326_spill] sm:$0xff]  ;;  %v9052_v38 = vld [vmem:[#allocation335_spill] sm:$0xff]  ;;  %v9053_v4 = vld [vmem:[#allocation153_spill] sm:$0xff] }
 0x4da   :  { %v1805_v33 = vmul.f32 %v9048_v43, %v1532_v45  ;;  %v1806_v28 = vmul.f32 %v9048_v43, %v1614_v40  ;;  %v2318_v12 = vmul.f32 %v2208_v42, %v2048_v16  ;;  %v2319_v53 = vmul.f32 %v2208_v42, %v2127_v36 }
 0x4db   :  { %v1803_v58 = vmul.f32 %v9049_v55, %v1531_v39  ;;  %v1804_v50 = vmul.f32 %v9049_v55, %v1612_v27  ;;  %v6902_v8 = vadd.f32 %v2316_v15, %v1861_v20  ;;  %v6904_v57 = vadd.f32 %v2317_v44, %v1862_v7  ;;  %v9054_v39 = vld [vmem:[#allocation277_spill] sm:$0xff]  ;;  %v9056_v44 = vld [vmem:[#allocation303_spill] sm:$0xff] }
 0x4dc   :  { %v2073_v29 = vsel %vm2039_vm4, %v9051_v2, %v9050_v10  ;;  %v2082_v45 = vsel %vm2039_vm4, %v9053_v4, %v9052_v38  ;;  %v6914_v40 = vadd.f32 %v2318_v12, %v1863_v25  ;;  %v6916_v59 = vadd.f32 %v2319_v53, %v1864_v47 }
 0x4dd   :  { %v1789_v27 = vmul.f32 %v9054_v39, %v6749_v17  ;;  %v1620_v20 = vmul.f32 %v8999_v22, %v1567_v56  ;;  %v1534_v36 = vsel %vm1520_vm0, %v9044_v31, %v9045_v46  ;;  %v1618_v11 = vmul.f32 %v8999_v22, %v1566_v61 }
 0x4de   :  { %v1790_v7 = vmul.f32 %v9054_v39, %v6775_v51  ;;  %v1849_v25 = vadd.f32 %v1785_v18, %v6352_v24  ;;  %v1850_v47 = vadd.f32 %v1786_v52, %v6355_v41  ;;  %v1869_v16 = vadd.f32 %v1805_v33, %v6626_v48  ;;  %v9055_v41 = vld [vmem:[#allocation269_spill] sm:$0xff] }
 0x4df   :  { %v1870_v17 = vadd.f32 %v1806_v28, %v6629_v54  ;;  %v1867_v56 = vadd.f32 %v1803_v58, %v6548_v1  ;;  %v2113_v42 = vmul.f32 %v6739_v62, %v2073_v29  ;;  %v2131_v15 = vmul.f32 %v6739_v62, %v2082_v45  ;;  %v2180_v1 = vpop.permute.xlu1 %2179  ;;  %v2216_v54 = vpop.permute.xlu2 %2215  ;;  %v9059_v29 = vld [vmem:[#allocation91_spill] sm:$0xff]  ;;  %v9061_v45 = vld [vmem:[#allocation258_spill] sm:$0xff] }
 0x4e0   :  { %v1868_v31 = vadd.f32 %v1804_v50, %v6557_v19  ;;  %v2041_v51 = vsel %vm2039_vm4, %v9050_v10, %v9051_v2  ;;  %v2050_v24 = vsel %vm2039_vm4, %v9052_v38, %v9053_v4  ;;  %v2133_v48 = vmul.f32 %v6739_v62, %v9055_v41  ;;  %v2220_v18 = vpop.permute.xlu0 %2219  ;;  %v9057_v2 = vld [vmem:[#allocation161_spill] sm:$0xff]  ;;  %v9058_v10 = vld [vmem:[#allocation323_spill] sm:$0xff]  ;;  %v9060_v4 = vld [vmem:[#allocation338_spill] sm:$0xff] }
 0x4e1   :  { %v2304_v46 = vmul.f32 %v2180_v1, %v2041_v51  ;;  %v2305_v61 = vmul.f32 %v2180_v1, %v2113_v42  ;;  %v2322_v52 = vmul.f32 %v2216_v54, %v2050_v24  ;;  %v2323_v19 = vmul.f32 %v2216_v54, %v2131_v15 }
 0x4e2   :  { %v1809_v43 = vmul.f32 %v9056_v44, %v1534_v36  ;;  %v1810_v33 = vmul.f32 %v9056_v44, %v1618_v11  ;;  %v2324_v28 = vmul.f32 %v2220_v18, %v9057_v2  ;;  %v2325_v12 = vmul.f32 %v2220_v18, %v2133_v48  ;;  %v9065_v18 = vld [vmem:[#allocation76_spill] sm:$0xff] }
 0x4e3   :  { %v2368_v53 = vadd.f32 %v2304_v46, %v1849_v25  ;;  %v6949_v55 = vadd.f32 %v2305_v61, %v1850_v47  ;;  %v6951_v58 = vadd.f32 %v2322_v52, %v1867_v56  ;;  %v6953_v50 = vadd.f32 %v2323_v19, %v1868_v31  ;;  %v9063_v31 = vld [vmem:[#allocation290_spill] sm:$0xff] }
 0x4e4   :  { %v2075_v38 = vsel %vm2039_vm4, %v9059_v29, %v9058_v10  ;;  %v2085_v39 = vsel %vm2039_vm4, %v9061_v45, %v9060_v4  ;;  %v6963_v36 = vadd.f32 %v2324_v28, %v1869_v16  ;;  %v6965_v11 = vadd.f32 %v2325_v12, %v1870_v17  ;;  %v9062_v17 = vld [vmem:[#allocation283_spill] sm:$0xff]  ;;  %v9067_v28 = vld [vmem:[#allocation328_spill] sm:$0xff]  ;;  %v9068_v12 = vld [vmem:[#allocation22_spill] sm:$0xff] }
 0x4e5   :  { %v1853_v25 = vadd.f32 %v1789_v27, %v6488_v37  ;;  %v1527_v47 = vsel %vm1520_vm0, %v9029_v26, %v9030_v60  ;;  %v1604_v56 = vmul.f32 %v8999_v22, %v6816_v30  ;;  %v1535_v42 = vsel %vm1520_vm0, %v9042_v13, %v9043_v14  ;;  %2431 = vxpose.xlu0.b32.cont [2/16] %v2368_v53, 128  ;;  %v9064_v14 = vld [vmem:[#allocation162_spill] sm:$0xff] }
 0x4e6   :  { %v1854_v16 = vadd.f32 %v1790_v7, %v6511_v21  ;;  %v1795_v15 = vmul.f32 %v9062_v17, %v1527_v47  ;;  %v1811_v37 = vmul.f32 %v9063_v31, %v1535_v42  ;;  %v1812_v27 = vmul.f32 %v9063_v31, %v1620_v20  ;;  %v9074_v47 = vld [vmem:[#allocation16_spill] sm:$0xff] }
 0x4e7   :  { %v1796_v51 = vmul.f32 %v9062_v17, %v1604_v56  ;;  %v1873_v26 = vadd.f32 %v1809_v43, %v6604_v5  ;;  %v2117_v60 = vmul.f32 %v6739_v62, %v2075_v38  ;;  %v2137_v30 = vmul.f32 %v6739_v62, %v2085_v39  ;;  %v2188_v5 = vpop.permute.xlu1 %2187  ;;  %v2228_v7 = vpop.permute.xlu2 %2227  ;;  %v9073_v39 = vld [vmem:[#allocation341_spill] sm:$0xff]  ;;  %v9075_v56 = vld [vmem:[#allocation200_spill] sm:$0xff]  ;;  %v9077_v17 = vld [vmem:[#allocation347_spill] sm:$0xff] }
 0x4e8   :  { %v1874_v24 = vadd.f32 %v1810_v33, %v6607_v6  ;;  %v2043_v21 = vsel %vm2039_vm4, %v9058_v10, %v9059_v29  ;;  %v2053_v13 = vsel %vm2039_vm4, %v9060_v4, %v9061_v45  ;;  %v2139_v20 = vmul.f32 %v6739_v62, %v9064_v14  ;;  %v2232_v1 = vpop.permute.xlu0 %2231  ;;  %v9069_v10 = vld [vmem:[#allocation8_spill] sm:$0xff]  ;;  %v9072_v4 = vld [vmem:[#allocation113_spill] sm:$0xff] }
 0x4e9   :  { %v2308_v41 = vmul.f32 %v2188_v5, %v2043_v21  ;;  %v2309_v48 = vmul.f32 %v2188_v5, %v2117_v60  ;;  %v2328_v54 = vmul.f32 %v2228_v7, %v2053_v13  ;;  %v2329_v6 = vmul.f32 %v2228_v7, %v2137_v30  ;;  %v9070_v29 = vld [vmem:[#allocation96_spill] sm:$0xff]  ;;  %v9081_v30 = vld [vmem:[#allocation59_spill] sm:$0xff]  ;;  %v9083_v21 = vld [vmem:[#allocation125_spill] sm:$0xff] }
 0x4ea   :  { %v1875_v46 = vadd.f32 %v1811_v37, %v6644_v35  ;;  %v1876_v61 = vadd.f32 %v1812_v27, %v6647_v32  ;;  %v2330_v52 = vmul.f32 %v2232_v1, %v9065_v18  ;;  %v2331_v19 = vmul.f32 %v2232_v1, %v2139_v20  ;;  %v9078_v37 = vld [vmem:[#allocation206_spill] sm:$0xff]  ;;  %v9085_v20 = vld [vmem:[#allocation128_spill] sm:$0xff] }
 0x4eb   :  { %v2372_v44 = vadd.f32 %v2308_v41, %v1853_v25  ;;  %v7000_v43 = vadd.f32 %v2309_v48, %v1854_v16  ;;  %v7002_v33 = vadd.f32 %v2328_v54, %v1873_v26  ;;  %v7004_v2 = vadd.f32 %v2329_v6, %v1874_v24  ;;  %v9076_v16 = vld [vmem:[#allocation150_spill] sm:$0xff]  ;;  %v9080_v26 = vld [vmem:[#allocation203_spill] sm:$0xff]  ;;  %v9082_v24 = vld [vmem:[#allocation45_spill] sm:$0xff] }
 0x4ec   :  { %v2078_v53 = vsel %vm2039_vm4, %v9068_v12, %v9067_v28  ;;  %v2088_v35 = vsel %vm2039_vm4, %v9070_v29, %v9069_v10  ;;  %v7014_v32 = vadd.f32 %v2330_v52, %v1875_v46  ;;  %v7016_v38 = vadd.f32 %v2331_v19, %v1876_v61  ;;  %v9079_v27 = vld [vmem:[#allocation266_spill] sm:$0xff]  ;;  %v9087_v41 = vld [vmem:[#allocation308_spill] sm:$0xff]  ;;  %v9089_v46 = vld [vmem:[#allocation309_spill] sm:$0xff] }
 0x4ed   :  { %9066 = vst [vmem:[#allocation190_spill] sm:$0xff] %v7004_v2  ;;  %v7020_v45 = vadd.f32 %v6660_v23, %v9072_v4  ;;  %v1368_v25 = vadd.f32 %v6678_v3, %v9073_v39  ;;  %v1369_v42 = vadd.f32 %v9075_v56, %v9074_v47  ;;  %v7028_v31 = vadd.f32 %v9077_v17, %v9076_v16  ;;  %v9084_v3 = vld [vmem:[#allocation169_spill] sm:$0xff]  ;;  %v9086_v7 = vld [vmem:[#allocation354_spill] sm:$0xff]  ;;  %v9091_v16 = vld [vmem:[#allocation64_spill] sm:$0xff] }
 0x4ee   :  { %9071 = vst [vmem:[#allocation209_spill] sm:$0xff] %v7016_v38  ;;  %2432 = vxpose.xlu0.b32.cont [3/16] %v9078_v37, 128  ;;  %v7033_v60 = vadd.f32 %v9080_v26, %v9079_v27  ;;  %v1310_v23 = vmul.f32 %v9082_v24, %v9081_v30  ;;  %v1311_v13 = vmul.f32 %v9082_v24, %v9083_v21  ;;  %v9088_v6 = vld [vmem:[#allocation114_spill] sm:$0xff]  ;;  %v9093_v27 = vld [vmem:[#allocation129_spill] sm:$0xff] }
 0x4ef   :  { %v1859_v14 = vadd.f32 %v1795_v15, %v9084_v3  ;;  %v1860_v5 = vadd.f32 %v1796_v51, %v9085_v20  ;;  %v1879_v48 = vadd.f32 %v9087_v41, %v9086_v7  ;;  %v2123_v1 = vmul.f32 %v6739_v62, %v2078_v53  ;;  %v9090_v51 = vld [vmem:[#allocation353_spill] sm:$0xff]  ;;  %v2200_v19 = vpop.permute.xlu1 %2199  ;;  %v2240_v53 = vpop.permute.xlu2 %2239  ;;  %v9092_v17 = vld [vmem:[#allocation294_spill] sm:$0xff]  ;;  %v9097_v20 = vld [vmem:[#allocation23_spill] sm:$0xff] }
 0x4f0   :  { %v2143_v54 = vmul.f32 %v6739_v62, %v2088_v35  ;;  %v1880_v61 = vadd.f32 %v9089_v46, %v9088_v6  ;;  %v2046_v18 = vsel %vm2039_vm4, %v9067_v28, %v9068_v12  ;;  %v2056_v15 = vsel %vm2039_vm4, %v9069_v10, %v9070_v29  ;;  %v2244_v39 = vpop.permute.xlu0 %2243  ;;  %v9094_v28 = vld [vmem:[#allocation295_spill] sm:$0xff]  ;;  %v9095_v26 = vld [vmem:[#allocation46_spill] sm:$0xff]  ;;  %2462 = vxpose.xlu1.b32.start [1/16] %v9097_v20, 128 }
 0x4f1   :  { %v2145_v52 = vmul.f32 %v6739_v62, %v9090_v51  ;;  %v2314_v4 = vmul.f32 %v2200_v19, %v2046_v18  ;;  %v2315_v35 = vmul.f32 %v2200_v19, %v2123_v1  ;;  %v2334_v47 = vmul.f32 %v2240_v53, %v2056_v15  ;;  %v9098_v7 = vld [vmem:[#allocation330_spill] sm:$0xff]  ;;  %v9101_v6 = vld [vmem:[#allocation123_spill] sm:$0xff] }
 0x4f2   :  { %v2335_v56 = vmul.f32 %v2240_v53, %v2143_v54  ;;  %v1881_v37 = vadd.f32 %v9092_v17, %v9091_v16  ;;  %v1882_v12 = vadd.f32 %v9094_v28, %v9093_v27  ;;  %v2336_v30 = vmul.f32 %v2244_v39, %v9095_v26  ;;  %v9099_v41 = vld [vmem:[#allocation30_spill] sm:$0xff]  ;;  %v9100_v54 = vld [vmem:[#allocation29_spill] sm:$0xff]  ;;  %v9114_v28 = vld [vmem:[#allocation288_spill] sm:$0xff] }
 0x4f3   :  { %v2337_v24 = vmul.f32 %v2244_v39, %v2145_v52  ;;  %v7062_v10 = vadd.f32 %v2314_v4, %v1859_v14  ;;  %v7064_v29 = vadd.f32 %v2315_v35, %v1860_v5  ;;  %v2398_v21 = vadd.f32 %v2334_v47, %v1879_v48  ;;  %v9103_v5 = vld [vmem:[#allocation117_spill] sm:$0xff]  ;;  %v9104_v48 = vld [vmem:[#allocation168_spill] sm:$0xff]  ;;  %v9106_v52 = vld [vmem:[#allocation127_spill] sm:$0xff] }
 0x4f4   :  { %v7066_v3 = vadd.f32 %v2335_v56, %v1880_v61  ;;  %v2081_v1 = vsel %vm2039_vm4, %v9099_v41, %v9098_v7  ;;  %v2091_v46 = vsel %vm2039_vm4, %v9101_v6, %v9100_v54  ;;  %v2400_v18 = vadd.f32 %v2336_v30, %v1881_v37  ;;  %v9105_v61 = vld [vmem:[#allocation56_spill] sm:$0xff]  ;;  %v9107_v53 = vld [vmem:[#allocation53_spill] sm:$0xff]  ;;  %v9108_v35 = vld [vmem:[#allocation106_spill] sm:$0xff] }
 0x4f5   :  { %v7077_v14 = vadd.f32 %v2337_v24, %v1882_v12  ;;  %v1374_v15 = vadd.f32 %v1310_v23, %v9103_v5  ;;  %v1320_v51 = vmul.f32 %v9105_v61, %v9104_v48  ;;  %v1321_v19 = vmul.f32 %v9105_v61, %v9106_v52  ;;  %2494 = vxpose.xlu2.b32.start [1/16] %v2398_v21, 128  ;;  %v9109_v39 = vld [vmem:[#allocation49_spill] sm:$0xff]  ;;  %v9110_v56 = vld [vmem:[#allocation126_spill] sm:$0xff]  ;;  %v9112_v37 = vld [vmem:[#allocation287_spill] sm:$0xff] }
 0x4f6   :  { %9096 = vst [vmem:[#allocation174_spill] sm:$0xff] %v7066_v3  ;;  %2433 = vxpose.xlu0.b32.cont [4/16] %v2372_v44, 128  ;;  %v1375_v4 = vadd.f32 %v1311_v13, %v9107_v53  ;;  %v1316_v47 = vmul.f32 %v9109_v39, %v9108_v35  ;;  %v1317_v16 = vmul.f32 %v9109_v39, %v9110_v56  ;;  %v9111_v17 = vld [vmem:[#allocation170_spill] sm:$0xff]  ;;  %v9115_v26 = vld [vmem:[#allocation28_spill] sm:$0xff]  ;;  %v9117_v13 = vld [vmem:[#allocation345_spill] sm:$0xff] }
 0x4f7   :  { %9102 = vst [vmem:[#allocation211_spill] sm:$0xff] %v7077_v14  ;;  %v1865_v27 = vadd.f32 %v9112_v37, %v9111_v17  ;;  %v9113_v23 = vld [vmem:[#allocation14_spill] sm:$0xff]  ;;  %v2129_v21 = vmul.f32 %v6739_v62, %v2081_v1  ;;  %v2149_v44 = vmul.f32 %v6739_v62, %v2091_v46  ;;  %v9118_v20 = vld [vmem:[#allocation315_spill] sm:$0xff]  ;;  %v2049_v48 = vsel %vm2039_vm4, %v9098_v7, %v9099_v41  ;;  %v9119_v52 = vld [vmem:[#allocation36_spill] sm:$0xff]  ;;  %v2212_v35 = vpop.permute.xlu1 %2211  ;;  %v2252_v1 = vpop.permute.xlu2 %2251 }
 0x4f8   :  { %v1866_v12 = vadd.f32 %v9114_v28, %v9113_v23  ;;  %v9116_v30 = vld [vmem:[#allocation314_spill] sm:$0xff]  ;;  %v1886_v5 = vadd.f32 %v9118_v20, %v9117_v13  ;;  %v2059_v61 = vsel %vm2039_vm4, %v9100_v54, %v9101_v6  ;;  %v2151_v53 = vmul.f32 %v6739_v62, %v9119_v52  ;;  %v2256_v56 = vpop.permute.xlu0 %2255  ;;  %v9120_v23 = vld [vmem:[#allocation299_spill] sm:$0xff]  ;;  %v9122_v7 = vld [vmem:[#allocation13_spill] sm:$0xff]  ;;  %2463 = vxpose.xlu1.b32.cont [2/16] %v6949_v55, 128 }
 0x4f9   :  { %v1885_v24 = vadd.f32 %v9116_v30, %v9115_v26  ;;  %v2320_v39 = vmul.f32 %v2212_v35, %v2049_v48  ;;  %v2321_v46 = vmul.f32 %v2212_v35, %v2129_v21  ;;  %v2340_v17 = vmul.f32 %v2252_v1, %v2059_v61  ;;  %v9121_v26 = vld [vmem:[#allocation300_spill] sm:$0xff]  ;;  %v9124_v21 = vld [vmem:[#allocation334_spill] sm:$0xff]  ;;  %v9125_v48 = vld [vmem:[#allocation167_spill] sm:$0xff] }
 0x4fa   :  { %v2341_v37 = vmul.f32 %v2252_v1, %v2149_v44  ;;  %v1887_v28 = vadd.f32 %v9120_v23, %v1368_v25  ;;  %v1888_v30 = vadd.f32 %v9121_v26, %v1369_v42  ;;  %v2342_v41 = vmul.f32 %v2256_v56, %v9122_v7  ;;  %v9126_v44 = vld [vmem:[#allocation84_spill] sm:$0xff]  ;;  %v9131_v55 = vld [vmem:[#allocation17_spill] sm:$0xff]  ;;  %v9135_v23 = vld [vmem:[#allocation87_spill] sm:$0xff] }
 0x4fb   :  { %v2343_v13 = vmul.f32 %v2256_v56, %v2151_v53  ;;  %v7112_v20 = vadd.f32 %v2320_v39, %v1865_v27  ;;  %v7114_v54 = vadd.f32 %v2321_v46, %v1866_v12  ;;  %v7116_v6 = vadd.f32 %v2340_v17, %v1885_v24  ;;  %v9127_v42 = vld [vmem:[#allocation12_spill] sm:$0xff]  ;;  %v9129_v24 = vld [vmem:[#allocation157_spill] sm:$0xff]  ;;  %v9132_v39 = vld [vmem:[#allocation10_spill] sm:$0xff] }
 0x4fc   :  { %v7118_v52 = vadd.f32 %v2341_v37, %v1886_v5  ;;  %v2084_v25 = vsel %vm2039_vm4, %v9125_v48, %v9124_v21  ;;  %v2094_v61 = vsel %vm2039_vm4, %v9127_v42, %v9126_v44  ;;  %v7129_v27 = vadd.f32 %v2342_v41, %v1887_v28  ;;  %v9130_v5 = vld [vmem:[#allocation9_spill] sm:$0xff]  ;;  %v9134_v17 = vld [vmem:[#allocation274_spill] sm:$0xff]  ;;  %v9137_v26 = vld [vmem:[#allocation111_spill] sm:$0xff] }
 0x4fd   :  { %v7131_v12 = vadd.f32 %v2343_v13, %v1888_v30  ;;  %v7134_v53 = vadd.f32 %v1320_v51, %v9129_v24  ;;  %v7137_v35 = vadd.f32 %v1321_v19, %v9130_v5  ;;  %v1380_v1 = vadd.f32 %v1316_v47, %v9131_v55  ;;  %2495 = vxpose.xlu2.b32.cont [2/16] %v2400_v18, 128  ;;  %v9133_v56 = vld [vmem:[#allocation253_spill] sm:$0xff]  ;;  %v9136_v28 = vld [vmem:[#allocation278_spill] sm:$0xff]  ;;  %v9138_v19 = vld [vmem:[#allocation291_spill] sm:$0xff] }
 0x4fe   :  { %9123 = vst [vmem:[#allocation185_spill] sm:$0xff] %v7118_v52  ;;  %2434 = vxpose.xlu0.b32.cont [5/16] %v6847_v63, 128  ;;  %v1381_v46 = vadd.f32 %v1317_v16, %v9132_v39  ;;  %v1582_v37 = vsel %vm1520_vm0, %v9134_v17, %v9133_v56  ;;  %v1581_v51 = vsel %vm1520_vm0, %v9136_v28, %v9135_v23  ;;  %v9139_v7 = vld [vmem:[#allocation130_spill] sm:$0xff]  ;;  %v9140_v47 = vld [vmem:[#allocation292_spill] sm:$0xff]  ;;  %v9141_v41 = vld [vmem:[#allocation181_spill] sm:$0xff] }
 0x4ff   :  { %9128 = vst [vmem:[#allocation213_spill] sm:$0xff] %v7131_v12  ;;  %v1871_v30 = vadd.f32 %v9138_v19, %v9137_v26  ;;  %v1872_v18 = vadd.f32 %v9140_v47, %v9139_v7  ;;  %v9142_v63 = vld [vmem:[#allocation319_spill] sm:$0xff]  ;;  %v2135_v16 = vmul.f32 %v6739_v62, %v2084_v25  ;;  %v2155_v24 = vmul.f32 %v6739_v62, %v2094_v61  ;;  %v9143_v5 = vld [vmem:[#allocation320_spill] sm:$0xff]  ;;  %v2224_v47 = vpop.permute.xlu1 %2223  ;;  %v2264_v25 = vpop.permute.xlu2 %2263  ;;  %v9146_v14 = vld [vmem:[#allocation305_spill] sm:$0xff] }
 0x500   :  { %v1891_v13 = vadd.f32 %v9142_v63, %v9141_v41  ;;  %v1892_v55 = vadd.f32 %v9143_v5, %v7020_v45  ;;  %v2052_v39 = vsel %vm2039_vm4, %v9124_v21, %v9125_v48  ;;  %v2062_v26 = vsel %vm2039_vm4, %v9126_v44, %v9127_v42  ;;  %v9144_v19 = vld [vmem:[#allocation352_spill] sm:$0xff]  ;;  %v2268_v63 = vpop.permute.xlu0 %2267  ;;  %v9147_v21 = vld [vmem:[#allocation42_spill] sm:$0xff] }
 0x501   :  { %v2157_v7 = vmul.f32 %v6739_v62, %v9144_v19  ;;  %v2326_v41 = vmul.f32 %v2224_v47, %v2052_v39  ;;  %v2327_v61 = vmul.f32 %v2224_v47, %v2135_v16  ;;  %v2346_v12 = vmul.f32 %v2264_v25, %v2062_v26  ;;  %v9145_v5 = vld [vmem:[#allocation304_spill] sm:$0xff]  ;;  %v9148_v39 = vld [vmem:[#allocation350_spill] sm:$0xff]  ;;  %v9149_v16 = vld [vmem:[#allocation337_spill] sm:$0xff] }
 0x502   :  { %v2347_v45 = vmul.f32 %v2264_v25, %v2155_v24  ;;  %v1893_v52 = vadd.f32 %v9145_v5, %v1374_v15  ;;  %v1894_v38 = vadd.f32 %v9146_v14, %v1375_v4  ;;  %v2348_v48 = vmul.f32 %v2268_v63, %v9147_v21  ;;  %2464 = vxpose.xlu1.b32.cont [3/16] %v9148_v39, 128  ;;  %v9150_v26 = vld [vmem:[#allocation15_spill] sm:$0xff]  ;;  %v9151_v24 = vld [vmem:[#allocation90_spill] sm:$0xff]  ;;  %v9162_v39 = vld [vmem:[#allocation312_spill] sm:$0xff] }
 0x503   :  { %v2349_v3 = vmul.f32 %v2268_v63, %v2157_v7  ;;  %v7173_v2 = vadd.f32 %v2326_v41, %v1871_v30  ;;  %v7175_v44 = vadd.f32 %v2327_v61, %v1872_v18  ;;  %v7177_v42 = vadd.f32 %v2346_v12, %v1891_v13  ;;  %v9152_v14 = vld [vmem:[#allocation355_spill] sm:$0xff]  ;;  %v9154_v12 = vld [vmem:[#allocation82_spill] sm:$0xff]  ;;  %v9156_v7 = vld [vmem:[#allocation349_spill] sm:$0xff] }
 0x504   :  { %v7179_v19 = vadd.f32 %v2347_v45, %v1892_v55  ;;  %v2087_v15 = vsel %vm2039_vm4, %v9150_v26, %v9149_v16  ;;  %v2097_v4 = vsel %vm2039_vm4, %v9152_v14, %v9151_v24  ;;  %v7190_v30 = vadd.f32 %v2348_v48, %v1893_v52  ;;  %v9155_v13 = vld [vmem:[#allocation55_spill] sm:$0xff]  ;;  %v9157_v61 = vld [vmem:[#allocation109_spill] sm:$0xff]  ;;  %v9235_v9 = vld [vmem:[#allocation190_spill] sm:$0xff] }
 0x505   :  { %v7192_v18 = vadd.f32 %v2349_v3, %v1894_v38  ;;  %v1322_v55 = vmul.f32 %v9155_v13, %v9154_v12  ;;  %v1323_v47 = vmul.f32 %v9155_v13, %v9156_v7  ;;  %v1650_v25 = vmul.f32 %v8999_v22, %v1582_v37  ;;  %v9158_v38 = vld [vmem:[#allocation296_spill] sm:$0xff]  ;;  %v9159_v63 = vld [vmem:[#allocation171_spill] sm:$0xff]  ;;  %v9160_v45 = vld [vmem:[#allocation297_spill] sm:$0xff] }
 0x506   :  { %v1549_v41 = vsel %vm1520_vm0, %v9135_v23, %v9136_v28  ;;  %2435 = vxpose.xlu0.b32.cont [6/16] %v6856_v0, 128  ;;  %v1648_v52 = vmul.f32 %v8999_v22, %v1581_v51  ;;  %v1877_v3 = vadd.f32 %v9158_v38, %v9157_v61  ;;  %v1878_v5 = vadd.f32 %v9160_v45, %v9159_v63  ;;  %v9161_v21 = vld [vmem:[#allocation311_spill] sm:$0xff]  ;;  %v9163_v37 = vld [vmem:[#allocation324_spill] sm:$0xff]  ;;  %v9164_v0 = vld [vmem:[#allocation325_spill] sm:$0xff] }
 0x507   :  { %9153 = vst [vmem:[#allocation193_spill] sm:$0xff] %v7192_v18  ;;  %v1899_v48 = vadd.f32 %v9161_v21, %v1380_v1  ;;  %v1900_v12 = vadd.f32 %v9162_v39, %v1381_v46  ;;  %v1897_v13 = vadd.f32 %v9163_v37, %v7028_v31  ;;  %v2141_v7 = vmul.f32 %v6739_v62, %v2087_v15  ;;  %v9165_v46 = vld [vmem:[#allocation48_spill] sm:$0xff]  ;;  %v2236_v61 = vpop.permute.xlu1 %2235  ;;  %v2276_v15 = vpop.permute.xlu2 %2275  ;;  %v9166_v21 = vld [vmem:[#allocation327_spill] sm:$0xff] }
 0x508   :  { %v2161_v23 = vmul.f32 %v6739_v62, %v2097_v4  ;;  %v1898_v28 = vadd.f32 %v9164_v0, %v7033_v60  ;;  %v2055_v51 = vsel %vm2039_vm4, %v9149_v16, %v9150_v26  ;;  %v2065_v1 = vsel %vm2039_vm4, %v9151_v24, %v9152_v14  ;;  %v2280_v63 = vpop.permute.xlu0 %2279  ;;  %v9167_v16 = vld [vmem:[#allocation19_spill] sm:$0xff] }
 0x509   :  { %v2163_v31 = vmul.f32 %v6739_v62, %v9165_v46  ;;  %v2332_v38 = vmul.f32 %v2236_v61, %v2055_v51  ;;  %v2333_v4 = vmul.f32 %v2236_v61, %v2141_v7  ;;  %v2352_v45 = vmul.f32 %v2276_v15, %v2065_v1  ;;  %v9168_v7 = vld [vmem:[#allocation340_spill] sm:$0xff]  ;;  %v9169_v51 = vld [vmem:[#allocation58_spill] sm:$0xff]  ;;  %v9174_v61 = vld [vmem:[#allocation271_spill] sm:$0xff] }
 0x50a   :  { %v2353_v60 = vmul.f32 %v2276_v15, %v2161_v23  ;;  %v1839_v39 = vmul.f32 %v9166_v21, %v1549_v41  ;;  %v1840_v37 = vmul.f32 %v9166_v21, %v1648_v52  ;;  %v2354_v26 = vmul.f32 %v2280_v63, %v9167_v16  ;;  %2465 = vxpose.xlu1.b32.cont [4/16] %v7000_v43, 128  ;;  %v9170_v23 = vld [vmem:[#allocation65_spill] sm:$0xff]  ;;  %v9171_v52 = vld [vmem:[#allocation172_spill] sm:$0xff]  ;;  %v9175_v15 = vld [vmem:[#allocation342_spill] sm:$0xff] }
 0x50b   :  { %v2355_v0 = vmul.f32 %v2280_v63, %v2163_v31  ;;  %v7230_v18 = vadd.f32 %v2332_v38, %v1877_v3  ;;  %v7232_v24 = vadd.f32 %v2333_v4, %v1878_v5  ;;  %v7234_v14 = vadd.f32 %v2352_v45, %v1897_v13  ;;  %v9172_v13 = vld [vmem:[#allocation52_spill] sm:$0xff]  ;;  %v9173_v31 = vld [vmem:[#allocation62_spill] sm:$0xff]  ;;  %v9177_v45 = vld [vmem:[#allocation71_spill] sm:$0xff] }
 0x50c   :  { %v7236_v46 = vadd.f32 %v2353_v60, %v1898_v28  ;;  %v2090_v41 = vsel %vm2039_vm4, %v9169_v51, %v9168_v7  ;;  %v2100_v1 = vsel %vm2039_vm4, %v9171_v52, %v9170_v23  ;;  %v7247_v3 = vadd.f32 %v2354_v26, %v1899_v48  ;;  %v9176_v63 = vld [vmem:[#allocation348_spill] sm:$0xff]  ;;  %v9179_v21 = vld [vmem:[#allocation313_spill] sm:$0xff] }
 0x50d   :  { %v7249_v5 = vadd.f32 %v2355_v0, %v1900_v12  ;;  %v1326_v28 = vmul.f32 %v9173_v31, %v9172_v13  ;;  %v1327_v43 = vmul.f32 %v9173_v31, %v9174_v61  ;;  %v1386_v38 = vadd.f32 %v1322_v55, %v9175_v15  ;;  %v9178_v12 = vld [vmem:[#allocation301_spill] sm:$0xff]  ;;  %v9180_v0 = vld [vmem:[#allocation18_spill] sm:$0xff] }
 0x50e   :  { %v1550_v4 = vsel %vm1520_vm0, %v9133_v56, %v9134_v17  ;;  %2436 = vxpose.xlu0.b32.cont [7/16] %v7062_v10, 128  ;;  %v1387_v48 = vadd.f32 %v1323_v47, %v9176_v63  ;;  %v1883_v60 = vadd.f32 %v9178_v12, %v9177_v45  ;;  %v1842_v26 = vmul.f32 %v9179_v21, %v1650_v25  ;;  %v9181_v13 = vld [vmem:[#allocation302_spill] sm:$0xff]  ;;  %v9182_v25 = vld [vmem:[#allocation184_spill] sm:$0xff] }
 0x50f   :  { %v1841_v16 = vmul.f32 %v9179_v21, %v1550_v4  ;;  %v1884_v31 = vadd.f32 %v9181_v13, %v9180_v0  ;;  %v1903_v55 = vadd.f32 %v1839_v39, %v7134_v53  ;;  %v2147_v61 = vmul.f32 %v6739_v62, %v2090_v41  ;;  %v2248_v53 = vpop.permute.xlu1 %2247  ;;  %v2288_v39 = vpop.permute.xlu2 %2287  ;;  %v9183_v12 = vld [vmem:[#allocation40_spill] sm:$0xff] }
 0x510   :  { %v2167_v56 = vmul.f32 %v6739_v62, %v2100_v1  ;;  %v1904_v10 = vadd.f32 %v1840_v37, %v7137_v35  ;;  %v2058_v17 = vsel %vm2039_vm4, %v9168_v7, %v9169_v51  ;;  %v2068_v47 = vsel %vm2039_vm4, %v9170_v23, %v9171_v52  ;;  %v2292_v1 = vpop.permute.xlu0 %2291  ;;  %v9184_v52 = vld [vmem:[#allocation24_spill] sm:$0xff] }
 0x511   :  { %v2169_v15 = vmul.f32 %v6739_v62, %v9182_v25  ;;  %v2338_v41 = vmul.f32 %v2248_v53, %v2058_v17  ;;  %v2339_v4 = vmul.f32 %v2248_v53, %v2147_v61  ;;  %v2358_v63 = vmul.f32 %v2288_v39, %v2068_v47  ;;  %v9185_v17 = vld [vmem:[#allocation173_spill] sm:$0xff]  ;;  %v9192_v25 = vld [vmem:[#allocation158_spill] sm:$0xff] }
 0x512   :  { %v2359_v35 = vmul.f32 %v2288_v39, %v2167_v56  ;;  %v1905_v37 = vadd.f32 %v1841_v16, %v1386_v38  ;;  %v1906_v45 = vadd.f32 %v1842_v26, %v1387_v48  ;;  %v2360_v21 = vmul.f32 %v2292_v1, %v9183_v12  ;;  %2466 = vxpose.xlu1.b32.cont [5/16] %v6849_v49, 128  ;;  %v9186_v56 = vld [vmem:[#allocation112_spill] sm:$0xff]  ;;  %v9187_v38 = vld [vmem:[#allocation34_spill] sm:$0xff]  ;;  %v9199_v12 = vld [vmem:[#allocation275_spill] sm:$0xff] }
 0x513   :  { %v2361_v7 = vmul.f32 %v2292_v1, %v2169_v15  ;;  %v2402_v51 = vadd.f32 %v2338_v41, %v1883_v60  ;;  %v7283_v0 = vadd.f32 %v2339_v4, %v1884_v31  ;;  %v7285_v13 = vadd.f32 %v2358_v63, %v1903_v55  ;;  %v9188_v26 = vld [vmem:[#allocation224_spill] sm:$0xff]  ;;  %v9189_v31 = vld [vmem:[#allocation201_spill] sm:$0xff]  ;;  %v9190_v49 = vld [vmem:[#allocation70_spill] sm:$0xff] }
 0x514   :  { %v7287_v23 = vadd.f32 %v2359_v35, %v1904_v10  ;;  %v2093_v61 = vsel %vm2039_vm4, %v9185_v17, %v9184_v52  ;;  %v2103_v48 = vsel %vm2039_vm4, %v9187_v38, %v9186_v56  ;;  %v7298_v16 = vadd.f32 %v2360_v21, %v1905_v37  ;;  %v9191_v10 = vld [vmem:[#allocation175_spill] sm:$0xff]  ;;  %v9193_v15 = vld [vmem:[#allocation178_spill] sm:$0xff]  ;;  %v9194_v39 = vld [vmem:[#allocation336_spill] sm:$0xff] }
 0x515   :  { %v7300_v60 = vadd.f32 %v2361_v7, %v1906_v45  ;;  %v1026_v55 = vsel %vm1001_vm5, %v9189_v31, %v9188_v26  ;;  %v1370_v47 = vadd.f32 %v9191_v10, %v9190_v49  ;;  %v1371_v53 = vadd.f32 %v9193_v15, %v9192_v25  ;;  %2496 = vxpose.xlu2.b32.cont [3/16] %v2402_v51, 128  ;;  %v9195_v41 = vld [vmem:[#allocation119_spill] sm:$0xff]  ;;  %v9196_v1 = vld [vmem:[#allocation160_spill] sm:$0xff]  ;;  %v9200_v7 = vld [vmem:[#allocation306_spill] sm:$0xff] }
 0x516   :  { %2437 = vxpose.xlu0.b32.cont [8/16] %v6902_v8, 128  ;;  %v1120_v4 = vmul.f32 %v9195_v41, %v9194_v39  ;;  %v1390_v63 = vadd.f32 %v1326_v28, %v9196_v1  ;;  %v9197_v35 = vld [vmem:[#allocation159_spill] sm:$0xff]  ;;  %v2153_v51 = vmul.f32 %v6739_v62, %v2093_v61  ;;  %v2173_v8 = vmul.f32 %v6739_v62, %v2103_v48  ;;  %v9203_v15 = vld [vmem:[#allocation332_spill] sm:$0xff] }
 0x517   :  { %v1391_v37 = vadd.f32 %v1327_v43, %v9197_v35  ;;  %v9198_v45 = vld [vmem:[#allocation251_spill] sm:$0xff]  ;;  %v1889_v26 = vadd.f32 %v9200_v7, %v1370_v47  ;;  %v2061_v28 = vsel %vm2039_vm4, %v9184_v52, %v9185_v17  ;;  %v2071_v43 = vsel %vm2039_vm4, %v9186_v56, %v9187_v38  ;;  %v2260_v47 = vpop.permute.xlu1 %2259  ;;  %v9204_v7 = vld [vmem:[#allocation100_spill] sm:$0xff] }
 0x518   :  { %v1577_v21 = vsel %vm1520_vm0, %v9199_v12, %v9198_v45  ;;  %v9201_v31 = vld [vmem:[#allocation307_spill] sm:$0xff]  ;;  %v2344_v1 = vmul.f32 %v2260_v47, %v2061_v28  ;;  %v2345_v61 = vmul.f32 %v2260_v47, %v2153_v51  ;;  %v9208_v28 = vld [vmem:[#allocation121_spill] sm:$0xff]  ;;  %v9209_v47 = vld [vmem:[#allocation78_spill] sm:$0xff] }
 0x519   :  { %v1890_v49 = vadd.f32 %v9201_v31, %v1371_v53  ;;  %v9202_v10 = vld [vmem:[#allocation331_spill] sm:$0xff]  ;;  %v1910_v39 = vadd.f32 %v9203_v15, %v1391_v37  ;;  %v2300_v53 = vpop.permute.xlu2 %2299  ;;  %v9206_v31 = vld [vmem:[#allocation33_spill] sm:$0xff]  ;;  %v1640_v17 = vmul.f32 %v8999_v22, %v1577_v21  ;;  %v1545_v22 = vsel %vm1520_vm0, %v9198_v45, %v9199_v12 }
 0x51a   :  { %v1909_v25 = vadd.f32 %v9202_v10, %v1390_v63  ;;  %v2364_v35 = vmul.f32 %v2300_v53, %v2071_v43  ;;  %v2365_v48 = vmul.f32 %v2300_v53, %v2173_v8  ;;  %v9205_v63 = vld [vmem:[#allocation143_spill] sm:$0xff]  ;;  %v1312_v10 = vmul.f32 %v9206_v31, %v1120_v4  ;;  %2467 = vxpose.xlu1.b32.cont [6/16] %v6858_v34, 128  ;;  %v9207_v8 = vld [vmem:[#allocation85_spill] sm:$0xff] }
 0x51b   :  { %v542_v37 = vsel %vm482_vm2, %v9205_v63, %v9204_v7  ;;  %v1313_v52 = vmul.f32 %v9206_v31, %v1026_v55  ;;  %v7340_v15 = vadd.f32 %v2344_v1, %v1889_v26  ;;  %v7342_v56 = vadd.f32 %v2345_v61, %v1890_v49  ;;  %v9210_v53 = vld [vmem:[#allocation35_spill] sm:$0xff]  ;;  %v9211_v55 = vld [vmem:[#allocation108_spill] sm:$0xff] }
 0x51c   :  { %v7344_v38 = vadd.f32 %v2364_v35, %v1909_v25  ;;  %v7346_v51 = vadd.f32 %v2365_v48, %v1910_v39  ;;  %v857_v43 = vadd.f32 %v9208_v28, %v9207_v8  ;;  %v858_v4 = vadd.f32 %v9210_v53, %v9209_v47  ;;  %v9212_v21 = vld [vmem:[#allocation187_spill] sm:$0xff]  ;;  %v9213_v49 = vld [vmem:[#allocation204_spill] sm:$0xff]  ;;  %v9215_v39 = vld [vmem:[#allocation310_spill] sm:$0xff] }
 0x51d   :  { %v2096_v26 = vsel %vm2039_vm4, %v9212_v21, %v9211_v55  ;;  %v9214_v25 = vld [vmem:[#allocation227_spill] sm:$0xff]  ;;  %v1831_v1 = vmul.f32 %v9215_v39, %v1545_v22  ;;  %v1832_v61 = vmul.f32 %v9215_v39, %v1640_v17  ;;  %2497 = vxpose.xlu2.b32.cont [4/16] %v7116_v6, 128  ;;  %v9216_v35 = vld [vmem:[#allocation54_spill] sm:$0xff]  ;;  %v510_v12 = vsel %vm482_vm2, %v9204_v7, %v9205_v63  ;;  %v9217_v28 = vld [vmem:[#allocation176_spill] sm:$0xff] }
 0x51e   :  { %v1061_v34 = vsel %vm1001_vm5, %v9214_v25, %v9213_v49  ;;  %2438 = vxpose.xlu0.b32.cont [9/16] %v6914_v40, 128  ;;  %v607_v45 = vmul.f32 %v9216_v35, %v542_v37  ;;  %v1376_v48 = vadd.f32 %v1312_v10, %v857_v43  ;;  %v1377_v31 = vadd.f32 %v1313_v52, %v858_v4  ;;  %v2859_v63 = vld [vmem:[#allocation2 + $0x1b0] sm:$0xff]  ;;  %v9218_v10 = vld [vmem:[#allocation60_spill] sm:$0xff]  ;;  %v2860_v43 = vld [vmem:[#allocation2 + $0x1b8] sm:$0xff] }
 0x51f   :  { %v2159_v8 = vmul.f32 %v6739_v62, %v2096_v26  ;;  %v800_v53 = vmul.f32 %v9217_v28, %v510_v12  ;;  %v1126_v17 = vmul.f32 %v9195_v41, %v1061_v34  ;;  %v2064_v40 = vsel %vm2039_vm4, %v9211_v55, %v9212_v21  ;;  %v2272_v6 = vpop.permute.xlu1 %2271  ;;  %v9219_v26 = vld [vmem:[#allocation105_spill] sm:$0xff]  ;;  %v9221_v21 = vld [vmem:[#allocation39_spill] sm:$0xff] }
 0x520   :  { %v799_v47 = vmul.f32 %v9217_v28, %v607_v45  ;;  %v1895_v37 = vadd.f32 %v1831_v1, %v1376_v48  ;;  %v1896_v22 = vadd.f32 %v1832_v61, %v1377_v31  ;;  %v2350_v39 = vmul.f32 %v2272_v6, %v2064_v40  ;;  %v9220_v45 = vld [vmem:[#allocation146_spill] sm:$0xff]  ;;  %v9222_v31 = vld [vmem:[#allocation116_spill] sm:$0xff] }
 0x521   :  { %v2351_v7 = vmul.f32 %v2272_v6, %v2159_v8  ;;  %v344_v52 = vmul.f32 %v2859_v63, %v9218_v10  ;;  %v345_v4 = vmul.f32 %v2860_v43, %v9218_v10  ;;  %v545_v34 = vsel %vm482_vm2, %v9220_v45, %v9219_v26  ;;  %v9223_v8 = vld [vmem:[#allocation182_spill] sm:$0xff]  ;;  %v9224_v63 = vld [vmem:[#allocation207_spill] sm:$0xff]  ;;  %v9228_v43 = vld [vmem:[#allocation317_spill] sm:$0xff] }
 0x522   :  { %v1029_v55 = vsel %vm1001_vm5, %v9213_v49, %v9214_v25  ;;  %v1318_v1 = vmul.f32 %v9221_v21, %v1126_v17  ;;  %v2414_v12 = vadd.f32 %v2350_v39, %v1895_v37  ;;  %2468 = vxpose.xlu1.b32.cont [7/16] %v7064_v29, 128  ;;  %v2099_v28 = vsel %vm2039_vm4, %v9223_v8, %v9222_v31  ;;  %v9225_v10 = vld [vmem:[#allocation230_spill] sm:$0xff] }
 0x523   :  { %v1319_v61 = vmul.f32 %v9221_v21, %v1029_v55  ;;  %v7394_v48 = vadd.f32 %v2351_v7, %v1896_v22  ;;  %v863_v40 = vadd.f32 %v799_v47, %v344_v52  ;;  %v864_v6 = vadd.f32 %v800_v53, %v345_v4  ;;  %v9226_v53 = vld [vmem:[#allocation179_spill] sm:$0xff]  ;;  %v9229_v55 = vld [vmem:[#allocation66_spill] sm:$0xff] }
 0x524   :  { %v1064_v49 = vsel %vm1001_vm5, %v9225_v10, %v9224_v63  ;;  %v613_v25 = vmul.f32 %v9216_v35, %v545_v34  ;;  %v513_v29 = vsel %vm482_vm2, %v9219_v26, %v9220_v45  ;;  %v2165_v47 = vmul.f32 %v6739_v62, %v2099_v28  ;;  %v9227_v35 = vld [vmem:[#allocation316_spill] sm:$0xff]  ;;  %v9230_v28 = vld [vmem:[#allocation43_spill] sm:$0xff] }
 0x525   :  { %2498 = vxpose.xlu2.b32.cont [5/16] %v7129_v27, 128  ;;  %v1382_v17 = vadd.f32 %v1318_v1, %v863_v40  ;;  %v1383_v37 = vadd.f32 %v1319_v61, %v864_v6  ;;  %v806_v39 = vmul.f32 %v9226_v53, %v513_v29  ;;  %v1132_v7 = vmul.f32 %v9195_v41, %v1064_v49  ;;  %v2861_v34 = vld [vmem:[#allocation2 + $0x1e0] sm:$0xff]  ;;  %v2862_v1 = vld [vmem:[#allocation2 + $0x1e8] sm:$0xff] }
 0x526   :  { %2439 = vxpose.xlu0.b32.cont [10/16] %v7112_v20, 128  ;;  %v805_v22 = vmul.f32 %v9226_v53, %v613_v25  ;;  %v2067_v20 = vsel %vm2039_vm4, %v9222_v31, %v9223_v8  ;;  %v350_v21 = vmul.f32 %v2861_v34, %v9229_v55  ;;  %v351_v61 = vmul.f32 %v2862_v1, %v9229_v55  ;;  %v9231_v49 = vld [vmem:[#allocation101_spill] sm:$0xff]  ;;  %v9232_v25 = vld [vmem:[#allocation210_spill] sm:$0xff] }
 0x527   :  { %v2284_v27 = vpop.permute.xlu1 %2283  ;;  %v1901_v52 = vadd.f32 %v9227_v35, %v1382_v17  ;;  %v1902_v4 = vadd.f32 %v9228_v43, %v1383_v37  ;;  %v1032_v41 = vsel %vm1001_vm5, %v9224_v63, %v9225_v10  ;;  %v1324_v31 = vmul.f32 %v9230_v28, %v1132_v7  ;;  %v9233_v7 = vld [vmem:[#allocation321_spill] sm:$0xff] }
 0x528   :  { %v2356_v26 = vmul.f32 %v2284_v27, %v2067_v20  ;;  %v2357_v45 = vmul.f32 %v2284_v27, %v2165_v47  ;;  %v1325_v8 = vmul.f32 %v9230_v28, %v1032_v41  ;;  %v2102_v29 = vsel %vm2039_vm4, %v9232_v25, %v9231_v49  ;;  %v9234_v27 = vld [vmem:[#allocation322_spill] sm:$0xff] }
 0x529   :  { %v869_v17 = vadd.f32 %v805_v22, %v350_v21  ;;  %v870_v37 = vadd.f32 %v806_v39, %v351_v61  ;;  %v2171_v47 = vmul.f32 %v6739_v62, %v2102_v29  ;;  %v9236_v62 = vld [vmem:[#allocation174_spill] sm:$0xff] }
 0x52a   :  { %v2420_v40 = vadd.f32 %v2356_v26, %v1901_v52  ;;  %v7430_v6 = vadd.f32 %v2357_v45, %v1902_v4  ;;  %2469 = vxpose.xlu1.b32.cont [8/16] %v6904_v57, 128  ;;  %v2070_v57 = vsel %vm2039_vm4, %v9231_v49, %v9232_v25 }
 0x52b   :  { %v1388_v63 = vadd.f32 %v1324_v31, %v869_v17  ;;  %v1389_v10 = vadd.f32 %v1325_v8, %v870_v37 }
 0x52d   :  { %2499 = vxpose.xlu2.b32.cont [6/16] %v7340_v15, 128  ;;  %v1907_v20 = vadd.f32 %v9233_v7, %v1388_v63  ;;  %v1908_v35 = vadd.f32 %v9234_v27, %v1389_v10 }
 0x52e   :  { %2440 = vxpose.xlu0.b32.cont [11/16] %v6951_v58, 128  ;;  %v9238_v58 = vld [vmem:[#allocation211_spill] sm:$0xff] }
 0x52f   :  { %v2296_v53 = vpop.permute.xlu1 %2295 }
 0x530   :  { %v2362_v22 = vmul.f32 %v2296_v53, %v2070_v57  ;;  %v2363_v39 = vmul.f32 %v2296_v53, %v2171_v47 }
 0x532   :  { %v2426_v52 = vadd.f32 %v2362_v22, %v1907_v20  ;;  %v7446_v15 = vadd.f32 %v2363_v39, %v1908_v35  ;;  %2470 = vxpose.xlu1.b32.cont [9/16] %v6916_v59, 128  ;;  %v9237_v59 = vld [vmem:[#allocation209_spill] sm:$0xff] }
 0x535   :  { %2500 = vxpose.xlu2.b32.cont [7/16] %v7177_v42, 128 }
 0x536   :  { %2441 = vxpose.xlu0.b32.cont [12/16] %v6963_v36, 128  ;;  %v2558_v36 = vld [vmem:[%s7563_s2] sm:$0x3]  ;;  %s2928_s2 = smov [#allocation5]  }
 0x537   :  { %v7501_v55 = vperm.slane %v2558_v36, 1  ;;  %s2696_s6 = sshll.u32 %s2928_s2, 4  ;;  %s2697_s6 = int_to_ptr.vmem [resolvable:$true] %s2696_s6 }
 0x53a   :  { %2471 = vxpose.xlu1.b32.cont [10/16] %v7114_v54, 128 }
 0x53d   :  { %2501 = vxpose.xlu2.b32.cont [8/16] %v7190_v30, 128 }
 0x53e   :  { %2442 = vxpose.xlu0.b32.cont [13/16] %v7173_v2, 128 }
 0x542   :  { %2472 = vxpose.xlu1.b32.cont [11/16] %v6953_v50, 128  ;;  %v9239_v50 = vld [vmem:[#allocation185_spill] sm:$0xff] }
 0x545   :  { %2502 = vxpose.xlu2.b32.cont [9/16] %v2414_v12, 128 }
 0x546   :  { %2443 = vxpose.xlu0.b32.cont [14/16] %v7002_v33, 128  ;;  %v7476_v33 = vperm.slane %v2558_v36, 0 }
 0x54a   :  { %2473 = vxpose.xlu1.b32.cont [12/16] %v6965_v11, 128  ;;  %v9240_v11 = vld [vmem:[#allocation213_spill] sm:$0xff] }
 0x54d   :  { %2503 = vxpose.xlu2.b32.cont [10/16] %v7234_v14, 128 }
 0x54e   :  { %2444 = vxpose.xlu0.b32.cont [15/16] %v7014_v32, 128 }
 0x552   :  { %2474 = vxpose.xlu1.b32.cont [13/16] %v7175_v44, 128 }
 0x555   :  { %2504 = vxpose.xlu2.b32.cont [11/16] %v7247_v3, 128 }
 0x556   :  { %2445 = vxpose.xlu0.b32.end [16/16] %v7230_v18, 128  ;;  %v9241_v18 = vld [vmem:[#allocation193_spill] sm:$0xff] }
 0x55a   :  { %2475 = vxpose.xlu1.b32.cont [14/16] %v9235_v9, 128 }
 0x55d   :  { %2505 = vxpose.xlu2.b32.cont [12/16] %v2420_v40, 128 }
 0x55e   :  { %2526 = vxpose.xlu0.b32.start [1/16] %v9236_v62, 128 }
 0x562   :  { %2476 = vxpose.xlu1.b32.cont [15/16] %v9237_v59, 128 }
 0x565   :  { %2506 = vxpose.xlu2.b32.cont [13/16] %v7285_v13, 128 }
 0x566   :  { %2527 = vxpose.xlu0.b32.cont [2/16] %v9238_v58, 128 }
 0x56a   :  { %2477 = vxpose.xlu1.b32.end [16/16] %v7232_v24, 128 }
 0x56d   :  { %2507 = vxpose.xlu2.b32.cont [14/16] %v7298_v16, 128 }
 0x56e   :  { %2528 = vxpose.xlu0.b32.cont [3/16] %v7283_v0, 128 }
 0x575   :  { %2508 = vxpose.xlu2.b32.cont [15/16] %v2426_v52, 128 }
 0x576   :  { %2529 = vxpose.xlu0.b32.cont [4/16] %v9239_v50, 128 }
 0x57d   :  { %2509 = vxpose.xlu2.b32.end [16/16] %v7344_v38, 128 }
 0x57e   :  { %2530 = vxpose.xlu0.b32.cont [5/16] %v9240_v11, 128 }
 0x582   :  { %v2446_v2 = vpop.trf.xlu0 }
 0x583   :  { %v2564_v32 = vadd.f32 %v7476_v33, %v2446_v2 }
 0x585   :  { %2628 = vst [vmem:[#allocation5] sm:$0xff] %v2564_v32 }
 0x586   :  { %2531 = vxpose.xlu0.b32.cont [6/16] %v7342_v56, 128 }
 0x58a   :  { %v2447_v54 = vpop.trf.xlu0 }
 0x58b   :  { %v2566_v44 = vadd.f32 %v7476_v33, %v2447_v54 }
 0x58d   :  { %2630 = vst [vmem:[#allocation5 + $0x10] sm:$0xff] %v2566_v44 }
 0x58e   :  { %2532 = vxpose.xlu0.b32.cont [7/16] %v7179_v19, 128 }
 0x592   :  { %v2448_v42 = vpop.trf.xlu0 }
 0x593   :  { %v2568_v30 = vadd.f32 %v7476_v33, %v2448_v42 }
 0x595   :  { %2632 = vst [vmem:[#allocation5 + $0x20] sm:$0xff] %v2568_v30 }
 0x596   :  { %2533 = vxpose.xlu0.b32.cont [8/16] %v9241_v18, 128  ;;  %v2478_v34 = vpop.trf.xlu1 }
 0x597   :  { %v2596_v21 = vadd.f32 %v7476_v33, %v2478_v34 }
 0x599   :  { %2660 = vst [vmem:[#allocation5 + $0x100] sm:$0xff] %v2596_v21 }
 0x59a   :  { %v2449_v24 = vpop.trf.xlu0 }
 0x59b   :  { %v2570_v14 = vadd.f32 %v7476_v33, %v2449_v24 }
 0x59d   :  { %2634 = vst [vmem:[#allocation5 + $0x30] sm:$0xff] %v2570_v14 }
 0x59e   :  { %2534 = vxpose.xlu0.b32.cont [9/16] %v7394_v48, 128  ;;  %v2479_v28 = vpop.trf.xlu1 }
 0x59f   :  { %v2598_v31 = vadd.f32 %v7476_v33, %v2479_v28 }
 0x5a1   :  { %2662 = vst [vmem:[#allocation5 + $0x110] sm:$0xff] %v2598_v31 }
 0x5a2   :  { %v2450_v3 = vpop.trf.xlu0 }
 0x5a3   :  { %v2572_v0 = vadd.f32 %v7476_v33, %v2450_v3 }
 0x5a5   :  { %2636 = vst [vmem:[#allocation5 + $0x40] sm:$0xff] %v2572_v0 }
 0x5a6   :  { %2535 = vxpose.xlu0.b32.cont [10/16] %v7236_v46, 128  ;;  %v2480_v49 = vpop.trf.xlu1 }
 0x5a7   :  { %v2600_v29 = vadd.f32 %v7476_v33, %v2480_v49 }
 0x5a9   :  { %2664 = vst [vmem:[#allocation5 + $0x120] sm:$0xff] %v2600_v29 }
 0x5aa   :  { %v2451_v13 = vpop.trf.xlu0 }
 0x5ab   :  { %v2574_v19 = vadd.f32 %v7476_v33, %v2451_v13 }
 0x5ad   :  { %2638 = vst [vmem:[#allocation5 + $0x50] sm:$0xff] %v2574_v19 }
 0x5ae   :  { %2536 = vxpose.xlu0.b32.cont [11/16] %v7249_v5, 128  ;;  %v2481_v10 = vpop.trf.xlu1 }
 0x5af   :  { %v2602_v57 = vadd.f32 %v7476_v33, %v2481_v10 }
 0x5b1   :  { %2666 = vst [vmem:[#allocation5 + $0x130] sm:$0xff] %v2602_v57 }
 0x5b2   :  { %v2452_v16 = vpop.trf.xlu0 }
 0x5b3   :  { %v2576_v56 = vadd.f32 %v7476_v33, %v2452_v16 }
 0x5b5   :  { %2640 = vst [vmem:[#allocation5 + $0x60] sm:$0xff] %v2576_v56 }
 0x5b6   :  { %2537 = vxpose.xlu0.b32.cont [12/16] %v7430_v6, 128  ;;  %v2482_v27 = vpop.trf.xlu1 }
 0x5b7   :  { %v2604_v22 = vadd.f32 %v7476_v33, %v2482_v27 }
 0x5b9   :  { %2668 = vst [vmem:[#allocation5 + $0x140] sm:$0xff] %v2604_v22 }
 0x5ba   :  { %v2453_v38 = vpop.trf.xlu0 }
 0x5bb   :  { %v2578_v12 = vadd.f32 %v7476_v33, %v2453_v38 }
 0x5bd   :  { %2642 = vst [vmem:[#allocation5 + $0x70] sm:$0xff] %v2578_v12 }
 0x5be   :  { %2538 = vxpose.xlu0.b32.cont [13/16] %v7287_v23, 128  ;;  %v2483_v9 = vpop.trf.xlu1 }
 0x5bf   :  { %v2606_v59 = vadd.f32 %v7476_v33, %v2483_v9 }
 0x5c1   :  { %2670 = vst [vmem:[#allocation5 + $0x150] sm:$0xff] %v2606_v59 }
 0x5c2   :  { %v2454_v48 = vpop.trf.xlu0 }
 0x5c3   :  { %v2580_v46 = vadd.f32 %v7476_v33, %v2454_v48 }
 0x5c5   :  { %2644 = vst [vmem:[#allocation5 + $0x80] sm:$0xff] %v2580_v46 }
 0x5c6   :  { %2539 = vxpose.xlu0.b32.cont [14/16] %v7300_v60, 128  ;;  %v2510_v60 = vpop.trf.xlu2  ;;  %v2484_v11 = vpop.trf.xlu1 }
 0x5c7   :  { %v2565_v1 = vadd.f32 %v7501_v55, %v2510_v60  ;;  %v2608_v32 = vadd.f32 %v7476_v33, %v2484_v11 }
 0x5c9   :  { %2629 = vst [vmem:[#allocation5 + $0x8] sm:$0xff] %v2565_v1 }
 0x5ca   :  { %v2455_v43 = vpop.trf.xlu0  ;;  %2672 = vst [vmem:[#allocation5 + $0x160] sm:$0xff] %v2608_v32 }
 0x5cb   :  { %v2582_v5 = vadd.f32 %v7476_v33, %v2455_v43 }
 0x5cd   :  { %2646 = vst [vmem:[#allocation5 + $0x90] sm:$0xff] %v2582_v5 }
 0x5ce   :  { %2540 = vxpose.xlu0.b32.cont [15/16] %v7446_v15, 128  ;;  %v2485_v30 = vpop.trf.xlu1 }
 0x5cf   :  { %v2610_v24 = vadd.f32 %v7476_v33, %v2485_v30 }
 0x5d1   :  { %2674 = vst [vmem:[#allocation5 + $0x170] sm:$0xff] %v2610_v24 }
 0x5d2   :  { %v2456_v4 = vpop.trf.xlu0 }
 0x5d3   :  { %v2584_v26 = vadd.f32 %v7476_v33, %v2456_v4 }
 0x5d5   :  { %2648 = vst [vmem:[#allocation5 + $0xa0] sm:$0xff] %v2584_v26 }
 0x5d6   :  { %2541 = vxpose.xlu0.b32.end [16/16] %v7346_v51, 128  ;;  %v2511_v51 = vpop.trf.xlu2  ;;  %v2486_v13 = vpop.trf.xlu1 }
 0x5d7   :  { %v2567_v8 = vadd.f32 %v7501_v55, %v2511_v51  ;;  %v2612_v16 = vadd.f32 %v7476_v33, %v2486_v13 }
 0x5d9   :  { %2631 = vst [vmem:[#allocation5 + $0x18] sm:$0xff] %v2567_v8 }
 0x5da   :  { %v2457_v45 = vpop.trf.xlu0  ;;  %2676 = vst [vmem:[#allocation5 + $0x180] sm:$0xff] %v2612_v16 }
 0x5db   :  { %v2586_v23 = vadd.f32 %v7476_v33, %v2457_v45 }
 0x5dd   :  { %2650 = vst [vmem:[#allocation5 + $0xb0] sm:$0xff] %v2586_v23 }
 0x5de   :  { %v2512_v25 = vpop.trf.xlu2  ;;  %v2487_v48 = vpop.trf.xlu1 }
 0x5df   :  { %v2569_v17 = vadd.f32 %v7501_v55, %v2512_v25  ;;  %v2614_v43 = vadd.f32 %v7476_v33, %v2487_v48 }
 0x5e1   :  { %2633 = vst [vmem:[#allocation5 + $0x28] sm:$0xff] %v2569_v17 }
 0x5e2   :  { %v2458_v61 = vpop.trf.xlu0  ;;  %2678 = vst [vmem:[#allocation5 + $0x190] sm:$0xff] %v2614_v43 }
 0x5e3   :  { %v2588_v41 = vadd.f32 %v7476_v33, %v2458_v61 }
 0x5e5   :  { %2652 = vst [vmem:[#allocation5 + $0xc0] sm:$0xff] %v2588_v41 }
 0x5e6   :  { %v2513_v47 = vpop.trf.xlu2  ;;  %v2488_v45 = vpop.trf.xlu1 }
 0x5e7   :  { %v2571_v53 = vadd.f32 %v7501_v55, %v2513_v47  ;;  %v2616_v34 = vadd.f32 %v7476_v33, %v2488_v45 }
 0x5e9   :  { %2635 = vst [vmem:[#allocation5 + $0x38] sm:$0xff] %v2571_v53 }
 0x5ea   :  { %v2459_v40 = vpop.trf.xlu0  ;;  %2680 = vst [vmem:[#allocation5 + $0x1a0] sm:$0xff] %v2616_v34 }
 0x5eb   :  { %v2590_v6 = vadd.f32 %v7476_v33, %v2459_v40 }
 0x5ed   :  { %2654 = vst [vmem:[#allocation5 + $0xd0] sm:$0xff] %v2590_v6 }
 0x5ee   :  { %v2514_v35 = vpop.trf.xlu2  ;;  %v2489_v61 = vpop.trf.xlu1 }
 0x5ef   :  { %v2573_v39 = vadd.f32 %v7501_v55, %v2514_v35  ;;  %v2618_v28 = vadd.f32 %v7476_v33, %v2489_v61 }
 0x5f1   :  { %2637 = vst [vmem:[#allocation5 + $0x48] sm:$0xff] %v2573_v39 }
 0x5f2   :  { %v2460_v37 = vpop.trf.xlu0  ;;  %2682 = vst [vmem:[#allocation5 + $0x1b0] sm:$0xff] %v2618_v28 }
 0x5f3   :  { %v2592_v63 = vadd.f32 %v7476_v33, %v2460_v37 }
 0x5f5   :  { %2656 = vst [vmem:[#allocation5 + $0xe0] sm:$0xff] %v2592_v63 }
 0x5f6   :  { %v2515_v62 = vpop.trf.xlu2  ;;  %v2490_v40 = vpop.trf.xlu1 }
 0x5f7   :  { %v2575_v58 = vadd.f32 %v7501_v55, %v2515_v62  ;;  %v2620_v49 = vadd.f32 %v7476_v33, %v2490_v40 }
 0x5f9   :  { %2639 = vst [vmem:[#allocation5 + $0x58] sm:$0xff] %v2575_v58 }
 0x5fa   :  { %v2461_v7 = vpop.trf.xlu0  ;;  %2684 = vst [vmem:[#allocation5 + $0x1c0] sm:$0xff] %v2620_v49 }
 0x5fb   :  { %v2594_v20 = vadd.f32 %v7476_v33, %v2461_v7 }
 0x5fd   :  { %2658 = vst [vmem:[#allocation5 + $0xf0] sm:$0xff] %v2594_v20 }
 0x5fe   :  { %v2516_v2 = vpop.trf.xlu2  ;;  %v2491_v37 = vpop.trf.xlu1 }
 0x5ff   :  { %v2577_v54 = vadd.f32 %v7501_v55, %v2516_v2  ;;  %v2622_v10 = vadd.f32 %v7476_v33, %v2491_v37 }
 0x601   :  { %2641 = vst [vmem:[#allocation5 + $0x68] sm:$0xff] %v2577_v54 }
 0x602   :  { %v2542_v52 = vpop.trf.xlu0  ;;  %2686 = vst [vmem:[#allocation5 + $0x1d0] sm:$0xff] %v2622_v10 }
 0x603   :  { %v2597_v15 = vadd.f32 %v7501_v55, %v2542_v52 }
 0x605   :  { %2661 = vst [vmem:[#allocation5 + $0x108] sm:$0xff] %v2597_v15 }
 0x606   :  { %v2517_v18 = vpop.trf.xlu2  ;;  %v2492_v7 = vpop.trf.xlu1 }
 0x607   :  { %v2579_v14 = vadd.f32 %v7501_v55, %v2517_v18  ;;  %v2624_v27 = vadd.f32 %v7476_v33, %v2492_v7 }
 0x609   :  { %2643 = vst [vmem:[#allocation5 + $0x78] sm:$0xff] %v2579_v14 }
 0x60a   :  { %v2543_v50 = vpop.trf.xlu0  ;;  %2688 = vst [vmem:[#allocation5 + $0x1e0] sm:$0xff] %v2624_v27 }
 0x60b   :  { %v2599_v36 = vadd.f32 %v7501_v55, %v2543_v50 }
 0x60d   :  { %2663 = vst [vmem:[#allocation5 + $0x118] sm:$0xff] %v2599_v36 }
 0x60e   :  { %v2518_v19 = vpop.trf.xlu2  ;;  %v2493_v52 = vpop.trf.xlu1 }
 0x60f   :  { %v2581_v56 = vadd.f32 %v7501_v55, %v2518_v19  ;;  %v2626_v9 = vadd.f32 %v7476_v33, %v2493_v52 }
 0x611   :  { %2645 = vst [vmem:[#allocation5 + $0x88] sm:$0xff] %v2581_v56 }
 0x612   :  { %v2544_v44 = vpop.trf.xlu0  ;;  %2690 = vst [vmem:[#allocation5 + $0x1f0] sm:$0xff] %v2626_v9 }
 0x613   :  { %v2601_v42 = vadd.f32 %v7501_v55, %v2544_v44 }
 0x615   :  { %2665 = vst [vmem:[#allocation5 + $0x128] sm:$0xff] %v2601_v42 }
 0x616   :  { %v2519_v46 = vpop.trf.xlu2 }
 0x617   :  { %v2583_v5 = vadd.f32 %v7501_v55, %v2519_v46 }
 0x619   :  { %2647 = vst [vmem:[#allocation5 + $0x98] sm:$0xff] %v2583_v5 }
 0x61a   :  { %v2545_v3 = vpop.trf.xlu0 }
 0x61b   :  { %v2603_v0 = vadd.f32 %v7501_v55, %v2545_v3 }
 0x61d   :  { %2667 = vst [vmem:[#allocation5 + $0x138] sm:$0xff] %v2603_v0 }
 0x61e   :  { %v2520_v23 = vpop.trf.xlu2 }
 0x61f   :  { %v2585_v60 = vadd.f32 %v7501_v55, %v2520_v23 }
 0x621   :  { %2649 = vst [vmem:[#allocation5 + $0xa8] sm:$0xff] %v2585_v60 }
 0x622   :  { %v2546_v38 = vpop.trf.xlu0 }
 0x623   :  { %v2605_v12 = vadd.f32 %v7501_v55, %v2546_v38 }
 0x625   :  { %2669 = vst [vmem:[#allocation5 + $0x148] sm:$0xff] %v2605_v12 }
 0x626   :  { %v2521_v41 = vpop.trf.xlu2 }
 0x627   :  { %v2587_v51 = vadd.f32 %v7501_v55, %v2521_v41 }
 0x629   :  { %2651 = vst [vmem:[#allocation5 + $0xb8] sm:$0xff] %v2587_v51 }
 0x62a   :  { %v2547_v4 = vpop.trf.xlu0 }
 0x62b   :  { %v2607_v26 = vadd.f32 %v7501_v55, %v2547_v4 }
 0x62d   :  { %2671 = vst [vmem:[#allocation5 + $0x158] sm:$0xff] %v2607_v26 }
 0x62e   :  { %v2522_v6 = vpop.trf.xlu2 }
 0x62f   :  { %v2589_v25 = vadd.f32 %v7501_v55, %v2522_v6 }
 0x631   :  { %2653 = vst [vmem:[#allocation5 + $0xc8] sm:$0xff] %v2589_v25 }
 0x632   :  { %v2548_v21 = vpop.trf.xlu0 }
 0x633   :  { %v2609_v1 = vadd.f32 %v7501_v55, %v2548_v21 }
 0x635   :  { %2673 = vst [vmem:[#allocation5 + $0x168] sm:$0xff] %v2609_v1 }
 0x636   :  { %v2523_v63 = vpop.trf.xlu2 }
 0x637   :  { %v2591_v47 = vadd.f32 %v7501_v55, %v2523_v63 }
 0x639   :  { %2655 = vst [vmem:[#allocation5 + $0xd8] sm:$0xff] %v2591_v47 }
 0x63a   :  { %v2549_v31 = vpop.trf.xlu0 }
 0x63b   :  { %v2611_v8 = vadd.f32 %v7501_v55, %v2549_v31 }
 0x63d   :  { %2675 = vst [vmem:[#allocation5 + $0x178] sm:$0xff] %v2611_v8 }
 0x63e   :  { %v2524_v20 = vpop.trf.xlu2 }
 0x63f   :  { %v2593_v35 = vadd.f32 %v7501_v55, %v2524_v20 }
 0x641   :  { %2657 = vst [vmem:[#allocation5 + $0xe8] sm:$0xff] %v2593_v35 }
 0x642   :  { %v2550_v29 = vpop.trf.xlu0 }
 0x643   :  { %v2613_v17 = vadd.f32 %v7501_v55, %v2550_v29 }
 0x645   :  { %2677 = vst [vmem:[#allocation5 + $0x188] sm:$0xff] %v2613_v17 }
 0x646   :  { %v2525_v15 = vpop.trf.xlu2 }
 0x647   :  { %v2595_v62 = vadd.f32 %v7501_v55, %v2525_v15 }
 0x649   :  { %2659 = vst [vmem:[#allocation5 + $0xf8] sm:$0xff] %v2595_v62 }
 0x64a   :  { %v2551_v57 = vpop.trf.xlu0 }
 0x64b   :  { %v2615_v53 = vadd.f32 %v7501_v55, %v2551_v57 }
 0x64d   :  { %2679 = vst [vmem:[#allocation5 + $0x198] sm:$0xff] %v2615_v53 }
 0x652   :  { %v2552_v22 = vpop.trf.xlu0 }
 0x653   :  { %v2617_v39 = vadd.f32 %v7501_v55, %v2552_v22 }
 0x655   :  { %2681 = vst [vmem:[#allocation5 + $0x1a8] sm:$0xff] %v2617_v39 }
 0x65a   :  { %v2553_v59 = vpop.trf.xlu0 }
 0x65b   :  { %v2619_v58 = vadd.f32 %v7501_v55, %v2553_v59 }
 0x65d   :  { %2683 = vst [vmem:[#allocation5 + $0x1b8] sm:$0xff] %v2619_v58 }
 0x662   :  { %v2554_v50 = vpop.trf.xlu0 }
 0x663   :  { %v2621_v36 = vadd.f32 %v7501_v55, %v2554_v50 }
 0x665   :  { %2685 = vst [vmem:[#allocation5 + $0x1c8] sm:$0xff] %v2621_v36 }
 0x66a   :  { %v2555_v11 = vpop.trf.xlu0 }
 0x66b   :  { %v2623_v2 = vadd.f32 %v7501_v55, %v2555_v11 }
 0x66d   :  { %2687 = vst [vmem:[#allocation5 + $0x1d8] sm:$0xff] %v2623_v2 }
 0x672   :  { %v2556_v32 = vpop.trf.xlu0 }
 0x673   :  { %v2625_v54 = vadd.f32 %v7501_v55, %v2556_v32 }
 0x675   :  { %2689 = vst [vmem:[#allocation5 + $0x1e8] sm:$0xff] %v2625_v54 }
 0x67a   :  { %v2557_v33 = vpop.trf.xlu0 }
 0x67b   :  { %v2627_v44 = vadd.f32 %v7501_v55, %v2557_v33 }
 0x67d   :  { %2691 = vst [vmem:[#allocation5 + $0x1f8] sm:$0xff] %v2627_v44 }
 0x67e   :  { %2704 = dma.vmem_to_hbm [thread:$0]  %s2697_s6, 8192, %s2699_s9, [#allocation4], %s2916_s17, %s2916_s17, %s2917_s18  }
 0x67f   :  { %2913 = dma.done.wait [#allocation4], 8192  }
 0x680   :  { %2914 = vsyncadd [#allocation4], 4294959104 }
 0x681   :  { %2709 = vsyncpa [#allocation3], 1 }
 0x682   :  { %2710 = vsyncpa [#allocation4], 1 }

</bundles_post_ra>
